<compile_context>
chip_gen: v7x
topology: tpu7x:2x2x1
jax: 0.10.0
libtpu: 0.0.40
codegen_flags: <defaults>
</compile_context>

<pallas_src>
import functools

import jax
import jax.numpy as jnp
from jax.experimental import pallas as pl
from jax.experimental.pallas import tpu as pltpu


# ------------------------------ tiling helpers ------------------------------ #

def _round_up(x, q):
    return ((x + q - 1) // q) * q


def _choose_tile(dim, max_tile, quantum):
    """Largest tile <= max_tile that divides `dim` (multiple of `quantum`);
    small dims use the full dim (allowed when block == full array dim)."""
    if dim <= max_tile:
        return dim
    t = (max_tile // quantum) * quantum
    while t >= quantum:
        if dim % t == 0:
            return t
        t -= quantum
    return dim


# ------------------------------ Pallas kernels ------------------------------ #

def _epilogue(acc, o_ref, stats_ref, apply_lrelu, emit_stats, slope=0.2):
    """Shared conv epilogue: optional BN stats emit + optional LeakyReLU."""
    if emit_stats:
        ssum = jnp.sum(acc, axis=0, keepdims=True)          # (1, tn)
        ssq = jnp.sum(acc * acc, axis=0, keepdims=True)     # (1, tn)
        stats_ref[0] = jnp.concatenate([ssum, ssq], axis=0)
    if apply_lrelu:
        acc = jnp.where(acc >= 0.0, acc, slope * acc)
    o_ref[...] = acc.astype(o_ref.dtype)


def _conv_matmul_kernel_1k(a_ref, w_ref, *rest, apply_lrelu, emit_stats):
    """Single-K-step conv-as-matmul: one MXU dot, no accumulator scratch."""
    if emit_stats:
        o_ref, stats_ref = rest
    else:
        (o_ref,) = rest
        stats_ref = None
    acc = jnp.dot(a_ref[...], w_ref[...], preferred_element_type=jnp.float32)
    _epilogue(acc, o_ref, stats_ref, apply_lrelu, emit_stats)


def _conv_matmul_kernel_nk(a_ref, w_ref, *rest, apply_lrelu, emit_stats):
    """Tiled (M,K)@(K,N) with K reduction into an f32 VMEM accumulator."""
    if emit_stats:
        o_ref, stats_ref, acc_ref = rest
    else:
        o_ref, acc_ref = rest
        stats_ref = None

    k = pl.program_id(2)

    @pl.when(k == 0)
    def _():
        acc_ref[...] = jnp.zeros_like(acc_ref)

    acc_ref[...] += jnp.dot(a_ref[...], w_ref[...],
                            preferred_element_type=jnp.float32)

    @pl.when(k == pl.num_programs(2) - 1)
    def _():
        _epilogue(acc_ref[...], o_ref, stats_ref, apply_lrelu, emit_stats)


# ------------------------------ Pallas wrapper ------------------------------ #

def conv_matmul(a, w, *, apply_lrelu=False, emit_stats=False,
                out_dtype=jnp.bfloat16):
    """a: (M, K) bf16 im2col rows, w: (K, N) bf16 weights -> (M, N) out_dtype.

    K and N must be multiples of 128 (the weights are pre-padded that way).
    M is padded internally to a multiple of the M tile with zero rows (which
    contribute nothing to the output or the BN sums) and sliced back.
    If emit_stats, also returns (gm, 2, N) f32 per-M-tile [sum, sum_sq].
    """
    M, K = a.shape
    K2, N = w.shape
    assert K == K2 and K % 128 == 0 and N % 128 == 0, (a.shape, w.shape)

    tn = _choose_tile(N, 512, 128)
    tk = _choose_tile(K, 2048, 128)
    tm = min(512, _round_up(M, 8))
    Mp = _round_up(M, tm)
    if Mp != M:
        a = jnp.pad(a, ((0, Mp - M), (0, 0)))
    gm, gn, gk = Mp // tm, N // tn, K // tk

    if emit_stats:
        out_shape = (jax.ShapeDtypeStruct((Mp, N), out_dtype),
                     jax.ShapeDtypeStruct((gm, 2, N), jnp.float32))
    else:
        out_shape = jax.ShapeDtypeStruct((Mp, N), out_dtype)

    if gk == 1:
        kern = functools.partial(_conv_matmul_kernel_1k,
                                 apply_lrelu=apply_lrelu,
                                 emit_stats=emit_stats)
        grid = (gm, gn)
        in_specs = [pl.BlockSpec((tm, tk), lambda i, j: (i, 0)),
                    pl.BlockSpec((tk, tn), lambda i, j: (0, j))]
        if emit_stats:
            out_specs = (pl.BlockSpec((tm, tn), lambda i, j: (i, j)),
                         pl.BlockSpec((1, 2, tn), lambda i, j: (i, 0, j)))
        else:
            out_specs = pl.BlockSpec((tm, tn), lambda i, j: (i, j))
        scratch_shapes = ()
        dims = ("parallel", "parallel")
    else:
        kern = functools.partial(_conv_matmul_kernel_nk,
                                 apply_lrelu=apply_lrelu,
                                 emit_stats=emit_stats)
        grid = (gm, gn, gk)
        in_specs = [pl.BlockSpec((tm, tk), lambda i, j, k: (i, k)),
                    pl.BlockSpec((tk, tn), lambda i, j, k: (k, j))]
        if emit_stats:
            out_specs = (pl.BlockSpec((tm, tn), lambda i, j, k: (i, j)),
                         pl.BlockSpec((1, 2, tn), lambda i, j, k: (i, 0, j)))
        else:
            out_specs = pl.BlockSpec((tm, tn), lambda i, j, k: (i, j))
        scratch_shapes = [pltpu.VMEM((tm, tn), jnp.float32)]
        dims = ("parallel", "parallel", "arbitrary")

    out = pl.pallas_call(
        kern,
        out_shape=out_shape,
        grid_spec=pltpu.PrefetchScalarGridSpec(
            num_scalar_prefetch=0,
            grid=grid,
            in_specs=in_specs,
            out_specs=out_specs,
            scratch_shapes=scratch_shapes),
        compiler_params=pltpu.CompilerParams(dimension_semantics=dims),
    )(a, w)

    if emit_stats:
        rows, stats = out
        return rows[:M], stats
    return out[:M]


# ------------------------------ JAX glue (jitted) --------------------------- #

def _im2col_nhwc(x, k, stride, pad):
    """NHWC bf16 x -> (N*OH*OW, k*k*C) bf16 rows (tap-major, channel-minor)."""
    N, H, W, C = x.shape
    xp = jnp.pad(x, ((0, 0), (pad, pad), (pad, pad), (0, 0)))
    OH = (H + 2 * pad - k) // stride + 1
    OW = (W + 2 * pad - k) // stride + 1
    taps = []
    for i in range(k):
        for j in range(k):
            taps.append(xp[:, i:i + stride * OH:stride,
                           j:j + stride * OW:stride, :])
    p = jnp.stack(taps, axis=3)                      # (N, OH, OW, k*k, C)
    return p.reshape(N * OH * OW, k * k * C), OH, OW


def discriminator_forward(params, x, y):
    """x, y: (N, C, H, W) f32 -> (N, 1, OH, OW) f32 (PyTorch forward semantics)."""
    h = jnp.concatenate([x, y], axis=1)              # channel concat (as PyTorch)
    h = jnp.transpose(h, (0, 2, 3, 1)).astype(jnp.bfloat16)   # NHWC bf16, once
    n = h.shape[0]

    # pad input channels so layer-0 K = 16*Cpad is a multiple of 128 (lane-dense A)
    cpad_to = params["w0"].shape[0] // 16
    if h.shape[-1] < cpad_to:
        h = jnp.pad(h, ((0, 0), (0, 0), (0, 0), (0, cpad_to - h.shape[-1])))

    # block 0: conv(s=2) + LeakyReLU fused; output lane-dense 128-wide,
    # real channels are [:64].
    rows, OH, OW = _im2col_nhwc(h, 4, 2, 1)
    rows = conv_matmul(rows, params["w0"], apply_lrelu=True)   # (M, 128) bf16
    h = rows[:, :64].reshape(n, OH, OW, 64)

    # blocks 1..3: conv(s=2) -> BatchNorm (training-mode batch stats) -> LReLU.
    # BN stats come from the f32 accumulator inside the conv kernel; BN apply
    # + LReLU is plain jnp so XLA fuses it with the next im2col glue.
    for li in (1, 2, 3):
        rows, OH, OW = _im2col_nhwc(h, 4, 2, 1)
        m_real = rows.shape[0]                        # N*OH*OW == BN reduction size
        rows, stats = conv_matmul(rows, params[f"w{li}"], emit_stats=True)
        s = jnp.sum(stats, axis=0)                    # (2, C): [sum, sum_sq]
        mean = s[0] / m_real
        var = jnp.maximum(s[1] / m_real - mean * mean, 0.0)   # biased batch var
        inv = jax.lax.rsqrt(var + 1e-5)
        scale = params[f"gamma{li}"] * inv            # (1, C)
        shift = params[f"beta{li}"] - mean * scale    # (1, C)
        act = rows.astype(jnp.float32) * scale + shift
        act = jnp.where(act >= 0.0, act, 0.2 * act)
        cout = params[f"w{li}"].shape[1]
        h = act.astype(jnp.bfloat16).reshape(n, OH, OW, cout)

    # final conv: 512 -> 1, k=4, s=1, p=1; lane-dense 128-wide output slab
    # (weights zero-padded to 128 out channels); real output is channel 0.
    # TODO(synk): tap-wise in-kernel accumulation would avoid the 16x stride-1
    # im2col expansion for large images.
    rows, OH, OW = _im2col_nhwc(h, 4, 1, 1)
    rows = conv_matmul(rows, params["w_final"], out_dtype=jnp.float32)
    out = rows[:, :1].reshape(n, OH, OW, 1)
    return jnp.transpose(out, (0, 3, 1, 2))          # back to NCHW at the boundary


class Discriminator:
    """JAX/Pallas port of the PyTorch Discriminator (deterministic synthetic params)."""

    def __init__(self, in_channels=3, key=jax.random.PRNGKey(42)):
        self.in_channels = in_channels
        chans = [(in_channels * 2, 64), (64, 128), (128, 256), (256, 512)]
        keys = jax.random.split(key, 16)
        ki = 0
        params = {}
        for li, (cin, cout) in enumerate(chans):
            fan_in = cin * 4 * 4
            w = (jax.random.normal(keys[ki], (cout, cin, 4, 4), jnp.float32)
                 * (1.0 / jnp.sqrt(fan_in)))
            ki += 1
            # (Cout, Cin, kh, kw) -> (kh, kw, cin, cout), then zero-pad cin to a
            # multiple of 8 (K lane-dense) and cout to >=128 (store lane-dense),
            # then flatten to (kh*kw*cin_pad, cout_pad). bf16 MXU operands.
            wt = jnp.transpose(w, (2, 3, 1, 0))
            cin_pad = _round_up(cin, 8)
            cout_pad = max(_round_up(cout, 128), 128)
            wt = jnp.pad(wt, ((0, 0), (0, 0),
                              (0, cin_pad - cin), (0, cout_pad - cout)))
            params[f"w{li}"] = wt.reshape(16 * cin_pad, cout_pad).astype(jnp.bfloat16)
            if li > 0:  # normalize=True blocks carry BatchNorm affine params
                params[f"gamma{li}"] = (1.0 + 0.1 * jax.random.normal(
                    keys[ki], (1, cout), jnp.float32)); ki += 1
                params[f"beta{li}"] = (0.1 * jax.random.normal(
                    keys[ki], (1, cout), jnp.float32)); ki += 1
        # final conv 512 -> 1 (k=4, s=1, p=1, no bias): pad output channels to
        # 128 so the kernel stores a lane-dense slab; only channel 0 is real.
        fan_in = 512 * 4 * 4
        wf = (jax.random.normal(keys[ki], (1, 512, 4, 4), jnp.float32)
              * (1.0 / jnp.sqrt(fan_in)))
        wf_mat = jnp.transpose(wf, (2, 3, 1, 0)).reshape(16 * 512, 1)
        params["w_final"] = jnp.pad(wf_mat, ((0, 0), (0, 127))).astype(jnp.bfloat16)

        self.params = params
        self._forward = jax.jit(discriminator_forward)

    def __call__(self, x, y):
        return self._forward(self.params, x, y)


if __name__ == "__main__":
    key = jax.random.PRNGKey(0)
    kx, ky = jax.random.split(key)
    # 32x32 spatial so the final k=4/s=1/p=1 conv has a valid (>=1) output size.
    x = jax.random.normal(kx, (2, 3, 32, 32), jnp.float32)
    y = jax.random.normal(ky, (2, 3, 32, 32), jnp.float32)

    disc = Discriminator(in_channels=3)
    out = disc(x, y)
    out = jax.block_until_ready(out)

    assert out.shape == (2, 1, 1, 1), out.shape
    assert out.dtype == jnp.float32
    assert bool(jnp.all(jnp.isfinite(out)))
    print("KERNEL_OK")
</pallas_src>

<mosaic_0001>
module attributes {stable_mosaic.version = 11 : i64} {
  func.func @_conv_matmul_kernel_1k(%arg0: i32, %arg1: i32, %arg2: memref<512x128xbf16, #tpu.memory_space<vmem>>, %arg3: memref<128x128xbf16, #tpu.memory_space<vmem>>, %arg4: memref<512x128xbf16, #tpu.memory_space<vmem>>) attributes {dimension_semantics = [#tpu.dimension_semantics<parallel>, #tpu.dimension_semantics<parallel>], iteration_bounds = array<i64: 1, 1>, scalar_prefetch = 0 : i64, scratch_operands = 0 : i64, tpu.core_type = #tpu.core_type<tc>, window_params = [{transform_indices = @transform_0, window_bounds = array<i64: 512, 128>}, {transform_indices = @transform_1, window_bounds = array<i64: 128, 128>}, {transform_indices = @transform_2, window_bounds = array<i64: 512, 128>}]} {
    %c0 = arith.constant 0 : index
    %c0_0 = arith.constant 0 : index
    %0 = vector.load %arg2[%c0, %c0_0] : memref<512x128xbf16, #tpu.memory_space<vmem>>, vector<512x128xbf16>
    %c0_1 = arith.constant 0 : index
    %c0_2 = arith.constant 0 : index
    %1 = vector.load %arg3[%c0_1, %c0_2] : memref<128x128xbf16, #tpu.memory_space<vmem>>, vector<128x128xbf16>
    %cst = arith.constant dense<0.000000e+00> : vector<512x128xf32>
    %2 = tpu.matmul %0, %1, %cst {dimension_numbers = #tpu.dot_dimension_numbers<[1], [0], [0], [1], [0, 0, 1, 1], [], []>} : vector<512x128xbf16>, vector<128x128xbf16>, vector<512x128xf32> -> vector<512x128xf32>
    %cst_3 = arith.constant 0.000000e+00 : f32
    %3 = vector.broadcast %cst_3 : f32 to vector<512x128xf32>
    %4 = arith.cmpf oge, %2, %3 : vector<512x128xf32>
    %cst_4 = arith.constant 2.000000e-01 : f32
    %5 = vector.broadcast %cst_4 : f32 to vector<512x128xf32>
    %6 = arith.mulf %5, %2 : vector<512x128xf32>
    %7 = arith.select %4, %2, %6 : vector<512x128xi1>, vector<512x128xf32>
    %8 = arith.truncf %7 : vector<512x128xf32> to vector<512x128xbf16>
    %c0_5 = arith.constant 0 : index
    %c0_6 = arith.constant 0 : index
    %9 = vector.load %arg4[%c0_5, %c0_6] : memref<512x128xbf16, #tpu.memory_space<vmem>>, vector<512x128xbf16>
    tpu.vector_store %arg4[%c0_5, %c0_6], %8 {strides = array<i32>} : memref<512x128xbf16, #tpu.memory_space<vmem>>, vector<512x128xbf16>,
    return
  }
  func.func @transform_0(%arg0: i32, %arg1: i32) -> (i32, i32) {
    %c0_i32 = arith.constant 0 : i32
    %c0_i32_0 = arith.constant 0 : i32
    return %arg0, %c0_i32 : i32, i32
  }
  func.func @transform_1(%arg0: i32, %arg1: i32) -> (i32, i32) {
    %c0_i32 = arith.constant 0 : i32
    %c0_i32_0 = arith.constant 0 : i32
    return %c0_i32, %arg1 : i32, i32
  }
  func.func @transform_2(%arg0: i32, %arg1: i32) -> (i32, i32) {
    %c0_i32 = arith.constant 0 : i32
    return %arg0, %arg1 : i32, i32
  }
}

module attributes {stable_mosaic.version = 11 : i64} {
  func.func @_conv_matmul_kernel_1k(%arg0: i32, %arg1: i32, %arg2: memref<128x1024xbf16, #tpu.memory_space<vmem>>, %arg3: memref<1024x128xbf16, #tpu.memory_space<vmem>>, %arg4: memref<128x128xbf16, #tpu.memory_space<vmem>>, %arg5: memref<1x2x128xf32, #tpu.memory_space<vmem>>) attributes {dimension_semantics = [#tpu.dimension_semantics<parallel>, #tpu.dimension_semantics<parallel>], iteration_bounds = array<i64: 1, 1>, scalar_prefetch = 0 : i64, scratch_operands = 0 : i64, tpu.core_type = #tpu.core_type<tc>, window_params = [{transform_indices = @transform_0, window_bounds = array<i64: 128, 1024>}, {transform_indices = @transform_1, window_bounds = array<i64: 1024, 128>}, {transform_indices = @transform_2, window_bounds = array<i64: 128, 128>}, {transform_indices = @transform_3, window_bounds = array<i64: 1, 2, 128>}]} {
    %c0 = arith.constant 0 : index
    %c0_0 = arith.constant 0 : index
    %0 = vector.load %arg2[%c0, %c0_0] : memref<128x1024xbf16, #tpu.memory_space<vmem>>, vector<128x1024xbf16>
    %c0_1 = arith.constant 0 : index
    %c0_2 = arith.constant 0 : index
    %1 = vector.load %arg3[%c0_1, %c0_2] : memref<1024x128xbf16, #tpu.memory_space<vmem>>, vector<1024x128xbf16>
    %cst = arith.constant dense<0.000000e+00> : vector<128x128xf32>
    %2 = tpu.matmul %0, %1, %cst {dimension_numbers = #tpu.dot_dimension_numbers<[1], [0], [0], [1], [0, 0, 1, 1], [], []>} : vector<128x1024xbf16>, vector<1024x128xbf16>, vector<128x128xf32> -> vector<128x128xf32>
    %cst_3 = arith.constant dense<0.000000e+00> : vector<128xf32>
    %3 = vector.multi_reduction <add>, %2, %cst_3 [0] : vector<128x128xf32> to vector<128xf32>
    %4 = vector.shape_cast %3 : vector<128xf32> to vector<1x128xf32>
    %5 = arith.mulf %2, %2 : vector<128x128xf32>
    %cst_4 = arith.constant dense<0.000000e+00> : vector<128xf32>
    %6 = vector.multi_reduction <add>, %5, %cst_4 [0] : vector<128x128xf32> to vector<128xf32>
    %7 = vector.shape_cast %6 : vector<128xf32> to vector<1x128xf32>
    %8 = tpu.concatenate %4, %7 in 0 : vector<1x128xf32>, vector<1x128xf32> -> vector<2x128xf32>
    %c0_5 = arith.constant 0 : index
    %c0_6 = arith.constant 0 : index
    %c0_7 = arith.constant 0 : index
    %9 = vector.load %arg5[%c0_5, %c0_6, %c0_7] : memref<1x2x128xf32, #tpu.memory_space<vmem>>, vector<1x2x128xf32>
    %10 = vector.shape_cast %9 : vector<1x2x128xf32> to vector<2x128xf32>
    %11 = vector.shape_cast %8 : vector<2x128xf32> to vector<1x2x128xf32>
    tpu.vector_store %arg5[%c0_5, %c0_6, %c0_7], %11 {strides = array<i32>} : memref<1x2x128xf32, #tpu.memory_space<vmem>>, vector<1x2x128xf32>,
    %12 = arith.truncf %2 : vector<128x128xf32> to vector<128x128xbf16>
    %c0_8 = arith.constant 0 : index
    %c0_9 = arith.constant 0 : index
    %13 = vector.load %arg4[%c0_8, %c0_9] : memref<128x128xbf16, #tpu.memory_space<vmem>>, vector<128x128xbf16>
    tpu.vector_store %arg4[%c0_8, %c0_9], %12 {strides = array<i32>} : memref<128x128xbf16, #tpu.memory_space<vmem>>, vector<128x128xbf16>,
    return
  }
  func.func @transform_0(%arg0: i32, %arg1: i32) -> (i32, i32) {
    %c0_i32 = arith.constant 0 : i32
    %c0_i32_0 = arith.constant 0 : i32
    return %arg0, %c0_i32 : i32, i32
  }
  func.func @transform_1(%arg0: i32, %arg1: i32) -> (i32, i32) {
    %c0_i32 = arith.constant 0 : i32
    %c0_i32_0 = arith.constant 0 : i32
    return %c0_i32, %arg1 : i32, i32
  }
  func.func @transform_2(%arg0: i32, %arg1: i32) -> (i32, i32) {
    %c0_i32 = arith.constant 0 : i32
    return %arg0, %arg1 : i32, i32
  }
  func.func @transform_3(%arg0: i32, %arg1: i32) -> (i32, i32, i32) {
    %c0_i32 = arith.constant 0 : i32
    %c0_i32_0 = arith.constant 0 : i32
    return %arg0, %c0_i32, %arg1 : i32, i32, i32
  }
}

module attributes {stable_mosaic.version = 11 : i64} {
  func.func @_conv_matmul_kernel_1k(%arg0: i32, %arg1: i32, %arg2: memref<32x2048xbf16, #tpu.memory_space<vmem>>, %arg3: memref<2048x256xbf16, #tpu.memory_space<vmem>>, %arg4: memref<32x256xbf16, #tpu.memory_space<vmem>>, %arg5: memref<1x2x256xf32, #tpu.memory_space<vmem>>) attributes {dimension_semantics = [#tpu.dimension_semantics<parallel>, #tpu.dimension_semantics<parallel>], iteration_bounds = array<i64: 1, 1>, scalar_prefetch = 0 : i64, scratch_operands = 0 : i64, tpu.core_type = #tpu.core_type<tc>, window_params = [{transform_indices = @transform_0, window_bounds = array<i64: 32, 2048>}, {transform_indices = @transform_1, window_bounds = array<i64: 2048, 256>}, {transform_indices = @transform_2, window_bounds = array<i64: 32, 256>}, {transform_indices = @transform_3, window_bounds = array<i64: 1, 2, 256>}]} {
    %c0 = arith.constant 0 : index
    %c0_0 = arith.constant 0 : index
    %0 = vector.load %arg2[%c0, %c0_0] : memref<32x2048xbf16, #tpu.memory_space<vmem>>, vector<32x2048xbf16>
    %c0_1 = arith.constant 0 : index
    %c0_2 = arith.constant 0 : index
    %1 = vector.load %arg3[%c0_1, %c0_2] : memref<2048x256xbf16, #tpu.memory_space<vmem>>, vector<2048x256xbf16>
    %cst = arith.constant dense<0.000000e+00> : vector<32x256xf32>
    %2 = tpu.matmul %0, %1, %cst {dimension_numbers = #tpu.dot_dimension_numbers<[1], [0], [0], [1], [0, 0, 1, 1], [], []>} : vector<32x2048xbf16>, vector<2048x256xbf16>, vector<32x256xf32> -> vector<32x256xf32>
    %cst_3 = arith.constant dense<0.000000e+00> : vector<256xf32>
    %3 = vector.multi_reduction <add>, %2, %cst_3 [0] : vector<32x256xf32> to vector<256xf32>
    %4 = vector.shape_cast %3 : vector<256xf32> to vector<1x256xf32>
    %5 = arith.mulf %2, %2 : vector<32x256xf32>
    %cst_4 = arith.constant dense<0.000000e+00> : vector<256xf32>
    %6 = vector.multi_reduction <add>, %5, %cst_4 [0] : vector<32x256xf32> to vector<256xf32>
    %7 = vector.shape_cast %6 : vector<256xf32> to vector<1x256xf32>
    %8 = tpu.concatenate %4, %7 in 0 : vector<1x256xf32>, vector<1x256xf32> -> vector<2x256xf32>
    %c0_5 = arith.constant 0 : index
    %c0_6 = arith.constant 0 : index
    %c0_7 = arith.constant 0 : index
    %9 = vector.load %arg5[%c0_5, %c0_6, %c0_7] : memref<1x2x256xf32, #tpu.memory_space<vmem>>, vector<1x2x256xf32>
    %10 = vector.shape_cast %9 : vector<1x2x256xf32> to vector<2x256xf32>
    %11 = vector.shape_cast %8 : vector<2x256xf32> to vector<1x2x256xf32>
    tpu.vector_store %arg5[%c0_5, %c0_6, %c0_7], %11 {strides = array<i32>} : memref<1x2x256xf32, #tpu.memory_space<vmem>>, vector<1x2x256xf32>,
    %12 = arith.truncf %2 : vector<32x256xf32> to vector<32x256xbf16>
    %c0_8 = arith.constant 0 : index
    %c0_9 = arith.constant 0 : index
    %13 = vector.load %arg4[%c0_8, %c0_9] : memref<32x256xbf16, #tpu.memory_space<vmem>>, vector<32x256xbf16>
    tpu.vector_store %arg4[%c0_8, %c0_9], %12 {strides = array<i32>} : memref<32x256xbf16, #tpu.memory_space<vmem>>, vector<32x256xbf16>,
    return
  }
  func.func @transform_0(%arg0: i32, %arg1: i32) -> (i32, i32) {
    %c0_i32 = arith.constant 0 : i32
    %c0_i32_0 = arith.constant 0 : i32
    return %arg0, %c0_i32 : i32, i32
  }
  func.func @transform_1(%arg0: i32, %arg1: i32) -> (i32, i32) {
    %c0_i32 = arith.constant 0 : i32
    %c0_i32_0 = arith.constant 0 : i32
    return %c0_i32, %arg1 : i32, i32
  }
  func.func @transform_2(%arg0: i32, %arg1: i32) -> (i32, i32) {
    %c0_i32 = arith.constant 0 : i32
    return %arg0, %arg1 : i32, i32
  }
  func.func @transform_3(%arg0: i32, %arg1: i32) -> (i32, i32, i32) {
    %c0_i32 = arith.constant 0 : i32
    %c0_i32_0 = arith.constant 0 : i32
    return %arg0, %c0_i32, %arg1 : i32, i32, i32
  }
}

module attributes {stable_mosaic.version = 11 : i64} {
  func.func @_conv_matmul_kernel_nk(%arg0: i32, %arg1: i32, %arg2: i32, %arg3: memref<8x2048xbf16, #tpu.memory_space<vmem>>, %arg4: memref<2048x512xbf16, #tpu.memory_space<vmem>>, %arg5: memref<8x512xbf16, #tpu.memory_space<vmem>>, %arg6: memref<1x2x512xf32, #tpu.memory_space<vmem>>, %arg7: memref<8x512xf32, #tpu.memory_space<vmem>>) attributes {dimension_semantics = [#tpu.dimension_semantics<parallel>, #tpu.dimension_semantics<parallel>, #tpu.dimension_semantics<arbitrary>], iteration_bounds = array<i64: 1, 1, 2>, scalar_prefetch = 0 : i64, scratch_operands = 1 : i64, tpu.core_type = #tpu.core_type<tc>, window_params = [{transform_indices = @transform_0, window_bounds = array<i64: 8, 2048>}, {transform_indices = @transform_1, window_bounds = array<i64: 2048, 512>}, {transform_indices = @transform_2, window_bounds = array<i64: 8, 512>}, {transform_indices = @transform_3, window_bounds = array<i64: 1, 2, 512>}]} {
    %c0_i32 = arith.constant 0 : i32
    %0 = arith.cmpi eq, %arg2, %c0_i32 : i32
    %1 = arith.extui %0 : i1 to i32
    %c0_i32_0 = arith.constant 0 : i32
    %2 = arith.cmpi ne, %1, %c0_i32_0 : i32
    scf.if %2 {
      %cst_9 = arith.constant 0.000000e+00 : f32
      %12 = vector.broadcast %cst_9 : f32 to vector<8x512xf32>
      %c0_10 = arith.constant 0 : index
      %c0_11 = arith.constant 0 : index
      %13 = vector.load %arg7[%c0_10, %c0_11] : memref<8x512xf32, #tpu.memory_space<vmem>>, vector<8x512xf32>
      tpu.vector_store %arg7[%c0_10, %c0_11], %12 {strides = array<i32>} : memref<8x512xf32, #tpu.memory_space<vmem>>, vector<8x512xf32>,
    } else {
    }
    %c0 = arith.constant 0 : index
    %c0_1 = arith.constant 0 : index
    %3 = vector.load %arg7[%c0, %c0_1] : memref<8x512xf32, #tpu.memory_space<vmem>>, vector<8x512xf32>
    %c0_2 = arith.constant 0 : index
    %c0_3 = arith.constant 0 : index
    %4 = vector.load %arg3[%c0_2, %c0_3] : memref<8x2048xbf16, #tpu.memory_space<vmem>>, vector<8x2048xbf16>
    %c0_4 = arith.constant 0 : index
    %c0_5 = arith.constant 0 : index
    %5 = vector.load %arg4[%c0_4, %c0_5] : memref<2048x512xbf16, #tpu.memory_space<vmem>>, vector<2048x512xbf16>
    %cst = arith.constant dense<0.000000e+00> : vector<8x512xf32>
    %6 = tpu.matmul %4, %5, %cst {dimension_numbers = #tpu.dot_dimension_numbers<[1], [0], [0], [1], [0, 0, 1, 1], [], []>} : vector<8x2048xbf16>, vector<2048x512xbf16>, vector<8x512xf32> -> vector<8x512xf32>
    %7 = arith.addf %3, %6 : vector<8x512xf32>
    %c0_6 = arith.constant 0 : index
    %c0_7 = arith.constant 0 : index
    %8 = vector.load %arg7[%c0_6, %c0_7] : memref<8x512xf32, #tpu.memory_space<vmem>>, vector<8x512xf32>
    tpu.vector_store %arg7[%c0_6, %c0_7], %7 {strides = array<i32>} : memref<8x512xf32, #tpu.memory_space<vmem>>, vector<8x512xf32>,
    %c1_i32 = arith.constant 1 : i32
    %9 = arith.cmpi eq, %arg2, %c1_i32 : i32
    %10 = arith.extui %9 : i1 to i32
    %c0_i32_8 = arith.constant 0 : i32
    %11 = arith.cmpi ne, %10, %c0_i32_8 : i32
    scf.if %11 {
      %c0_9 = arith.constant 0 : index
      %c0_10 = arith.constant 0 : index
      %12 = vector.load %arg7[%c0_9, %c0_10] : memref<8x512xf32, #tpu.memory_space<vmem>>, vector<8x512xf32>
      %cst_11 = arith.constant dense<0.000000e+00> : vector<512xf32>
      %13 = vector.multi_reduction <add>, %12, %cst_11 [0] : vector<8x512xf32> to vector<512xf32>
      %14 = vector.shape_cast %13 : vector<512xf32> to vector<1x512xf32>
      %15 = arith.mulf %12, %12 : vector<8x512xf32>
      %cst_12 = arith.constant dense<0.000000e+00> : vector<512xf32>
      %16 = vector.multi_reduction <add>, %15, %cst_12 [0] : vector<8x512xf32> to vector<512xf32>
      %17 = vector.shape_cast %16 : vector<512xf32> to vector<1x512xf32>
      %18 = tpu.concatenate %14, %17 in 0 : vector<1x512xf32>, vector<1x512xf32> -> vector<2x512xf32>
      %c0_13 = arith.constant 0 : index
      %c0_14 = arith.constant 0 : index
      %c0_15 = arith.constant 0 : index
      %19 = vector.load %arg6[%c0_13, %c0_14, %c0_15] : memref<1x2x512xf32, #tpu.memory_space<vmem>>, vector<1x2x512xf32>
      %20 = vector.shape_cast %19 : vector<1x2x512xf32> to vector<2x512xf32>
      %21 = vector.shape_cast %18 : vector<2x512xf32> to vector<1x2x512xf32>
      tpu.vector_store %arg6[%c0_13, %c0_14, %c0_15], %21 {strides = array<i32>} : memref<1x2x512xf32, #tpu.memory_space<vmem>>, vector<1x2x512xf32>,
      %22 = arith.truncf %12 : vector<8x512xf32> to vector<8x512xbf16>
      %c0_16 = arith.constant 0 : index
      %c0_17 = arith.constant 0 : index
      %23 = vector.load %arg5[%c0_16, %c0_17] : memref<8x512xbf16, #tpu.memory_space<vmem>>, vector<8x512xbf16>
      tpu.vector_store %arg5[%c0_16, %c0_17], %22 {strides = array<i32>} : memref<8x512xbf16, #tpu.memory_space<vmem>>, vector<8x512xbf16>,
    } else {
    }
    return
  }
  func.func @transform_0(%arg0: i32, %arg1: i32, %arg2: i32) -> (i32, i32) {
    %c0_i32 = arith.constant 0 : i32
    return %arg0, %arg2 : i32, i32
  }
  func.func @transform_1(%arg0: i32, %arg1: i32, %arg2: i32) -> (i32, i32) {
    %c0_i32 = arith.constant 0 : i32
    return %arg2, %arg1 : i32, i32
  }
  func.func @transform_2(%arg0: i32, %arg1: i32, %arg2: i32) -> (i32, i32) {
    %c0_i32 = arith.constant 0 : i32
    return %arg0, %arg1 : i32, i32
  }
  func.func @transform_3(%arg0: i32, %arg1: i32, %arg2: i32) -> (i32, i32, i32) {
    %c0_i32 = arith.constant 0 : i32
    %c0_i32_0 = arith.constant 0 : i32
    return %arg0, %c0_i32, %arg1 : i32, i32, i32
  }
}

module attributes {stable_mosaic.version = 11 : i64} {
  func.func @_conv_matmul_kernel_nk(%arg0: i32, %arg1: i32, %arg2: i32, %arg3: memref<8x2048xbf16, #tpu.memory_space<vmem>>, %arg4: memref<2048x128xbf16, #tpu.memory_space<vmem>>, %arg5: memref<8x128xf32, #tpu.memory_space<vmem>>, %arg6: memref<8x128xf32, #tpu.memory_space<vmem>>) attributes {dimension_semantics = [#tpu.dimension_semantics<parallel>, #tpu.dimension_semantics<parallel>, #tpu.dimension_semantics<arbitrary>], iteration_bounds = array<i64: 1, 1, 4>, scalar_prefetch = 0 : i64, scratch_operands = 1 : i64, tpu.core_type = #tpu.core_type<tc>, window_params = [{transform_indices = @transform_0, window_bounds = array<i64: 8, 2048>}, {transform_indices = @transform_1, window_bounds = array<i64: 2048, 128>}, {transform_indices = @transform_2, window_bounds = array<i64: 8, 128>}]} {
    %c0_i32 = arith.constant 0 : i32
    %0 = arith.cmpi eq, %arg2, %c0_i32 : i32
    %1 = arith.extui %0 : i1 to i32
    %c0_i32_0 = arith.constant 0 : i32
    %2 = arith.cmpi ne, %1, %c0_i32_0 : i32
    scf.if %2 {
      %cst_9 = arith.constant 0.000000e+00 : f32
      %12 = vector.broadcast %cst_9 : f32 to vector<8x128xf32>
      %c0_10 = arith.constant 0 : index
      %c0_11 = arith.constant 0 : index
      %13 = vector.load %arg6[%c0_10, %c0_11] : memref<8x128xf32, #tpu.memory_space<vmem>>, vector<8x128xf32>
      tpu.vector_store %arg6[%c0_10, %c0_11], %12 {strides = array<i32>} : memref<8x128xf32, #tpu.memory_space<vmem>>, vector<8x128xf32>,
    } else {
    }
    %c0 = arith.constant 0 : index
    %c0_1 = arith.constant 0 : index
    %3 = vector.load %arg6[%c0, %c0_1] : memref<8x128xf32, #tpu.memory_space<vmem>>, vector<8x128xf32>
    %c0_2 = arith.constant 0 : index
    %c0_3 = arith.constant 0 : index
    %4 = vector.load %arg3[%c0_2, %c0_3] : memref<8x2048xbf16, #tpu.memory_space<vmem>>, vector<8x2048xbf16>
    %c0_4 = arith.constant 0 : index
    %c0_5 = arith.constant 0 : index
    %5 = vector.load %arg4[%c0_4, %c0_5] : memref<2048x128xbf16, #tpu.memory_space<vmem>>, vector<2048x128xbf16>
    %cst = arith.constant dense<0.000000e+00> : vector<8x128xf32>
    %6 = tpu.matmul %4, %5, %cst {dimension_numbers = #tpu.dot_dimension_numbers<[1], [0], [0], [1], [0, 0, 1, 1], [], []>} : vector<8x2048xbf16>, vector<2048x128xbf16>, vector<8x128xf32> -> vector<8x128xf32>
    %7 = arith.addf %3, %6 : vector<8x128xf32>
    %c0_6 = arith.constant 0 : index
    %c0_7 = arith.constant 0 : index
    %8 = vector.load %arg6[%c0_6, %c0_7] : memref<8x128xf32, #tpu.memory_space<vmem>>, vector<8x128xf32>
    tpu.vector_store %arg6[%c0_6, %c0_7], %7 {strides = array<i32>} : memref<8x128xf32, #tpu.memory_space<vmem>>, vector<8x128xf32>,
    %c3_i32 = arith.constant 3 : i32
    %9 = arith.cmpi eq, %arg2, %c3_i32 : i32
    %10 = arith.extui %9 : i1 to i32
    %c0_i32_8 = arith.constant 0 : i32
    %11 = arith.cmpi ne, %10, %c0_i32_8 : i32
    scf.if %11 {
      %c0_9 = arith.constant 0 : index
      %c0_10 = arith.constant 0 : index
      %12 = vector.load %arg6[%c0_9, %c0_10] : memref<8x128xf32, #tpu.memory_space<vmem>>, vector<8x128xf32>
      %c0_11 = arith.constant 0 : index
      %c0_12 = arith.constant 0 : index
      %13 = vector.load %arg5[%c0_11, %c0_12] : memref<8x128xf32, #tpu.memory_space<vmem>>, vector<8x128xf32>
      tpu.vector_store %arg5[%c0_11, %c0_12], %12 {strides = array<i32>} : memref<8x128xf32, #tpu.memory_space<vmem>>, vector<8x128xf32>,
    } else {
    }
    return
  }
  func.func @transform_0(%arg0: i32, %arg1: i32, %arg2: i32) -> (i32, i32) {
    %c0_i32 = arith.constant 0 : i32
    return %arg0, %arg2 : i32, i32
  }
  func.func @transform_1(%arg0: i32, %arg1: i32, %arg2: i32) -> (i32, i32) {
    %c0_i32 = arith.constant 0 : i32
    return %arg2, %arg1 : i32, i32
  }
  func.func @transform_2(%arg0: i32, %arg1: i32, %arg2: i32) -> (i32, i32) {
    %c0_i32 = arith.constant 0 : i32
    return %arg0, %arg1 : i32, i32
  }
}

</mosaic_0001>

<bundles_post_ra>
// kernel: discriminator_forward.5
= control target key start
LH: loop header
LB: loop body
LE: loop exit
PB: predicated region body
PF: predicated region fallthrough
CT: control target
= control target key end

     0   :  { %s1910_s1 = inlined_call_operand.vmem [shape: bf16[128,128], index: 1, kind: input, shape index: {}]   ;;  %s1911_s0 = inlined_call_operand.vmem [shape: bf16[512,128], index: 0, kind: input, shape index: {}]   ;;  %s1912_s2 = inlined_call_operand.vmem [shape: bf16[512,128], index: 2, kind: output, shape index: {}]  }
   0x1   :  { %v1632_v0 = vld [vmem:[%s1910_s1] sm:$0xff]   ;;  %v1633_v1 = vld [vmem:[%s1910_s1 + $0x8] sm:$0xff]   ;;  %v1634_v2 = vld [vmem:[%s1910_s1 + $0x10] sm:$0xff]  }
   0x2   :  { %1536 = vmatprep.subr.bf16.mxu0 %v1632_v0  ;;  %1616 = vmatprep.subr.bf16.mxu1 %v1632_v0  ;;  %v1635_v3 = vld [vmem:[%s1910_s1 + $0x18] sm:$0xff]   ;;  %v1640_v4 = vld [vmem:[%s1911_s0] sm:$0xff]   ;;  %v1637_v7 = vld [vmem:[%s1910_s1 + $0x28] sm:$0xff]  }
   0x3   :  { %1537 = vmatpush3.bf16.msra.mxu0 %v1632_v0  ;;  %1624 = vmatpush3.bf16.msra.mxu1 %v1632_v0  ;;  %v1641_v5 = vld [vmem:[%s1911_s0 + $0x80] sm:$0xff]   ;;  %v1638_v8 = vld [vmem:[%s1910_s1 + $0x30] sm:$0xff]   ;;  %v1639_v9 = vld [vmem:[%s1910_s1 + $0x38] sm:$0xff]  }
   0x4   :  { %1538 = vmatprep.subr.bf16.mxu0 %v1633_v1  ;;  %1617 = vmatprep.subr.bf16.mxu1 %v1633_v1  ;;  %v1636_v6 = vld [vmem:[%s1910_s1 + $0x20] sm:$0xff]   ;;  %v1642_v10 = vld [vmem:[%s1911_s0 + $0x8] sm:$0xff]   ;;  %v1644_v12 = vld [vmem:[%s1911_s0 + $0x10] sm:$0xff]  }
   0x5   :  { %1552 = vmatprep.mubr.bf16.mxu0 %v1640_v4  ;;  %1584 = vmatprep.mubr.bf16.mxu1 %v1641_v5  ;;  %v1643_v11 = vld [vmem:[%s1911_s0 + $0x88] sm:$0xff]   ;;  %v1645_v13 = vld [vmem:[%s1911_s0 + $0x90] sm:$0xff]   ;;  %v1646_v14 = vld [vmem:[%s1911_s0 + $0x18] sm:$0xff]  }
   0x6   :  { %v1647_v15 = vld [vmem:[%s1911_s0 + $0x98] sm:$0xff]   ;;  %v1648_v16 = vld [vmem:[%s1911_s0 + $0x20] sm:$0xff]   ;;  %v1650_v18 = vld [vmem:[%s1911_s0 + $0x28] sm:$0xff]  }
   0x7   :  { %1539 = vmatpush3.bf16.msra.mxu0 %v1633_v1  ;;  %1625 = vmatpush3.bf16.msra.mxu1 %v1633_v1  ;;  %v1649_v17 = vld [vmem:[%s1911_s0 + $0xa0] sm:$0xff]   ;;  %v1651_v19 = vld [vmem:[%s1911_s0 + $0xa8] sm:$0xff]   ;;  %v1652_v20 = vld [vmem:[%s1911_s0 + $0x30] sm:$0xff]  }
   0x8   :  { %1540 = vmatprep.subr.bf16.mxu0 %v1634_v2  ;;  %1618 = vmatprep.subr.bf16.mxu1 %v1634_v2  ;;  %v1653_v21 = vld [vmem:[%s1911_s0 + $0xb0] sm:$0xff]   ;;  %v1654_v22 = vld [vmem:[%s1911_s0 + $0x38] sm:$0xff]   ;;  %v1656_v24 = vld [vmem:[%s1911_s0 + $0x40] sm:$0xff]  }
   0x9   :  { %v1655_v23 = vld [vmem:[%s1911_s0 + $0xb8] sm:$0xff]   ;;  %v1657_v25 = vld [vmem:[%s1911_s0 + $0xc0] sm:$0xff]   ;;  %v1658_v26 = vld [vmem:[%s1911_s0 + $0x48] sm:$0xff]  }
   0xa   :  { %v1659_v27 = vld [vmem:[%s1911_s0 + $0xc8] sm:$0xff]   ;;  %v1660_v28 = vld [vmem:[%s1911_s0 + $0x50] sm:$0xff]   ;;  %v1662_v30 = vld [vmem:[%s1911_s0 + $0x58] sm:$0xff]  }
   0xb   :  { %1541 = vmatpush3.bf16.msra.mxu0 %v1634_v2  ;;  %1626 = vmatpush3.bf16.msra.mxu1 %v1634_v2  ;;  %v1661_v29 = vld [vmem:[%s1911_s0 + $0xd0] sm:$0xff]   ;;  %v1663_v31 = vld [vmem:[%s1911_s0 + $0xd8] sm:$0xff]   ;;  %v1664_v32 = vld [vmem:[%s1911_s0 + $0x60] sm:$0xff]  }
   0xc   :  { %1542 = vmatprep.subr.bf16.mxu0 %v1635_v3  ;;  %1619 = vmatprep.subr.bf16.mxu1 %v1635_v3  ;;  %v1665_v33 = vld [vmem:[%s1911_s0 + $0xe0] sm:$0xff]   ;;  %v1666_v34 = vld [vmem:[%s1911_s0 + $0x68] sm:$0xff]   ;;  %v1668_v36 = vld [vmem:[%s1911_s0 + $0x70] sm:$0xff]  }
   0xd   :  { %v1667_v35 = vld [vmem:[%s1911_s0 + $0xe8] sm:$0xff]   ;;  %v1669_v37 = vld [vmem:[%s1911_s0 + $0xf0] sm:$0xff]   ;;  %v1670_v38 = vld [vmem:[%s1911_s0 + $0x78] sm:$0xff]  }
   0xe   :  { %v1671_v39 = vld [vmem:[%s1911_s0 + $0xf8] sm:$0xff]  }
   0xf   :  { %1543 = vmatpush3.bf16.msra.mxu0 %v1635_v3  ;;  %1627 = vmatpush3.bf16.msra.mxu1 %v1635_v3 }
  0x10   :  { %1544 = vmatprep.subr.bf16.mxu0 %v1636_v6  ;;  %1620 = vmatprep.subr.bf16.mxu1 %v1636_v6 }
  0x13   :  { %1545 = vmatpush3.bf16.msra.mxu0 %v1636_v6  ;;  %1628 = vmatpush3.bf16.msra.mxu1 %v1636_v6 }
  0x14   :  { %1546 = vmatprep.subr.bf16.mxu0 %v1637_v7  ;;  %1621 = vmatprep.subr.bf16.mxu1 %v1637_v7 }
  0x17   :  { %1547 = vmatpush3.bf16.msra.mxu0 %v1637_v7  ;;  %1629 = vmatpush3.bf16.msra.mxu1 %v1637_v7 }
  0x18   :  { %1548 = vmatprep.subr.bf16.mxu0 %v1638_v8  ;;  %1622 = vmatprep.subr.bf16.mxu1 %v1638_v8 }
  0x1b   :  { %1549 = vmatpush3.bf16.msra.mxu0 %v1638_v8  ;;  %1630 = vmatpush3.bf16.msra.mxu1 %v1638_v8 }
  0x1c   :  { %1550 = vmatprep.subr.bf16.mxu0 %v1639_v9  ;;  %1623 = vmatprep.subr.bf16.mxu1 %v1639_v9 }
  0x1f   :  { %1551 = vmatpush3.bf16.msra.mxu0 %v1639_v9  ;;  %1631 = vmatpush3.bf16.msra.mxu1 %v1639_v9 }
  0x22   :  { %1553 = vmatmul.mubr.bf16.vlgmr.msra.gmra.mrb[0].mxu0 %v1642_v10  ;;  %1585 = vmatmul.mubr.bf16.vlgmr.msra.gmra.mrb[0].mxu1 %v1643_v11 }
  0x23   :  { %1556 = vmatprep.mubr.bf16.mxu0 %v1644_v12  ;;  %1588 = vmatprep.mubr.bf16.mxu1 %v1645_v13 }
  0x2a   :  { %1557 = vmatmul.mubr.bf16.gmra.mrb[4].mxu0 %v1646_v14  ;;  %1589 = vmatmul.mubr.bf16.gmra.mrb[4].mxu1 %v1647_v15 }
  0x2b   :  { %1560 = vmatprep.mubr.bf16.mxu0 %v1648_v16  ;;  %1592 = vmatprep.mubr.bf16.mxu1 %v1649_v17 }
  0x32   :  { %1561 = vmatmul.mubr.bf16.gmra.mrb[8].mxu0 %v1650_v18  ;;  %1593 = vmatmul.mubr.bf16.gmra.mrb[8].mxu1 %v1651_v19 }
  0x33   :  { %1564 = vmatprep.mubr.bf16.mxu0 %v1652_v20  ;;  %1596 = vmatprep.mubr.bf16.mxu1 %v1653_v21 }
  0x3a   :  { %1565 = vmatmul.mubr.bf16.gmra.mrb[12].mxu0 %v1654_v22  ;;  %1597 = vmatmul.mubr.bf16.gmra.mrb[12].mxu1 %v1655_v23 }
  0x3b   :  { %1568 = vmatprep.mubr.bf16.mxu0 %v1656_v24  ;;  %1600 = vmatprep.mubr.bf16.mxu1 %v1657_v25 }
  0x42   :  { %1569 = vmatmul.mubr.bf16.gmra.mrb[16].mxu0 %v1658_v26  ;;  %1601 = vmatmul.mubr.bf16.gmra.mrb[16].mxu1 %v1659_v27 }
  0x43   :  { %1572 = vmatprep.mubr.bf16.mxu0 %v1660_v28  ;;  %1604 = vmatprep.mubr.bf16.mxu1 %v1661_v29 }
  0x4a   :  { %1573 = vmatmul.mubr.bf16.gmra.mrb[20].mxu0 %v1662_v30  ;;  %1605 = vmatmul.mubr.bf16.gmra.mrb[20].mxu1 %v1663_v31 }
  0x4b   :  { %1576 = vmatprep.mubr.bf16.mxu0 %v1664_v32  ;;  %1608 = vmatprep.mubr.bf16.mxu1 %v1665_v33 }
  0x52   :  { %1577 = vmatmul.mubr.bf16.gmra.mrb[24].mxu0 %v1666_v34  ;;  %1609 = vmatmul.mubr.bf16.gmra.mrb[24].mxu1 %v1667_v35 }
  0x53   :  { %1580 = vmatprep.mubr.bf16.mxu0 %v1668_v36  ;;  %1612 = vmatprep.mubr.bf16.mxu1 %v1669_v37 }
  0x5a   :  { %1581 = vmatmul.mubr.bf16.gmra.mrb[28].mxu0 %v1670_v38  ;;  %1613 = vmatmul.mubr.bf16.gmra.mrb[28].mxu1 %v1671_v39 }
  0xf5   :  { %v1554_v40 = vpop.f32.mrb[0].mxu0  ;;  %v1586_v41 = vpop.f32.mrb[0].mxu1 }
  0xf6   :  { %vm623_vm0 = vcmp.ge.f32.partialorder %v1554_v40, 0.0  ;;  %v687_v42 = vmul.f32 0.2, %v1554_v40  ;;  %v719_v43 = vmul.f32 0.2, %v1586_v41  ;;  %vm655_vm1 = vcmp.ge.f32.partialorder %v1586_v41, 0.0 }
  0xf7   :  { %v366_v44 = vpop.f32.mrb[1].mxu0  ;;  %v494_v45 = vpop.f32.mrb[1].mxu1 }
  0xf8   :  { %v685_v46 = vmul.f32 0.2, %v366_v44  ;;  %v1555_v47 = vpop.f32.mrb[2].mxu0  ;;  %v1587_v48 = vpop.f32.mrb[2].mxu1  ;;  %v751_v49 = vsel %vm623_vm0, %v1554_v40, %v687_v42  ;;  %v717_v50 = vmul.f32 0.2, %v494_v45  ;;  %v783_v52 = vsel %vm655_vm1, %v1586_v41, %v719_v43 }
  0xf9   :  { %vm624_vm2 = vcmp.ge.f32.partialorder %v1555_v47, 0.0  ;;  %v688_v51 = vmul.f32 0.2, %v1555_v47  ;;  %vm621_vm3 = vcmp.ge.f32.partialorder %v366_v44, 0.0  ;;  %vm656_vm4 = vcmp.ge.f32.partialorder %v1587_v48, 0.0  ;;  %v369_v54 = vpop.f32.mrb[3].mxu0 }
  0xfa   :  { %v720_v53 = vmul.f32 0.2, %v1587_v48  ;;  %v497_v55 = vpop.f32.mrb[3].mxu1  ;;  %vm653_vm5 = vcmp.ge.f32.partialorder %v494_v45, 0.0  ;;  %vm622_vm6 = vcmp.ge.f32.partialorder %v369_v54, 0.0  ;;  %v749_v61 = vsel %vm621_vm3, %v366_v44, %v685_v46 }
  0xfb   :  { %v752_v56 = vsel %vm624_vm2, %v1555_v47, %v688_v51  ;;  %v686_v57 = vmul.f32 0.2, %v369_v54  ;;  %vm654_vm7 = vcmp.ge.f32.partialorder %v497_v55, 0.0  ;;  %v718_v60 = vmul.f32 0.2, %v497_v55 }
  0xfc   :  { %v1313_v58 = vpack.c.bf16 %v752_v56, %v751_v49  ;;  %v784_v59 = vsel %vm656_vm4, %v1587_v48, %v720_v53  ;;  %v781_v2 = vsel %vm653_vm5, %v494_v45, %v717_v50 }
  0xfd   :  { %v1393_v62 = vpack.c.bf16 %v784_v59, %v783_v52  ;;  %v750_v63 = vsel %vm622_vm6, %v369_v54, %v686_v57  ;;  %v1558_v0 = vpop.f32.mrb[4].mxu0  ;;  %v1590_v1 = vpop.f32.mrb[4].mxu1  ;;  %v782_v4 = vsel %vm654_vm7, %v497_v55, %v718_v60 }
  0xfe   :  { %1465 = vst [vmem:[%s1912_s2 + $0x8] sm:$0xff] %v1313_v58   ;;  %v1308_v3 = vpack.c.bf16 %v750_v63, %v749_v61  ;;  %v691_v5 = vmul.f32 0.2, %v1558_v0  ;;  %v382_v6 = vpop.f32.mrb[5].mxu0  ;;  %v510_v7 = vpop.f32.mrb[5].mxu1  ;;  %v1388_v8 = vpack.c.bf16 %v782_v4, %v781_v2  ;;  %vm627_vm8 = vcmp.ge.f32.partialorder %v1558_v0, 0.0 }
  0xff   :  { %1481 = vst [vmem:[%s1912_s2 + $0x88] sm:$0xff] %v1393_v62   ;;  %v723_v9 = vmul.f32 0.2, %v1590_v1  ;;  %v1559_v10 = vpop.f32.mrb[6].mxu0  ;;  %v1591_v11 = vpop.f32.mrb[6].mxu1  ;;  %vm659_vm9 = vcmp.ge.f32.partialorder %v1590_v1, 0.0 }
 0x100   :  { %1309 = vst [vmem:[%s1912_s2] sm:$0xff] %v1308_v3   ;;  %v689_v12 = vmul.f32 0.2, %v382_v6  ;;  %v721_v13 = vmul.f32 0.2, %v510_v7  ;;  %v385_v14 = vpop.f32.mrb[7].mxu0  ;;  %1480 = vst [vmem:[%s1912_s2 + $0x80] sm:$0xff] %v1388_v8   ;;  %v755_v17 = vsel %vm627_vm8, %v1558_v0, %v691_v5 }
 0x101   :  { %vm625_vm10 = vcmp.ge.f32.partialorder %v382_v6, 0.0  ;;  %vm628_vm11 = vcmp.ge.f32.partialorder %v1559_v10, 0.0  ;;  %v692_v15 = vmul.f32 0.2, %v1559_v10  ;;  %vm660_vm12 = vcmp.ge.f32.partialorder %v1591_v11, 0.0  ;;  %v513_v16 = vpop.f32.mrb[7].mxu1 }
 0x102   :  { %vm657_vm13 = vcmp.ge.f32.partialorder %v510_v7, 0.0  ;;  %v724_v18 = vmul.f32 0.2, %v1591_v11  ;;  %vm626_vm14 = vcmp.ge.f32.partialorder %v385_v14, 0.0  ;;  %v690_v20 = vmul.f32 0.2, %v385_v14 }
 0x103   :  { %v756_v19 = vsel %vm628_vm11, %v1559_v10, %v692_v15  ;;  %vm658_vm15 = vcmp.ge.f32.partialorder %v513_v16, 0.0  ;;  %v722_v21 = vmul.f32 0.2, %v513_v16  ;;  %v787_v22 = vsel %vm659_vm9, %v1590_v1, %v723_v9 }
 0x104   :  { %v753_v23 = vsel %vm625_vm10, %v382_v6, %v689_v12  ;;  %v1323_v24 = vpack.c.bf16 %v756_v19, %v755_v17  ;;  %v788_v25 = vsel %vm660_vm12, %v1591_v11, %v724_v18  ;;  %v785_v26 = vsel %vm657_vm13, %v510_v7, %v721_v13 }
 0x105   :  { %v1403_v27 = vpack.c.bf16 %v788_v25, %v787_v22  ;;  %v754_v28 = vsel %vm626_vm14, %v385_v14, %v690_v20  ;;  %v786_v29 = vsel %vm658_vm15, %v513_v16, %v722_v21  ;;  %v1562_v30 = vpop.f32.mrb[8].mxu0  ;;  %v1594_v31 = vpop.f32.mrb[8].mxu1 }
 0x106   :  { %1467 = vst [vmem:[%s1912_s2 + $0x18] sm:$0xff] %v1323_v24   ;;  %v1318_v32 = vpack.c.bf16 %v754_v28, %v753_v23  ;;  %v1398_v33 = vpack.c.bf16 %v786_v29, %v785_v26  ;;  %vm631_vm0 = vcmp.ge.f32.partialorder %v1562_v30, 0.0  ;;  %v695_v34 = vmul.f32 0.2, %v1562_v30  ;;  %v398_v35 = vpop.f32.mrb[9].mxu0  ;;  %v526_v36 = vpop.f32.mrb[9].mxu1 }
 0x107   :  { %1483 = vst [vmem:[%s1912_s2 + $0x98] sm:$0xff] %v1403_v27   ;;  %vm663_vm1 = vcmp.ge.f32.partialorder %v1594_v31, 0.0  ;;  %v727_v37 = vmul.f32 0.2, %v1594_v31  ;;  %v693_v38 = vmul.f32 0.2, %v398_v35 }
 0x108   :  { %1466 = vst [vmem:[%s1912_s2 + $0x10] sm:$0xff] %v1318_v32   ;;  %1482 = vst [vmem:[%s1912_s2 + $0x90] sm:$0xff] %v1398_v33   ;;  %v725_v39 = vmul.f32 0.2, %v526_v36  ;;  %v1563_v40 = vpop.f32.mrb[10].mxu0  ;;  %v1595_v41 = vpop.f32.mrb[10].mxu1  ;;  %v759_v42 = vsel %vm631_vm0, %v1562_v30, %v695_v34 }
 0x109   :  { %vm629_vm2 = vcmp.ge.f32.partialorder %v398_v35, 0.0  ;;  %vm632_vm3 = vcmp.ge.f32.partialorder %v1563_v40, 0.0  ;;  %v696_v43 = vmul.f32 0.2, %v1563_v40  ;;  %v401_v44 = vpop.f32.mrb[11].mxu0  ;;  %v529_v45 = vpop.f32.mrb[11].mxu1  ;;  %v791_v50 = vsel %vm663_vm1, %v1594_v31, %v727_v37 }
 0x10a   :  { %vm661_vm4 = vcmp.ge.f32.partialorder %v526_v36, 0.0  ;;  %vm664_vm5 = vcmp.ge.f32.partialorder %v1595_v41, 0.0  ;;  %v728_v46 = vmul.f32 0.2, %v1595_v41  ;;  %vm630_vm6 = vcmp.ge.f32.partialorder %v401_v44, 0.0 }
 0x10b   :  { %v760_v47 = vsel %vm632_vm3, %v1563_v40, %v696_v43  ;;  %v694_v48 = vmul.f32 0.2, %v401_v44  ;;  %vm662_vm7 = vcmp.ge.f32.partialorder %v529_v45, 0.0  ;;  %v726_v49 = vmul.f32 0.2, %v529_v45 }
 0x10c   :  { %v757_v51 = vsel %vm629_vm2, %v398_v35, %v693_v38  ;;  %v1333_v52 = vpack.c.bf16 %v760_v47, %v759_v42  ;;  %v792_v53 = vsel %vm664_vm5, %v1595_v41, %v728_v46  ;;  %v789_v54 = vsel %vm661_vm4, %v526_v36, %v725_v39 }
 0x10d   :  { %v1413_v55 = vpack.c.bf16 %v792_v53, %v791_v50  ;;  %v758_v56 = vsel %vm630_vm6, %v401_v44, %v694_v48  ;;  %v790_v57 = vsel %vm662_vm7, %v529_v45, %v726_v49  ;;  %v1566_v58 = vpop.f32.mrb[12].mxu0  ;;  %v1598_v59 = vpop.f32.mrb[12].mxu1 }
 0x10e   :  { %1469 = vst [vmem:[%s1912_s2 + $0x28] sm:$0xff] %v1333_v52   ;;  %v1328_v60 = vpack.c.bf16 %v758_v56, %v757_v51  ;;  %v1408_v61 = vpack.c.bf16 %v790_v57, %v789_v54  ;;  %vm635_vm8 = vcmp.ge.f32.partialorder %v1566_v58, 0.0  ;;  %v699_v62 = vmul.f32 0.2, %v1566_v58  ;;  %v414_v63 = vpop.f32.mrb[13].mxu0  ;;  %v542_v0 = vpop.f32.mrb[13].mxu1 }
 0x10f   :  { %1485 = vst [vmem:[%s1912_s2 + $0xa8] sm:$0xff] %v1413_v55   ;;  %vm667_vm9 = vcmp.ge.f32.partialorder %v1598_v59, 0.0  ;;  %v731_v1 = vmul.f32 0.2, %v1598_v59  ;;  %v697_v2 = vmul.f32 0.2, %v414_v63 }
 0x110   :  { %1468 = vst [vmem:[%s1912_s2 + $0x20] sm:$0xff] %v1328_v60   ;;  %1484 = vst [vmem:[%s1912_s2 + $0xa0] sm:$0xff] %v1408_v61   ;;  %v729_v3 = vmul.f32 0.2, %v542_v0  ;;  %v1567_v4 = vpop.f32.mrb[14].mxu0  ;;  %v1599_v5 = vpop.f32.mrb[14].mxu1  ;;  %v763_v6 = vsel %vm635_vm8, %v1566_v58, %v699_v62 }
 0x111   :  { %vm633_vm10 = vcmp.ge.f32.partialorder %v414_v63, 0.0  ;;  %vm636_vm11 = vcmp.ge.f32.partialorder %v1567_v4, 0.0  ;;  %v700_v7 = vmul.f32 0.2, %v1567_v4  ;;  %v417_v8 = vpop.f32.mrb[15].mxu0  ;;  %v545_v9 = vpop.f32.mrb[15].mxu1  ;;  %v795_v14 = vsel %vm667_vm9, %v1598_v59, %v731_v1 }
 0x112   :  { %vm665_vm12 = vcmp.ge.f32.partialorder %v542_v0, 0.0  ;;  %vm668_vm13 = vcmp.ge.f32.partialorder %v1599_v5, 0.0  ;;  %v732_v10 = vmul.f32 0.2, %v1599_v5  ;;  %vm634_vm14 = vcmp.ge.f32.partialorder %v417_v8, 0.0 }
 0x113   :  { %v764_v11 = vsel %vm636_vm11, %v1567_v4, %v700_v7  ;;  %v698_v12 = vmul.f32 0.2, %v417_v8  ;;  %vm666_vm15 = vcmp.ge.f32.partialorder %v545_v9, 0.0  ;;  %v730_v13 = vmul.f32 0.2, %v545_v9 }
 0x114   :  { %v761_v15 = vsel %vm633_vm10, %v414_v63, %v697_v2  ;;  %v1343_v16 = vpack.c.bf16 %v764_v11, %v763_v6  ;;  %v796_v17 = vsel %vm668_vm13, %v1599_v5, %v732_v10  ;;  %v793_v18 = vsel %vm665_vm12, %v542_v0, %v729_v3 }
 0x115   :  { %v1423_v19 = vpack.c.bf16 %v796_v17, %v795_v14  ;;  %v762_v20 = vsel %vm634_vm14, %v417_v8, %v698_v12  ;;  %v794_v21 = vsel %vm666_vm15, %v545_v9, %v730_v13  ;;  %v1570_v22 = vpop.f32.mrb[16].mxu0  ;;  %v1602_v23 = vpop.f32.mrb[16].mxu1 }
 0x116   :  { %1471 = vst [vmem:[%s1912_s2 + $0x38] sm:$0xff] %v1343_v16   ;;  %v1338_v24 = vpack.c.bf16 %v762_v20, %v761_v15  ;;  %v1418_v25 = vpack.c.bf16 %v794_v21, %v793_v18  ;;  %vm639_vm0 = vcmp.ge.f32.partialorder %v1570_v22, 0.0  ;;  %v703_v26 = vmul.f32 0.2, %v1570_v22  ;;  %v430_v27 = vpop.f32.mrb[17].mxu0  ;;  %v558_v28 = vpop.f32.mrb[17].mxu1 }
 0x117   :  { %1487 = vst [vmem:[%s1912_s2 + $0xb8] sm:$0xff] %v1423_v19   ;;  %vm671_vm1 = vcmp.ge.f32.partialorder %v1602_v23, 0.0  ;;  %v735_v29 = vmul.f32 0.2, %v1602_v23  ;;  %v701_v30 = vmul.f32 0.2, %v430_v27 }
 0x118   :  { %1470 = vst [vmem:[%s1912_s2 + $0x30] sm:$0xff] %v1338_v24   ;;  %1486 = vst [vmem:[%s1912_s2 + $0xb0] sm:$0xff] %v1418_v25   ;;  %v733_v31 = vmul.f32 0.2, %v558_v28  ;;  %v1571_v32 = vpop.f32.mrb[18].mxu0  ;;  %v1603_v33 = vpop.f32.mrb[18].mxu1  ;;  %v767_v34 = vsel %vm639_vm0, %v1570_v22, %v703_v26 }
 0x119   :  { %vm637_vm2 = vcmp.ge.f32.partialorder %v430_v27, 0.0  ;;  %vm640_vm3 = vcmp.ge.f32.partialorder %v1571_v32, 0.0  ;;  %v704_v35 = vmul.f32 0.2, %v1571_v32  ;;  %v433_v36 = vpop.f32.mrb[19].mxu0  ;;  %v561_v37 = vpop.f32.mrb[19].mxu1  ;;  %v799_v42 = vsel %vm671_vm1, %v1602_v23, %v735_v29 }
 0x11a   :  { %vm669_vm4 = vcmp.ge.f32.partialorder %v558_v28, 0.0  ;;  %vm672_vm5 = vcmp.ge.f32.partialorder %v1603_v33, 0.0  ;;  %v736_v38 = vmul.f32 0.2, %v1603_v33  ;;  %vm638_vm6 = vcmp.ge.f32.partialorder %v433_v36, 0.0 }
 0x11b   :  { %v768_v39 = vsel %vm640_vm3, %v1571_v32, %v704_v35  ;;  %v702_v40 = vmul.f32 0.2, %v433_v36  ;;  %vm670_vm7 = vcmp.ge.f32.partialorder %v561_v37, 0.0  ;;  %v734_v41 = vmul.f32 0.2, %v561_v37 }
 0x11c   :  { %v765_v43 = vsel %vm637_vm2, %v430_v27, %v701_v30  ;;  %v1353_v44 = vpack.c.bf16 %v768_v39, %v767_v34  ;;  %v800_v45 = vsel %vm672_vm5, %v1603_v33, %v736_v38  ;;  %v797_v46 = vsel %vm669_vm4, %v558_v28, %v733_v31 }
 0x11d   :  { %v1433_v47 = vpack.c.bf16 %v800_v45, %v799_v42  ;;  %v766_v48 = vsel %vm638_vm6, %v433_v36, %v702_v40  ;;  %v798_v49 = vsel %vm670_vm7, %v561_v37, %v734_v41  ;;  %v1574_v50 = vpop.f32.mrb[20].mxu0  ;;  %v1606_v51 = vpop.f32.mrb[20].mxu1 }
 0x11e   :  { %1473 = vst [vmem:[%s1912_s2 + $0x48] sm:$0xff] %v1353_v44   ;;  %v1348_v52 = vpack.c.bf16 %v766_v48, %v765_v43  ;;  %v1428_v53 = vpack.c.bf16 %v798_v49, %v797_v46  ;;  %vm643_vm8 = vcmp.ge.f32.partialorder %v1574_v50, 0.0  ;;  %v707_v54 = vmul.f32 0.2, %v1574_v50  ;;  %v446_v55 = vpop.f32.mrb[21].mxu0  ;;  %v574_v56 = vpop.f32.mrb[21].mxu1 }
 0x11f   :  { %1489 = vst [vmem:[%s1912_s2 + $0xc8] sm:$0xff] %v1433_v47   ;;  %vm675_vm9 = vcmp.ge.f32.partialorder %v1606_v51, 0.0  ;;  %v739_v57 = vmul.f32 0.2, %v1606_v51  ;;  %v705_v58 = vmul.f32 0.2, %v446_v55 }
 0x120   :  { %1472 = vst [vmem:[%s1912_s2 + $0x40] sm:$0xff] %v1348_v52   ;;  %1488 = vst [vmem:[%s1912_s2 + $0xc0] sm:$0xff] %v1428_v53   ;;  %v737_v59 = vmul.f32 0.2, %v574_v56  ;;  %v1575_v60 = vpop.f32.mrb[22].mxu0  ;;  %v1607_v61 = vpop.f32.mrb[22].mxu1  ;;  %v771_v62 = vsel %vm643_vm8, %v1574_v50, %v707_v54 }
 0x121   :  { %vm641_vm10 = vcmp.ge.f32.partialorder %v446_v55, 0.0  ;;  %vm644_vm11 = vcmp.ge.f32.partialorder %v1575_v60, 0.0  ;;  %v708_v63 = vmul.f32 0.2, %v1575_v60  ;;  %v449_v0 = vpop.f32.mrb[23].mxu0  ;;  %v577_v1 = vpop.f32.mrb[23].mxu1  ;;  %v803_v6 = vsel %vm675_vm9, %v1606_v51, %v739_v57 }
 0x122   :  { %vm673_vm12 = vcmp.ge.f32.partialorder %v574_v56, 0.0  ;;  %vm676_vm13 = vcmp.ge.f32.partialorder %v1607_v61, 0.0  ;;  %v740_v2 = vmul.f32 0.2, %v1607_v61  ;;  %vm642_vm14 = vcmp.ge.f32.partialorder %v449_v0, 0.0 }
 0x123   :  { %v772_v3 = vsel %vm644_vm11, %v1575_v60, %v708_v63  ;;  %v706_v4 = vmul.f32 0.2, %v449_v0  ;;  %vm674_vm15 = vcmp.ge.f32.partialorder %v577_v1, 0.0  ;;  %v738_v5 = vmul.f32 0.2, %v577_v1 }
 0x124   :  { %v769_v7 = vsel %vm641_vm10, %v446_v55, %v705_v58  ;;  %v1363_v8 = vpack.c.bf16 %v772_v3, %v771_v62  ;;  %v804_v9 = vsel %vm676_vm13, %v1607_v61, %v740_v2  ;;  %v801_v10 = vsel %vm673_vm12, %v574_v56, %v737_v59 }
 0x125   :  { %v1443_v11 = vpack.c.bf16 %v804_v9, %v803_v6  ;;  %v770_v12 = vsel %vm642_vm14, %v449_v0, %v706_v4  ;;  %v802_v13 = vsel %vm674_vm15, %v577_v1, %v738_v5  ;;  %v1578_v14 = vpop.f32.mrb[24].mxu0  ;;  %v1610_v15 = vpop.f32.mrb[24].mxu1 }
 0x126   :  { %1475 = vst [vmem:[%s1912_s2 + $0x58] sm:$0xff] %v1363_v8   ;;  %v1358_v16 = vpack.c.bf16 %v770_v12, %v769_v7  ;;  %v1438_v17 = vpack.c.bf16 %v802_v13, %v801_v10  ;;  %vm647_vm0 = vcmp.ge.f32.partialorder %v1578_v14, 0.0  ;;  %v711_v18 = vmul.f32 0.2, %v1578_v14  ;;  %v462_v19 = vpop.f32.mrb[25].mxu0  ;;  %v590_v20 = vpop.f32.mrb[25].mxu1 }
 0x127   :  { %1491 = vst [vmem:[%s1912_s2 + $0xd8] sm:$0xff] %v1443_v11   ;;  %vm679_vm1 = vcmp.ge.f32.partialorder %v1610_v15, 0.0  ;;  %v743_v21 = vmul.f32 0.2, %v1610_v15  ;;  %v709_v22 = vmul.f32 0.2, %v462_v19 }
 0x128   :  { %1474 = vst [vmem:[%s1912_s2 + $0x50] sm:$0xff] %v1358_v16   ;;  %1490 = vst [vmem:[%s1912_s2 + $0xd0] sm:$0xff] %v1438_v17   ;;  %v741_v23 = vmul.f32 0.2, %v590_v20  ;;  %v1579_v24 = vpop.f32.mrb[26].mxu0  ;;  %v1611_v25 = vpop.f32.mrb[26].mxu1  ;;  %v775_v26 = vsel %vm647_vm0, %v1578_v14, %v711_v18 }
 0x129   :  { %vm645_vm2 = vcmp.ge.f32.partialorder %v462_v19, 0.0  ;;  %vm648_vm3 = vcmp.ge.f32.partialorder %v1579_v24, 0.0  ;;  %v712_v27 = vmul.f32 0.2, %v1579_v24  ;;  %v465_v28 = vpop.f32.mrb[27].mxu0  ;;  %v593_v29 = vpop.f32.mrb[27].mxu1  ;;  %v807_v34 = vsel %vm679_vm1, %v1610_v15, %v743_v21 }
 0x12a   :  { %vm677_vm4 = vcmp.ge.f32.partialorder %v590_v20, 0.0  ;;  %vm680_vm5 = vcmp.ge.f32.partialorder %v1611_v25, 0.0  ;;  %v744_v30 = vmul.f32 0.2, %v1611_v25  ;;  %vm646_vm6 = vcmp.ge.f32.partialorder %v465_v28, 0.0 }
 0x12b   :  { %v776_v31 = vsel %vm648_vm3, %v1579_v24, %v712_v27  ;;  %v710_v32 = vmul.f32 0.2, %v465_v28  ;;  %vm678_vm7 = vcmp.ge.f32.partialorder %v593_v29, 0.0  ;;  %v742_v33 = vmul.f32 0.2, %v593_v29 }
 0x12c   :  { %v773_v35 = vsel %vm645_vm2, %v462_v19, %v709_v22  ;;  %v1373_v36 = vpack.c.bf16 %v776_v31, %v775_v26  ;;  %v808_v37 = vsel %vm680_vm5, %v1611_v25, %v744_v30  ;;  %v805_v38 = vsel %vm677_vm4, %v590_v20, %v741_v23 }
 0x12d   :  { %v1453_v39 = vpack.c.bf16 %v808_v37, %v807_v34  ;;  %v774_v40 = vsel %vm646_vm6, %v465_v28, %v710_v32  ;;  %v806_v41 = vsel %vm678_vm7, %v593_v29, %v742_v33  ;;  %v1582_v42 = vpop.f32.mrb[28].mxu0  ;;  %v1614_v43 = vpop.f32.mrb[28].mxu1 }
 0x12e   :  { %1477 = vst [vmem:[%s1912_s2 + $0x68] sm:$0xff] %v1373_v36   ;;  %v1368_v44 = vpack.c.bf16 %v774_v40, %v773_v35  ;;  %v1448_v45 = vpack.c.bf16 %v806_v41, %v805_v38  ;;  %vm651_vm8 = vcmp.ge.f32.partialorder %v1582_v42, 0.0  ;;  %v715_v46 = vmul.f32 0.2, %v1582_v42  ;;  %v478_v47 = vpop.f32.mrb[29].mxu0  ;;  %v606_v48 = vpop.f32.mrb[29].mxu1 }
 0x12f   :  { %1493 = vst [vmem:[%s1912_s2 + $0xe8] sm:$0xff] %v1453_v39   ;;  %vm683_vm9 = vcmp.ge.f32.partialorder %v1614_v43, 0.0  ;;  %v747_v49 = vmul.f32 0.2, %v1614_v43  ;;  %v713_v50 = vmul.f32 0.2, %v478_v47 }
 0x130   :  { %1476 = vst [vmem:[%s1912_s2 + $0x60] sm:$0xff] %v1368_v44   ;;  %1492 = vst [vmem:[%s1912_s2 + $0xe0] sm:$0xff] %v1448_v45   ;;  %v745_v51 = vmul.f32 0.2, %v606_v48  ;;  %v1583_v52 = vpop.f32.mrb[30].mxu0  ;;  %v1615_v53 = vpop.f32.mrb[30].mxu1  ;;  %v779_v54 = vsel %vm651_vm8, %v1582_v42, %v715_v46 }
 0x131   :  { %vm649_vm10 = vcmp.ge.f32.partialorder %v478_v47, 0.0  ;;  %vm652_vm11 = vcmp.ge.f32.partialorder %v1583_v52, 0.0  ;;  %v716_v55 = vmul.f32 0.2, %v1583_v52  ;;  %v481_v56 = vpop.f32.mrb[31].mxu0  ;;  %v609_v57 = vpop.f32.mrb[31].mxu1  ;;  %v811_v62 = vsel %vm683_vm9, %v1614_v43, %v747_v49 }
 0x132   :  { %vm681_vm12 = vcmp.ge.f32.partialorder %v606_v48, 0.0  ;;  %vm684_vm13 = vcmp.ge.f32.partialorder %v1615_v53, 0.0  ;;  %v748_v58 = vmul.f32 0.2, %v1615_v53  ;;  %vm650_vm14 = vcmp.ge.f32.partialorder %v481_v56, 0.0 }
 0x133   :  { %v780_v59 = vsel %vm652_vm11, %v1583_v52, %v716_v55  ;;  %v714_v60 = vmul.f32 0.2, %v481_v56  ;;  %vm682_vm15 = vcmp.ge.f32.partialorder %v609_v57, 0.0  ;;  %v746_v61 = vmul.f32 0.2, %v609_v57 }
 0x134   :  { %v777_v63 = vsel %vm649_vm10, %v478_v47, %v713_v50  ;;  %v1383_v0 = vpack.c.bf16 %v780_v59, %v779_v54  ;;  %v812_v1 = vsel %vm684_vm13, %v1615_v53, %v748_v58  ;;  %v809_v2 = vsel %vm681_vm12, %v606_v48, %v745_v51 }
 0x135   :  { %v1463_v3 = vpack.c.bf16 %v812_v1, %v811_v62  ;;  %v778_v4 = vsel %vm650_vm14, %v481_v56, %v714_v60  ;;  %v810_v5 = vsel %vm682_vm15, %v609_v57, %v746_v61 }
 0x136   :  { %1479 = vst [vmem:[%s1912_s2 + $0x78] sm:$0xff] %v1383_v0   ;;  %v1378_v6 = vpack.c.bf16 %v778_v4, %v777_v63  ;;  %v1458_v7 = vpack.c.bf16 %v810_v5, %v809_v2 }
 0x137   :  { %1495 = vst [vmem:[%s1912_s2 + $0xf8] sm:$0xff] %v1463_v3  }
 0x138   :  { %1478 = vst [vmem:[%s1912_s2 + $0x70] sm:$0xff] %v1378_v6   ;;  %1494 = vst [vmem:[%s1912_s2 + $0xf0] sm:$0xff] %v1458_v7  }

// kernel: discriminator_forward.6
= control target key start
LH: loop header
LB: loop body
LE: loop exit
PB: predicated region body
PF: predicated region fallthrough
CT: control target
= control target key end

     0   :  { %vm1356_vm0 = vcmask 1040384   ;;  %s2453_s1 = inlined_call_operand.vmem [shape: bf16[1024,128], index: 1, kind: input, shape index: {}]   ;;  %s2454_s0 = inlined_call_operand.vmem [shape: bf16[128,1024], index: 0, kind: input, shape index: {}]   ;;  %s2455_s2 = inlined_call_operand.vmem [shape: bf16[128,128], index: 2, kind: output, shape index: {0}]   ;;  %s2456_s3 = inlined_call_operand.vmem [shape: f32[1,2,128], index: 3, kind: output, shape index: {1}]  }
   0x1   :  { %v1910_v0 = vld [vmem:[%s2453_s1 + $0x40] sm:$0xff]   ;;  %v1914_v4 = vld [vmem:[%s2453_s1 + $0x48] sm:$0xff]   ;;  %v1918_v8 = vld [vmem:[%s2453_s1 + $0x50] sm:$0xff]  }
   0x2   :  { %v1911_v1 = vld [vmem:[%s2453_s1 + $0xc0] sm:$0xff]   ;;  %1654 = vmatprep.subr.bf16.mxu0 %v1910_v0  ;;  %v1915_v5 = vld [vmem:[%s2453_s1 + $0xc8] sm:$0xff]   ;;  %v1919_v9 = vld [vmem:[%s2453_s1 + $0xd0] sm:$0xff]  }
   0x3   :  { %v1912_v2 = vld [vmem:[%s2453_s1] sm:$0xff]   ;;  %1718 = vmatprep.subr.bf16.mxu1 %v1911_v1  ;;  %v1916_v6 = vld [vmem:[%s2453_s1 + $0x8] sm:$0xff]   ;;  %v1920_v10 = vld [vmem:[%s2453_s1 + $0x10] sm:$0xff]  }
   0x4   :  { %v1913_v3 = vld [vmem:[%s2453_s1 + $0x80] sm:$0xff]   ;;  %1655 = vmatpush3.bf16.msra.mxu0 %v1912_v2  ;;  %v1917_v7 = vld [vmem:[%s2453_s1 + $0x88] sm:$0xff]   ;;  %v1921_v11 = vld [vmem:[%s2453_s1 + $0x90] sm:$0xff]  }
   0x5   :  { %1719 = vmatpush3.bf16.msra.mxu1 %v1913_v3  ;;  %1656 = vmatprep.subr.bf16.mxu0 %v1914_v4  ;;  %v1922_v12 = vld [vmem:[%s2453_s1 + $0x58] sm:$0xff]   ;;  %v1926_v16 = vld [vmem:[%s2453_s1 + $0x60] sm:$0xff]   ;;  %v1930_v20 = vld [vmem:[%s2453_s1 + $0x68] sm:$0xff]  }
   0x6   :  { %1720 = vmatprep.subr.bf16.mxu1 %v1915_v5  ;;  %v1923_v13 = vld [vmem:[%s2453_s1 + $0xd8] sm:$0xff]   ;;  %v1927_v17 = vld [vmem:[%s2453_s1 + $0xe0] sm:$0xff]   ;;  %v1931_v21 = vld [vmem:[%s2453_s1 + $0xe8] sm:$0xff]  }
   0x7   :  { %v1924_v14 = vld [vmem:[%s2453_s1 + $0x18] sm:$0xff]   ;;  %v1928_v18 = vld [vmem:[%s2453_s1 + $0x20] sm:$0xff]   ;;  %v1932_v22 = vld [vmem:[%s2453_s1 + $0x28] sm:$0xff]  }
   0x8   :  { %1657 = vmatpush3.bf16.msra.mxu0 %v1916_v6  ;;  %v1925_v15 = vld [vmem:[%s2453_s1 + $0x98] sm:$0xff]   ;;  %v1929_v19 = vld [vmem:[%s2453_s1 + $0xa0] sm:$0xff]   ;;  %v1933_v23 = vld [vmem:[%s2453_s1 + $0xa8] sm:$0xff]  }
   0x9   :  { %1721 = vmatpush3.bf16.msra.mxu1 %v1917_v7  ;;  %1658 = vmatprep.subr.bf16.mxu0 %v1918_v8  ;;  %v1934_v24 = vld [vmem:[%s2453_s1 + $0x70] sm:$0xff]   ;;  %v1938_v28 = vld [vmem:[%s2453_s1 + $0x78] sm:$0xff]   ;;  %v14_v32 = vld [vmem:[%s2454_s0] sm:$0xff] }
   0xa   :  { %1722 = vmatprep.subr.bf16.mxu1 %v1919_v9  ;;  %v1935_v25 = vld [vmem:[%s2453_s1 + $0xf0] sm:$0xff]   ;;  %v1939_v29 = vld [vmem:[%s2453_s1 + $0xf8] sm:$0xff]   ;;  %v18_v33 = vld [vmem:[%s2454_s0 + $0x20] sm:$0xff] }
   0xb   :  { %v1936_v26 = vld [vmem:[%s2453_s1 + $0x30] sm:$0xff]   ;;  %v1940_v30 = vld [vmem:[%s2453_s1 + $0x38] sm:$0xff]   ;;  %v15_v34 = vld [vmem:[%s2454_s0 + $0x8] sm:$0xff]  ;;  %v1447_v35 = vcombine.low %v14_v32, %v18_v33  ;;  %v1448_v36 = vcombine.high %v14_v32, %v18_v33 }
   0xc   :  { %1659 = vmatpush3.bf16.msra.mxu0 %v1920_v10  ;;  %v1937_v27 = vld [vmem:[%s2453_s1 + $0xb0] sm:$0xff]   ;;  %v1941_v31 = vld [vmem:[%s2453_s1 + $0xb8] sm:$0xff]   ;;  %v19_v37 = vld [vmem:[%s2454_s0 + $0x28] sm:$0xff] }
   0xd   :  { %1723 = vmatpush3.bf16.msra.mxu1 %v1921_v11  ;;  %1660 = vmatprep.subr.bf16.mxu0 %v1922_v12  ;;  %v1449_v38 = vcombine.low %v15_v34, %v19_v37  ;;  %v1450_v39 = vcombine.high %v15_v34, %v19_v37  ;;  %v1942_v40 = vld [vmem:[%s2453_s1 + $0x140] sm:$0xff]   ;;  %v23_v47 = vld [vmem:[%s2454_s0 + $0x48] sm:$0xff]  ;;  %v1950_v62 = vld [vmem:[%s2453_s1 + $0x150] sm:$0xff]  }
   0xe   :  { %1724 = vmatprep.subr.bf16.mxu1 %v1923_v13  ;;  %942 = vmatprep.mubr.bf16.mxu0 %v1448_v36  ;;  %v1943_v41 = vld [vmem:[%s2453_s1 + $0x100] sm:$0xff]   ;;  %v27_v48 = vld [vmem:[%s2454_s0 + $0x68] sm:$0xff]  ;;  %v1951_v63 = vld [vmem:[%s2453_s1 + $0x110] sm:$0xff]  }
   0xf   :  { %1039 = vmatprep.mubr.bf16.mxu1 %v1450_v39  ;;  %v1944_v42 = vld [vmem:[%s2453_s1 + $0x1c0] sm:$0xff]   ;;  %v1458_v49 = vcombine.high %v23_v47, %v27_v48  ;;  %v1946_v50 = vld [vmem:[%s2453_s1 + $0x148] sm:$0xff]   ;;  %v1457_v53 = vcombine.low %v23_v47, %v27_v48  ;;  %v1952_v0 = vld [vmem:[%s2453_s1 + $0x1d0] sm:$0xff]  }
  0x10   :  { %1661 = vmatpush3.bf16.msra.mxu0 %v1924_v14  ;;  %v1945_v43 = vld [vmem:[%s2453_s1 + $0x180] sm:$0xff]   ;;  %v1947_v52 = vld [vmem:[%s2453_s1 + $0x108] sm:$0xff]   ;;  %v1953_v1 = vld [vmem:[%s2453_s1 + $0x190] sm:$0xff]  }
  0x11   :  { %1725 = vmatpush3.bf16.msra.mxu1 %v1925_v15  ;;  %1662 = vmatprep.subr.bf16.mxu0 %v1926_v16  ;;  %v22_v44 = vld [vmem:[%s2454_s0 + $0x40] sm:$0xff]  ;;  %v1948_v54 = vld [vmem:[%s2453_s1 + $0x1c8] sm:$0xff]   ;;  %v1954_v10 = vld [vmem:[%s2453_s1 + $0x158] sm:$0xff]  }
  0x12   :  { %1726 = vmatprep.subr.bf16.mxu1 %v1927_v17  ;;  %v26_v45 = vld [vmem:[%s2454_s0 + $0x60] sm:$0xff]  ;;  %v1949_v55 = vld [vmem:[%s2453_s1 + $0x188] sm:$0xff]   ;;  %v1955_v11 = vld [vmem:[%s2453_s1 + $0x118] sm:$0xff]  }
  0x13   :  { %v1456_v46 = vcombine.high %v22_v44, %v26_v45  ;;  %v1455_v51 = vcombine.low %v22_v44, %v26_v45  ;;  %v30_v56 = vld [vmem:[%s2454_s0 + $0x80] sm:$0xff]  ;;  %v31_v58 = vld [vmem:[%s2454_s0 + $0x88] sm:$0xff]  ;;  %v1956_v12 = vld [vmem:[%s2453_s1 + $0x1d8] sm:$0xff]  }
  0x14   :  { %1663 = vmatpush3.bf16.msra.mxu0 %v1928_v18  ;;  %v34_v57 = vld [vmem:[%s2454_s0 + $0xa0] sm:$0xff]  ;;  %v35_v59 = vld [vmem:[%s2454_s0 + $0xa8] sm:$0xff]  ;;  %v1957_v13 = vld [vmem:[%s2453_s1 + $0x198] sm:$0xff]  }
  0x15   :  { %1727 = vmatpush3.bf16.msra.mxu1 %v1929_v19  ;;  %1664 = vmatprep.subr.bf16.mxu0 %v1930_v20  ;;  %v1464_v60 = vcombine.high %v30_v56, %v34_v57  ;;  %v1466_v61 = vcombine.high %v31_v58, %v35_v59  ;;  %v1463_v2 = vcombine.low %v30_v56, %v34_v57  ;;  %v38_v3 = vld [vmem:[%s2454_s0 + $0xc0] sm:$0xff]  ;;  %v39_v5 = vld [vmem:[%s2454_s0 + $0xc8] sm:$0xff]  ;;  %v1967_v39 = vld [vmem:[%s2453_s1 + $0x130] sm:$0xff]  }
  0x16   :  { %1728 = vmatprep.subr.bf16.mxu1 %v1931_v21  ;;  %v42_v4 = vld [vmem:[%s2454_s0 + $0xe0] sm:$0xff]  ;;  %v1465_v6 = vcombine.low %v31_v58, %v35_v59  ;;  %v43_v8 = vld [vmem:[%s2454_s0 + $0xe8] sm:$0xff]  ;;  %v1971_v48 = vld [vmem:[%s2453_s1 + $0x138] sm:$0xff]  }
  0x17   :  { %v1472_v7 = vcombine.high %v38_v3, %v42_v4  ;;  %v1474_v9 = vcombine.high %v39_v5, %v43_v8  ;;  %v46_v14 = vld [vmem:[%s2454_s0 + $0x100] sm:$0xff]  ;;  %v47_v16 = vld [vmem:[%s2454_s0 + $0x108] sm:$0xff]  ;;  %v1471_v19 = vcombine.low %v38_v3, %v42_v4  ;;  %v1473_v21 = vcombine.low %v39_v5, %v43_v8  ;;  %v25_v8 = vld [vmem:[%s2454_s0 + $0x58] sm:$0xff] }
  0x18   :  { %1665 = vmatpush3.bf16.msra.mxu0 %v1932_v22  ;;  %v50_v15 = vld [vmem:[%s2454_s0 + $0x120] sm:$0xff]  ;;  %v51_v17 = vld [vmem:[%s2454_s0 + $0x128] sm:$0xff] }
  0x19   :  { %1729 = vmatpush3.bf16.msra.mxu1 %v1933_v23  ;;  %1666 = vmatprep.subr.bf16.mxu0 %v1934_v24  ;;  %v1958_v18 = vld [vmem:[%s2453_s1 + $0x160] sm:$0xff]   ;;  %v1480_v22 = vcombine.high %v46_v14, %v50_v15  ;;  %v1482_v24 = vcombine.high %v47_v16, %v51_v17  ;;  %v1964_v32 = vld [vmem:[%s2453_s1 + $0x1e8] sm:$0xff]   ;;  %v1479_v34 = vcombine.low %v46_v14, %v50_v15  ;;  %v32_v14 = vld [vmem:[%s2454_s0 + $0x90] sm:$0xff] }
  0x1a   :  { %1730 = vmatprep.subr.bf16.mxu1 %v1935_v25  ;;  %v1959_v20 = vld [vmem:[%s2453_s1 + $0x120] sm:$0xff]   ;;  %v1965_v33 = vld [vmem:[%s2453_s1 + $0x1a8] sm:$0xff]   ;;  %v36_v15 = vld [vmem:[%s2454_s0 + $0xb0] sm:$0xff] }
  0x1b   :  { %v1960_v23 = vld [vmem:[%s2453_s1 + $0x1e0] sm:$0xff]   ;;  %v63_v44 = vld [vmem:[%s2454_s0 + $0x188] sm:$0xff] }
  0x1c   :  { %1667 = vmatpush3.bf16.msra.mxu0 %v1936_v26  ;;  %v1961_v25 = vld [vmem:[%s2453_s1 + $0x1a0] sm:$0xff]   ;;  %v67_v45 = vld [vmem:[%s2454_s0 + $0x1a8] sm:$0xff] }
  0x1d   :  { %1731 = vmatpush3.bf16.msra.mxu1 %v1937_v27  ;;  %1668 = vmatprep.subr.bf16.mxu0 %v1938_v28  ;;  %v54_v26 = vld [vmem:[%s2454_s0 + $0x140] sm:$0xff]  ;;  %v1962_v28 = vld [vmem:[%s2453_s1 + $0x168] sm:$0xff]   ;;  %v1497_v59 = vcombine.low %v63_v44, %v67_v45 }
  0x1e   :  { %1732 = vmatprep.subr.bf16.mxu1 %v1939_v29  ;;  %v58_v27 = vld [vmem:[%s2454_s0 + $0x160] sm:$0xff]  ;;  %v55_v29 = vld [vmem:[%s2454_s0 + $0x148] sm:$0xff] }
  0x1f   :  { %v1488_v36 = vcombine.high %v54_v26, %v58_v27  ;;  %v1487_v47 = vcombine.low %v54_v26, %v58_v27  ;;  %v71_v56 = vld [vmem:[%s2454_s0 + $0x1c8] sm:$0xff]  ;;  %v1467_v26 = vcombine.low %v32_v14, %v36_v15 }
  0x20   :  { %1669 = vmatpush3.bf16.msra.mxu0 %v1940_v30  ;;  %v59_v30 = vld [vmem:[%s2454_s0 + $0x168] sm:$0xff] }
  0x21   :  { %1733 = vmatpush3.bf16.msra.mxu1 %v1941_v31  ;;  %1782 = vmatprep.subr.bf16.mxu0 %v1942_v40  ;;  %v1963_v31 = vld [vmem:[%s2453_s1 + $0x128] sm:$0xff]   ;;  %v1490_v37 = vcombine.high %v55_v29, %v59_v30  ;;  %v1968_v40 = vld [vmem:[%s2453_s1 + $0x1f0] sm:$0xff]  }
  0x22   :  { %1846 = vmatprep.subr.bf16.mxu1 %v1944_v42  ;;  %v66_v42 = vld [vmem:[%s2454_s0 + $0x1a0] sm:$0xff]  ;;  %v75_v57 = vld [vmem:[%s2454_s0 + $0x1e8] sm:$0xff] }
  0x23   :  { %943 = vmatmul.mubr.bf16.vlgmr.msra.gmra.mrb[0].mxu0 %v1447_v35  ;;  %v1481_v35 = vcombine.low %v47_v16, %v51_v17  ;;  %v1505_v3 = vcombine.low %v71_v56, %v75_v57  ;;  %v33_v16 = vld [vmem:[%s2454_s0 + $0x98] sm:$0xff] }
  0x24   :  { %1040 = vmatmul.mubr.bf16.vlgmr.msra.gmra.mrb[0].mxu1 %v1449_v38  ;;  %1783 = vmatpush3.bf16.msra.mxu0 %v1943_v41  ;;  %v1966_v38 = vld [vmem:[%s2453_s1 + $0x170] sm:$0xff]   ;;  %v62_v41 = vld [vmem:[%s2454_s0 + $0x180] sm:$0xff]  ;;  %v37_v17 = vld [vmem:[%s2454_s0 + $0xb8] sm:$0xff] }
  0x25   :  { %1847 = vmatpush3.bf16.msra.mxu1 %v1945_v43  ;;  %950 = vmatprep.mubr.bf16.mxu0 %v1456_v46  ;;  %v1969_v43 = vld [vmem:[%s2453_s1 + $0x1b0] sm:$0xff]   ;;  %v1970_v46 = vld [vmem:[%s2453_s1 + $0x178] sm:$0xff]   ;;  %v1495_v58 = vcombine.low %v62_v41, %v66_v42  ;;  %v1469_v27 = vcombine.low %v33_v16, %v37_v17 }
  0x26   :  { %1047 = vmatprep.mubr.bf16.mxu1 %v1458_v49  ;;  %1784 = vmatprep.subr.bf16.mxu0 %v1946_v50  ;;  %v1489_v49 = vcombine.low %v55_v29, %v59_v30  ;;  %v1496_v50 = vcombine.high %v62_v41, %v66_v42  ;;  %v48_v30 = vld [vmem:[%s2454_s0 + $0x110] sm:$0xff]  ;;  %v61_v41 = vld [vmem:[%s2454_s0 + $0x178] sm:$0xff] }
  0x27   :  { %1848 = vmatprep.subr.bf16.mxu1 %v1948_v54  ;;  %v70_v54 = vld [vmem:[%s2454_s0 + $0x1c0] sm:$0xff] }
  0x28   :  { %1785 = vmatpush3.bf16.msra.mxu0 %v1947_v52  ;;  %v1498_v52 = vcombine.high %v63_v44, %v67_v45 }
  0x29   :  { %1849 = vmatpush3.bf16.msra.mxu1 %v1949_v55  ;;  %1786 = vmatprep.subr.bf16.mxu0 %v1950_v62  ;;  %v74_v55 = vld [vmem:[%s2454_s0 + $0x1e0] sm:$0xff]  ;;  %v16_v62 = vld [vmem:[%s2454_s0 + $0x10] sm:$0xff] }
  0x2a   :  { %1850 = vmatprep.subr.bf16.mxu1 %v1952_v0  ;;  %v17_v0 = vld [vmem:[%s2454_s0 + $0x18] sm:$0xff] }
  0x2b   :  { %951 = vmatmul.mubr.bf16.gmra.mrb[4].mxu0 %v1455_v51  ;;  %v1972_v51 = vld [vmem:[%s2453_s1 + $0x1f8] sm:$0xff]  }
  0x2c   :  { %1048 = vmatmul.mubr.bf16.gmra.mrb[4].mxu1 %v1457_v53  ;;  %958 = vmatprep.mubr.bf16.mxu0 %v1464_v60  ;;  %v1973_v53 = vld [vmem:[%s2453_s1 + $0x1b8] sm:$0xff]   ;;  %v1504_v60 = vcombine.high %v70_v54, %v74_v55 }
  0x2d   :  { %1055 = vmatprep.mubr.bf16.mxu1 %v1466_v61  ;;  %1787 = vmatpush3.bf16.msra.mxu0 %v1951_v63  ;;  %v1506_v61 = vcombine.high %v71_v56, %v75_v57  ;;  %v20_v63 = vld [vmem:[%s2454_s0 + $0x30] sm:$0xff]  ;;  %v73_v56 = vld [vmem:[%s2454_s0 + $0x1d8] sm:$0xff] }
  0x2e   :  { %1851 = vmatpush3.bf16.msra.mxu1 %v1953_v1  ;;  %1788 = vmatprep.subr.bf16.mxu0 %v1954_v10  ;;  %v21_v1 = vld [vmem:[%s2454_s0 + $0x38] sm:$0xff]  ;;  %v1452_v4 = vcombine.high %v16_v62, %v20_v63  ;;  %v1451_v10 = vcombine.low %v16_v62, %v20_v63 }
  0x2f   :  { %1852 = vmatprep.subr.bf16.mxu1 %v1956_v12  ;;  %v1454_v5 = vcombine.high %v17_v0, %v21_v1  ;;  %v77_v57 = vld [vmem:[%s2454_s0 + $0x1f8] sm:$0xff] }
  0x30   :  { %v1509_v63 = vcombine.low %v73_v56, %v77_v57 }
  0x31   :  { %1789 = vmatpush3.bf16.msra.mxu0 %v1955_v11  ;;  %v1453_v11 = vcombine.low %v17_v0, %v21_v1 }
  0x32   :  { %1853 = vmatpush3.bf16.msra.mxu1 %v1957_v13  ;;  %1790 = vmatprep.subr.bf16.mxu0 %v1958_v18 }
  0x33   :  { %959 = vmatmul.mubr.bf16.gmra.mrb[8].mxu0 %v1463_v2  ;;  %1854 = vmatprep.subr.bf16.mxu1 %v1960_v23  ;;  %v1503_v2 = vcombine.low %v70_v54, %v74_v55  ;;  %v44_v23 = vld [vmem:[%s2454_s0 + $0xf0] sm:$0xff] }
  0x34   :  { %1056 = vmatmul.mubr.bf16.gmra.mrb[8].mxu1 %v1465_v6  ;;  %966 = vmatprep.mubr.bf16.mxu0 %v1472_v7  ;;  %v24_v6 = vld [vmem:[%s2454_s0 + $0x50] sm:$0xff] }
  0x35   :  { %1063 = vmatprep.mubr.bf16.mxu1 %v1474_v9  ;;  %1791 = vmatpush3.bf16.msra.mxu0 %v1959_v20  ;;  %v28_v7 = vld [vmem:[%s2454_s0 + $0x70] sm:$0xff]  ;;  %v29_v9 = vld [vmem:[%s2454_s0 + $0x78] sm:$0xff]  ;;  %v1468_v20 = vcombine.high %v32_v14, %v36_v15 }
  0x36   :  { %1855 = vmatpush3.bf16.msra.mxu1 %v1961_v25  ;;  %1792 = vmatprep.subr.bf16.mxu0 %v1962_v28  ;;  %v1460_v12 = vcombine.high %v24_v6, %v28_v7  ;;  %v1462_v13 = vcombine.high %v25_v8, %v29_v9  ;;  %v1459_v18 = vcombine.low %v24_v6, %v28_v7  ;;  %v45_v25 = vld [vmem:[%s2454_s0 + $0xf8] sm:$0xff]  ;;  %v72_v54 = vld [vmem:[%s2454_s0 + $0x1d0] sm:$0xff] }
  0x37   :  { %1856 = vmatprep.subr.bf16.mxu1 %v1964_v32  ;;  %v49_v32 = vld [vmem:[%s2454_s0 + $0x118] sm:$0xff]  ;;  %v76_v55 = vld [vmem:[%s2454_s0 + $0x1f0] sm:$0xff] }
  0x38   :  { %v1507_v62 = vcombine.low %v72_v54, %v76_v55 }
  0x39   :  { %1793 = vmatpush3.bf16.msra.mxu0 %v1963_v31  ;;  %v52_v31 = vld [vmem:[%s2454_s0 + $0x130] sm:$0xff] }
  0x3a   :  { %1857 = vmatpush3.bf16.msra.mxu1 %v1965_v33  ;;  %1794 = vmatprep.subr.bf16.mxu0 %v1966_v38  ;;  %v53_v33 = vld [vmem:[%s2454_s0 + $0x138] sm:$0xff]  ;;  %v56_v38 = vld [vmem:[%s2454_s0 + $0x150] sm:$0xff]  ;;  %v1483_v42 = vcombine.low %v48_v30, %v52_v31 }
  0x3b   :  { %967 = vmatmul.mubr.bf16.gmra.mrb[12].mxu0 %v1471_v19  ;;  %1858 = vmatprep.subr.bf16.mxu1 %v1968_v40  ;;  %v1461_v19 = vcombine.low %v25_v8, %v29_v9  ;;  %v57_v40 = vld [vmem:[%s2454_s0 + $0x158] sm:$0xff] }
  0x3c   :  { %1064 = vmatmul.mubr.bf16.gmra.mrb[12].mxu1 %v1473_v21  ;;  %974 = vmatprep.mubr.bf16.mxu0 %v1480_v22  ;;  %v1470_v21 = vcombine.high %v33_v16, %v37_v17  ;;  %v40_v22 = vld [vmem:[%s2454_s0 + $0xd0] sm:$0xff]  ;;  %v1494_v45 = vcombine.high %v57_v40, %v61_v41 }
  0x3d   :  { %1071 = vmatprep.mubr.bf16.mxu1 %v1482_v24  ;;  %1795 = vmatpush3.bf16.msra.mxu0 %v1967_v39  ;;  %v41_v24 = vld [vmem:[%s2454_s0 + $0xd8] sm:$0xff]  ;;  %v1476_v28 = vcombine.high %v40_v22, %v44_v23  ;;  %v60_v39 = vld [vmem:[%s2454_s0 + $0x170] sm:$0xff] }
  0x3e   :  { %1859 = vmatpush3.bf16.msra.mxu1 %v1969_v43  ;;  %1796 = vmatprep.subr.bf16.mxu0 %v1970_v46  ;;  %v1478_v29 = vcombine.high %v41_v24, %v45_v25  ;;  %v1485_v43 = vcombine.low %v49_v32, %v53_v33  ;;  %v1492_v44 = vcombine.high %v56_v38, %v60_v39  ;;  %v64_v46 = vld [vmem:[%s2454_s0 + $0x190] sm:$0xff] }
  0x3f   :  { %1860 = vmatprep.subr.bf16.mxu1 %v1972_v51  ;;  %v1493_v51 = vcombine.low %v57_v40, %v61_v41 }
  0x41   :  { %1797 = vmatpush3.bf16.msra.mxu0 %v1971_v48  ;;  %v65_v48 = vld [vmem:[%s2454_s0 + $0x198] sm:$0xff] }
  0x42   :  { %1861 = vmatpush3.bf16.msra.mxu1 %v1973_v53 }
  0x43   :  { %975 = vmatmul.mubr.bf16.gmra.mrb[16].mxu0 %v1479_v34  ;;  %v1475_v34 = vcombine.low %v40_v22, %v44_v23 }
  0x44   :  { %1072 = vmatmul.mubr.bf16.gmra.mrb[16].mxu1 %v1481_v35  ;;  %982 = vmatprep.mubr.bf16.mxu0 %v1488_v36  ;;  %v1477_v35 = vcombine.low %v41_v24, %v45_v25  ;;  %v1484_v36 = vcombine.high %v48_v30, %v52_v31 }
  0x45   :  { %1079 = vmatprep.mubr.bf16.mxu1 %v1490_v37  ;;  %v1486_v37 = vcombine.high %v49_v32, %v53_v33 }
  0x4b   :  { %983 = vmatmul.mubr.bf16.gmra.mrb[20].mxu0 %v1487_v47  ;;  %v68_v47 = vld [vmem:[%s2454_s0 + $0x1b0] sm:$0xff] }
  0x4c   :  { %1080 = vmatmul.mubr.bf16.gmra.mrb[20].mxu1 %v1489_v49  ;;  %990 = vmatprep.mubr.bf16.mxu0 %v1496_v50  ;;  %v69_v49 = vld [vmem:[%s2454_s0 + $0x1b8] sm:$0xff]  ;;  %v1491_v50 = vcombine.low %v56_v38, %v60_v39 }
  0x4d   :  { %1087 = vmatprep.mubr.bf16.mxu1 %v1498_v52  ;;  %v1500_v52 = vcombine.high %v64_v46, %v68_v47  ;;  %v1502_v53 = vcombine.high %v65_v48, %v69_v49 }
  0x53   :  { %991 = vmatmul.mubr.bf16.gmra.mrb[24].mxu0 %v1495_v58  ;;  %v1499_v58 = vcombine.low %v64_v46, %v68_v47 }
  0x54   :  { %1088 = vmatmul.mubr.bf16.gmra.mrb[24].mxu1 %v1497_v59  ;;  %998 = vmatprep.mubr.bf16.mxu0 %v1504_v60  ;;  %v1501_v59 = vcombine.low %v65_v48, %v69_v49  ;;  %v1508_v60 = vcombine.high %v72_v54, %v76_v55 }
  0x55   :  { %1095 = vmatprep.mubr.bf16.mxu1 %v1506_v61  ;;  %v1510_v61 = vcombine.high %v73_v56, %v77_v57 }
  0x5b   :  { %999 = vmatmul.mubr.bf16.gmra.mrb[28].mxu0 %v1503_v2 }
  0x5c   :  { %1096 = vmatmul.mubr.bf16.gmra.mrb[28].mxu1 %v1505_v3  ;;  %1136 = vmatprep.mubr.bf16.mxu0 %v1452_v4 }
  0x5d   :  { %1233 = vmatprep.mubr.bf16.mxu1 %v1454_v5 }
  0x63   :  { %1137 = vmatmul.mubr.bf16.vlgmr.msra.gmra.mrb[32].mxu0 %v1451_v10 }
  0x64   :  { %1234 = vmatmul.mubr.bf16.vlgmr.msra.gmra.mrb[32].mxu1 %v1453_v11  ;;  %1144 = vmatprep.mubr.bf16.mxu0 %v1460_v12 }
  0x65   :  { %1241 = vmatprep.mubr.bf16.mxu1 %v1462_v13 }
  0x6b   :  { %1145 = vmatmul.mubr.bf16.gmra.mrb[36].mxu0 %v1459_v18 }
  0x6c   :  { %1242 = vmatmul.mubr.bf16.gmra.mrb[36].mxu1 %v1461_v19  ;;  %1152 = vmatprep.mubr.bf16.mxu0 %v1468_v20 }
  0x6d   :  { %1249 = vmatprep.mubr.bf16.mxu1 %v1470_v21 }
  0x73   :  { %1153 = vmatmul.mubr.bf16.gmra.mrb[40].mxu0 %v1467_v26 }
  0x74   :  { %1250 = vmatmul.mubr.bf16.gmra.mrb[40].mxu1 %v1469_v27  ;;  %1160 = vmatprep.mubr.bf16.mxu0 %v1476_v28 }
  0x75   :  { %1257 = vmatprep.mubr.bf16.mxu1 %v1478_v29 }
  0x7b   :  { %1161 = vmatmul.mubr.bf16.gmra.mrb[44].mxu0 %v1475_v34 }
  0x7c   :  { %1258 = vmatmul.mubr.bf16.gmra.mrb[44].mxu1 %v1477_v35  ;;  %1168 = vmatprep.mubr.bf16.mxu0 %v1484_v36 }
  0x7d   :  { %1265 = vmatprep.mubr.bf16.mxu1 %v1486_v37 }
  0x83   :  { %1169 = vmatmul.mubr.bf16.gmra.mrb[48].mxu0 %v1483_v42 }
  0x84   :  { %1266 = vmatmul.mubr.bf16.gmra.mrb[48].mxu1 %v1485_v43  ;;  %1176 = vmatprep.mubr.bf16.mxu0 %v1492_v44 }
  0x85   :  { %1273 = vmatprep.mubr.bf16.mxu1 %v1494_v45 }
  0x8b   :  { %1177 = vmatmul.mubr.bf16.gmra.mrb[52].mxu0 %v1491_v50 }
  0x8c   :  { %1274 = vmatmul.mubr.bf16.gmra.mrb[52].mxu1 %v1493_v51  ;;  %1184 = vmatprep.mubr.bf16.mxu0 %v1500_v52 }
  0x8d   :  { %1281 = vmatprep.mubr.bf16.mxu1 %v1502_v53 }
  0x93   :  { %1185 = vmatmul.mubr.bf16.gmra.mrb[56].mxu0 %v1499_v58 }
  0x94   :  { %1282 = vmatmul.mubr.bf16.gmra.mrb[56].mxu1 %v1501_v59  ;;  %1192 = vmatprep.mubr.bf16.mxu0 %v1508_v60 }
  0x95   :  { %1289 = vmatprep.mubr.bf16.mxu1 %v1510_v61 }
  0x9b   :  { %1193 = vmatmul.mubr.bf16.gmra.mrb[60].mxu0 %v1507_v62 }
  0x9c   :  { %1290 = vmatmul.mubr.bf16.gmra.mrb[60].mxu1 %v1509_v63 }
  0xf6   :  { %v1670_v0 = vpop.f32.mrb[0].mxu0 }
  0xf7   :  { %v1734_v1 = vpop.f32.mrb[0].mxu1  ;;  %v1671_v2 = vpop.f32.mrb[1].mxu0 }
  0xf8   :  { %v1672_v3 = vadd.f32 %v1671_v2, %v1670_v0  ;;  %v1735_v4 = vpop.f32.mrb[1].mxu1  ;;  %v1673_v5 = vpop.f32.mrb[2].mxu0 }
  0xf9   :  { %v1736_v6 = vadd.f32 %v1735_v4, %v1734_v1  ;;  %v1737_v7 = vpop.f32.mrb[2].mxu1  ;;  %v1674_v8 = vpop.f32.mrb[3].mxu0 }
  0xfa   :  { %v1675_v9 = vadd.f32 %v1674_v8, %v1673_v5  ;;  %v1738_v10 = vpop.f32.mrb[3].mxu1 }
  0xfb   :  { %v2378_v11 = vadd.f32 %v1736_v6, %v1672_v3  ;;  %v1739_v12 = vadd.f32 %v1738_v10, %v1737_v7 }
  0xfd   :  { %v2380_v13 = vadd.f32 %v1739_v12, %v1675_v9 }
  0xfe   :  { %v1676_v14 = vpop.f32.mrb[4].mxu0 }
  0xff   :  { %v1740_v15 = vpop.f32.mrb[4].mxu1  ;;  %v1677_v16 = vpop.f32.mrb[5].mxu0 }
 0x100   :  { %v1678_v17 = vadd.f32 %v1677_v16, %v1676_v14  ;;  %v1741_v18 = vpop.f32.mrb[5].mxu1  ;;  %v1679_v19 = vpop.f32.mrb[6].mxu0 }
 0x101   :  { %v1742_v20 = vadd.f32 %v1741_v18, %v1740_v15  ;;  %v1743_v21 = vpop.f32.mrb[6].mxu1  ;;  %v1680_v22 = vpop.f32.mrb[7].mxu0 }
 0x102   :  { %v1681_v23 = vadd.f32 %v1680_v22, %v1679_v19  ;;  %v1744_v24 = vpop.f32.mrb[7].mxu1 }
 0x103   :  { %v2382_v25 = vadd.f32 %v1742_v20, %v1678_v17  ;;  %v1745_v26 = vadd.f32 %v1744_v24, %v1743_v21 }
 0x105   :  { %v2384_v27 = vadd.f32 %v1745_v26, %v1681_v23 }
 0x106   :  { %v1682_v28 = vpop.f32.mrb[8].mxu0 }
 0x107   :  { %v1746_v29 = vpop.f32.mrb[8].mxu1  ;;  %v1683_v30 = vpop.f32.mrb[9].mxu0 }
 0x108   :  { %v1684_v31 = vadd.f32 %v1683_v30, %v1682_v28  ;;  %v1747_v32 = vpop.f32.mrb[9].mxu1  ;;  %v1685_v33 = vpop.f32.mrb[10].mxu0 }
 0x109   :  { %v1748_v34 = vadd.f32 %v1747_v32, %v1746_v29  ;;  %v1749_v35 = vpop.f32.mrb[10].mxu1  ;;  %v1686_v36 = vpop.f32.mrb[11].mxu0 }
 0x10a   :  { %v1687_v37 = vadd.f32 %v1686_v36, %v1685_v33  ;;  %v1750_v38 = vpop.f32.mrb[11].mxu1 }
 0x10b   :  { %v2386_v39 = vadd.f32 %v1748_v34, %v1684_v31  ;;  %v1751_v40 = vadd.f32 %v1750_v38, %v1749_v35 }
 0x10d   :  { %v2388_v41 = vadd.f32 %v1751_v40, %v1687_v37 }
 0x10e   :  { %v1688_v42 = vpop.f32.mrb[12].mxu0 }
 0x10f   :  { %v1752_v43 = vpop.f32.mrb[12].mxu1  ;;  %v1689_v44 = vpop.f32.mrb[13].mxu0 }
 0x110   :  { %v1690_v45 = vadd.f32 %v1689_v44, %v1688_v42  ;;  %v1753_v46 = vpop.f32.mrb[13].mxu1  ;;  %v1691_v47 = vpop.f32.mrb[14].mxu0 }
 0x111   :  { %v1754_v48 = vadd.f32 %v1753_v46, %v1752_v43  ;;  %v1755_v49 = vpop.f32.mrb[14].mxu1  ;;  %v1692_v50 = vpop.f32.mrb[15].mxu0 }
 0x112   :  { %v1693_v51 = vadd.f32 %v1692_v50, %v1691_v47  ;;  %v1756_v52 = vpop.f32.mrb[15].mxu1 }
 0x113   :  { %v2390_v53 = vadd.f32 %v1754_v48, %v1690_v45  ;;  %v1757_v54 = vadd.f32 %v1756_v52, %v1755_v49 }
 0x115   :  { %v2392_v55 = vadd.f32 %v1757_v54, %v1693_v51 }
 0x116   :  { %v1694_v56 = vpop.f32.mrb[16].mxu0 }
 0x117   :  { %v1758_v57 = vpop.f32.mrb[16].mxu1  ;;  %v1695_v58 = vpop.f32.mrb[17].mxu0 }
 0x118   :  { %v1696_v59 = vadd.f32 %v1695_v58, %v1694_v56  ;;  %v1759_v60 = vpop.f32.mrb[17].mxu1  ;;  %v1697_v61 = vpop.f32.mrb[18].mxu0 }
 0x119   :  { %v1760_v62 = vadd.f32 %v1759_v60, %v1758_v57  ;;  %v1761_v63 = vpop.f32.mrb[18].mxu1  ;;  %v1698_v0 = vpop.f32.mrb[19].mxu0 }
 0x11a   :  { %v1699_v1 = vadd.f32 %v1698_v0, %v1697_v61  ;;  %v1762_v2 = vpop.f32.mrb[19].mxu1 }
 0x11b   :  { %v2394_v3 = vadd.f32 %v1760_v62, %v1696_v59  ;;  %v1763_v4 = vadd.f32 %v1762_v2, %v1761_v63 }
 0x11d   :  { %v2396_v5 = vadd.f32 %v1763_v4, %v1699_v1 }
 0x11e   :  { %v1700_v6 = vpop.f32.mrb[20].mxu0 }
 0x11f   :  { %v1764_v7 = vpop.f32.mrb[20].mxu1  ;;  %v1701_v8 = vpop.f32.mrb[21].mxu0 }
 0x120   :  { %v1702_v9 = vadd.f32 %v1701_v8, %v1700_v6  ;;  %v1765_v10 = vpop.f32.mrb[21].mxu1  ;;  %v1703_v12 = vpop.f32.mrb[22].mxu0 }
 0x121   :  { %v1766_v14 = vadd.f32 %v1765_v10, %v1764_v7  ;;  %v1767_v15 = vpop.f32.mrb[22].mxu1  ;;  %v1704_v16 = vpop.f32.mrb[23].mxu0 }
 0x122   :  { %v1705_v17 = vadd.f32 %v1704_v16, %v1703_v12  ;;  %v1768_v18 = vpop.f32.mrb[23].mxu1 }
 0x123   :  { %v2398_v19 = vadd.f32 %v1766_v14, %v1702_v9  ;;  %v1769_v20 = vadd.f32 %v1768_v18, %v1767_v15 }
 0x125   :  { %v2400_v21 = vadd.f32 %v1769_v20, %v1705_v17 }
 0x126   :  { %v1706_v22 = vpop.f32.mrb[24].mxu0 }
 0x127   :  { %v1770_v23 = vpop.f32.mrb[24].mxu1  ;;  %v1707_v24 = vpop.f32.mrb[25].mxu0 }
 0x128   :  { %v1708_v26 = vadd.f32 %v1707_v24, %v1706_v22  ;;  %v1771_v28 = vpop.f32.mrb[25].mxu1  ;;  %v1709_v29 = vpop.f32.mrb[26].mxu0 }
 0x129   :  { %v1772_v30 = vadd.f32 %v1771_v28, %v1770_v23  ;;  %v1773_v31 = vpop.f32.mrb[26].mxu1  ;;  %v1710_v32 = vpop.f32.mrb[27].mxu0 }
 0x12a   :  { %v1711_v33 = vadd.f32 %v1710_v32, %v1709_v29  ;;  %v1774_v34 = vpop.f32.mrb[27].mxu1 }
 0x12b   :  { %v2402_v35 = vadd.f32 %v1772_v30, %v1708_v26  ;;  %v1775_v36 = vadd.f32 %v1774_v34, %v1773_v31 }
 0x12d   :  { %v2404_v37 = vadd.f32 %v1775_v36, %v1711_v33 }
 0x12e   :  { %v1712_v38 = vpop.f32.mrb[28].mxu0 }
 0x12f   :  { %v1776_v40 = vpop.f32.mrb[28].mxu1  ;;  %v1713_v42 = vpop.f32.mrb[29].mxu0 }
 0x130   :  { %v1714_v43 = vadd.f32 %v1713_v42, %v1712_v38  ;;  %v1777_v44 = vpop.f32.mrb[29].mxu1  ;;  %v1715_v45 = vpop.f32.mrb[30].mxu0 }
 0x131   :  { %v1778_v46 = vadd.f32 %v1777_v44, %v1776_v40  ;;  %v1779_v47 = vpop.f32.mrb[30].mxu1  ;;  %v1716_v48 = vpop.f32.mrb[31].mxu0 }
 0x132   :  { %v1717_v49 = vadd.f32 %v1716_v48, %v1715_v45  ;;  %v1780_v50 = vpop.f32.mrb[31].mxu1 }
 0x133   :  { %v2406_v51 = vadd.f32 %v1778_v46, %v1714_v43  ;;  %v1781_v52 = vadd.f32 %v1780_v50, %v1779_v47 }
 0x135   :  { %v2408_v54 = vadd.f32 %v1781_v52, %v1717_v49 }
 0x136   :  { %v1798_v56 = vpop.f32.mrb[32].mxu0 }
 0x137   :  { %v1862_v57 = vpop.f32.mrb[32].mxu1  ;;  %v1799_v58 = vpop.f32.mrb[33].mxu0 }
 0x138   :  { %v1800_v59 = vadd.f32 %v1799_v58, %v1798_v56  ;;  %v1863_v60 = vpop.f32.mrb[33].mxu1  ;;  %v1801_v61 = vpop.f32.mrb[34].mxu0 }
 0x139   :  { %v1864_v62 = vadd.f32 %v1863_v60, %v1862_v57  ;;  %v1865_v63 = vpop.f32.mrb[34].mxu1  ;;  %v1802_v0 = vpop.f32.mrb[35].mxu0 }
 0x13a   :  { %v1139_v1 = vadd.f32 %v1800_v59, %v2378_v11  ;;  %v1803_v2 = vadd.f32 %v1802_v0, %v1801_v61  ;;  %v1866_v4 = vpop.f32.mrb[35].mxu1 }
 0x13b   :  { %v1867_v6 = vadd.f32 %v1866_v4, %v1865_v63 }
 0x13c   :  { %v1236_v7 = vadd.f32 %v1864_v62, %v1139_v1  ;;  %v1142_v8 = vadd.f32 %v1803_v2, %v2380_v13 }
 0x13e   :  { %v1239_v9 = vadd.f32 %v1867_v6, %v1142_v8  ;;  %v1804_v10 = vpop.f32.mrb[36].mxu0  ;;  %v1319_v12 = vmul.f32 %v1236_v7, %v1236_v7 }
 0x13f   :  { %v1868_v14 = vpop.f32.mrb[36].mxu1  ;;  %v1805_v15 = vpop.f32.mrb[37].mxu0 }
 0x140   :  { %v1298_v16 = vadd.f32 %v1239_v9, %v1236_v7  ;;  %v1320_v17 = vmul.f32 %v1239_v9, %v1239_v9  ;;  %v1610_v18 = vpack.c.bf16 %v1239_v9, %v1236_v7  ;;  %v1806_v20 = vadd.f32 %v1805_v15, %v1804_v10  ;;  %v1869_v22 = vpop.f32.mrb[37].mxu1  ;;  %v1807_v23 = vpop.f32.mrb[38].mxu0 }
 0x141   :  { %v1870_v24 = vadd.f32 %v1869_v22, %v1868_v14  ;;  %v1871_v26 = vpop.f32.mrb[38].mxu1  ;;  %v1808_v11 = vpop.f32.mrb[39].mxu0 }
 0x142   :  { %v1335_v28 = vadd.f32 %v1320_v17, %v1319_v12  ;;  %1611 = vst [vmem:[%s2455_s2] sm:$0xff] %v1610_v18   ;;  %v1147_v13 = vadd.f32 %v1806_v20, %v2382_v25  ;;  %v1809_v29 = vadd.f32 %v1808_v11, %v1807_v23  ;;  %v1872_v30 = vpop.f32.mrb[39].mxu1 }
 0x143   :  { %v1873_v31 = vadd.f32 %v1872_v30, %v1871_v26 }
 0x144   :  { %v1244_v32 = vadd.f32 %v1870_v24, %v1147_v13  ;;  %v1150_v33 = vadd.f32 %v1809_v29, %v2384_v27 }
 0x146   :  { %v1299_v34 = vadd.f32 %v1298_v16, %v1244_v32  ;;  %v1321_v36 = vmul.f32 %v1244_v32, %v1244_v32  ;;  %v1247_v38 = vadd.f32 %v1873_v31, %v1150_v33  ;;  %v1810_v40 = vpop.f32.mrb[40].mxu0 }
 0x147   :  { %v1874_v42 = vpop.f32.mrb[40].mxu1  ;;  %v1811_v43 = vpop.f32.mrb[41].mxu0 }
 0x148   :  { %v1336_v44 = vadd.f32 %v1335_v28, %v1321_v36  ;;  %v1300_v45 = vadd.f32 %v1299_v34, %v1247_v38  ;;  %v1322_v46 = vmul.f32 %v1247_v38, %v1247_v38  ;;  %v1615_v47 = vpack.c.bf16 %v1247_v38, %v1244_v32  ;;  %v1875_v48 = vpop.f32.mrb[41].mxu1  ;;  %v1813_v49 = vpop.f32.mrb[42].mxu0 }
 0x149   :  { %v1812_v50 = vadd.f32 %v1811_v43, %v1810_v40  ;;  %v1876_v25 = vadd.f32 %v1875_v48, %v1874_v42  ;;  %v1877_v52 = vpop.f32.mrb[42].mxu1  ;;  %v1814_v56 = vpop.f32.mrb[43].mxu0 }
 0x14a   :  { %v1337_v57 = vadd.f32 %v1336_v44, %v1322_v46  ;;  %1647 = vst [vmem:[%s2455_s2 + $0x8] sm:$0xff] %v1615_v47   ;;  %v1815_v27 = vadd.f32 %v1814_v56, %v1813_v49  ;;  %v1878_v58 = vpop.f32.mrb[43].mxu1 }
 0x14b   :  { %v1155_v59 = vadd.f32 %v1812_v50, %v2386_v39  ;;  %v1879_v60 = vadd.f32 %v1878_v58, %v1877_v52 }
 0x14c   :  { %v1158_v61 = vadd.f32 %v1815_v27, %v2388_v41 }
 0x14d   :  { %v1252_v62 = vadd.f32 %v1876_v25, %v1155_v59 }
 0x14e   :  { %v1255_v63 = vadd.f32 %v1879_v60, %v1158_v61  ;;  %v1816_v0 = vpop.f32.mrb[44].mxu0 }
 0x14f   :  { %v1301_v1 = vadd.f32 %v1300_v45, %v1252_v62  ;;  %v1323_v2 = vmul.f32 %v1252_v62, %v1252_v62  ;;  %v1880_v4 = vpop.f32.mrb[44].mxu1  ;;  %v1817_v6 = vpop.f32.mrb[45].mxu0 }
 0x150   :  { %v1324_v7 = vmul.f32 %v1255_v63, %v1255_v63  ;;  %v1620_v8 = vpack.c.bf16 %v1255_v63, %v1252_v62  ;;  %v1818_v9 = vadd.f32 %v1817_v6, %v1816_v0  ;;  %v1881_v10 = vpop.f32.mrb[45].mxu1  ;;  %v1819_v12 = vpop.f32.mrb[46].mxu0 }
 0x151   :  { %v1338_v14 = vadd.f32 %v1337_v57, %v1323_v2  ;;  %v1302_v15 = vadd.f32 %v1301_v1, %v1255_v63  ;;  %v1882_v16 = vadd.f32 %v1881_v10, %v1880_v4  ;;  %v1883_v17 = vpop.f32.mrb[46].mxu1  ;;  %v1820_v39 = vpop.f32.mrb[47].mxu0 }
 0x152   :  { %1648 = vst [vmem:[%s2455_s2 + $0x10] sm:$0xff] %v1620_v8   ;;  %v1163_v41 = vadd.f32 %v1818_v9, %v2390_v53  ;;  %v1821_v18 = vadd.f32 %v1820_v39, %v1819_v12  ;;  %v1884_v20 = vpop.f32.mrb[47].mxu1 }
 0x153   :  { %v1339_v22 = vadd.f32 %v1338_v14, %v1324_v7  ;;  %v1885_v23 = vadd.f32 %v1884_v20, %v1883_v17 }
 0x154   :  { %v1260_v24 = vadd.f32 %v1882_v16, %v1163_v41  ;;  %v1166_v26 = vadd.f32 %v1821_v18, %v2392_v55 }
 0x156   :  { %v1303_v11 = vadd.f32 %v1302_v15, %v1260_v24  ;;  %v1325_v28 = vmul.f32 %v1260_v24, %v1260_v24  ;;  %v1263_v13 = vadd.f32 %v1885_v23, %v1166_v26  ;;  %v1822_v29 = vpop.f32.mrb[48].mxu0 }
 0x157   :  { %v1886_v30 = vpop.f32.mrb[48].mxu1  ;;  %v1823_v31 = vpop.f32.mrb[49].mxu0 }
 0x158   :  { %v1340_v32 = vadd.f32 %v1339_v22, %v1325_v28  ;;  %v1304_v33 = vadd.f32 %v1303_v11, %v1263_v13  ;;  %v1326_v34 = vmul.f32 %v1263_v13, %v1263_v13  ;;  %v1625_v36 = vpack.c.bf16 %v1263_v13, %v1260_v24  ;;  %v1887_v38 = vpop.f32.mrb[49].mxu1  ;;  %v1825_v40 = vpop.f32.mrb[50].mxu0 }
 0x159   :  { %v1824_v53 = vadd.f32 %v1823_v31, %v1822_v29  ;;  %v1888_v42 = vadd.f32 %v1887_v38, %v1886_v30  ;;  %v1889_v43 = vpop.f32.mrb[50].mxu1  ;;  %v1826_v44 = vpop.f32.mrb[51].mxu0 }
 0x15a   :  { %v1341_v45 = vadd.f32 %v1340_v32, %v1326_v34  ;;  %1649 = vst [vmem:[%s2455_s2 + $0x18] sm:$0xff] %v1625_v36   ;;  %v1827_v55 = vadd.f32 %v1826_v44, %v1825_v40  ;;  %v1890_v46 = vpop.f32.mrb[51].mxu1 }
 0x15b   :  { %v1171_v47 = vadd.f32 %v1824_v53, %v2394_v3  ;;  %v1891_v48 = vadd.f32 %v1890_v46, %v1889_v43 }
 0x15c   :  { %v1174_v49 = vadd.f32 %v1827_v55, %v2396_v5 }
 0x15d   :  { %v1268_v50 = vadd.f32 %v1888_v42, %v1171_v47 }
 0x15e   :  { %v1271_v25 = vadd.f32 %v1891_v48, %v1174_v49  ;;  %v1828_v52 = vpop.f32.mrb[52].mxu0 }
 0x15f   :  { %v1305_v56 = vadd.f32 %v1304_v33, %v1268_v50  ;;  %v1327_v57 = vmul.f32 %v1268_v50, %v1268_v50  ;;  %v1892_v27 = vpop.f32.mrb[52].mxu1  ;;  %v1829_v58 = vpop.f32.mrb[53].mxu0 }
 0x160   :  { %v1328_v59 = vmul.f32 %v1271_v25, %v1271_v25  ;;  %v1630_v60 = vpack.c.bf16 %v1271_v25, %v1268_v50  ;;  %v1830_v61 = vadd.f32 %v1829_v58, %v1828_v52  ;;  %v1893_v62 = vpop.f32.mrb[53].mxu1  ;;  %v1831_v63 = vpop.f32.mrb[54].mxu0 }
 0x161   :  { %v1342_v0 = vadd.f32 %v1341_v45, %v1327_v57  ;;  %v1306_v1 = vadd.f32 %v1305_v56, %v1271_v25  ;;  %v1894_v2 = vadd.f32 %v1893_v62, %v1892_v27  ;;  %v1895_v4 = vpop.f32.mrb[54].mxu1  ;;  %v1832_v3 = vpop.f32.mrb[55].mxu0 }
 0x162   :  { %1650 = vst [vmem:[%s2455_s2 + $0x20] sm:$0xff] %v1630_v60   ;;  %v1179_v5 = vadd.f32 %v1830_v61, %v2398_v19  ;;  %v1833_v6 = vadd.f32 %v1832_v3, %v1831_v63  ;;  %v1896_v7 = vpop.f32.mrb[55].mxu1 }
 0x163   :  { %v1343_v8 = vadd.f32 %v1342_v0, %v1328_v59  ;;  %v1897_v9 = vadd.f32 %v1896_v7, %v1895_v4 }
 0x164   :  { %v1276_v10 = vadd.f32 %v1894_v2, %v1179_v5  ;;  %v1182_v12 = vadd.f32 %v1833_v6, %v2400_v21 }
 0x166   :  { %v1307_v14 = vadd.f32 %v1306_v1, %v1276_v10  ;;  %v1329_v15 = vmul.f32 %v1276_v10, %v1276_v10  ;;  %v1279_v16 = vadd.f32 %v1897_v9, %v1182_v12  ;;  %v1834_v17 = vpop.f32.mrb[56].mxu0 }
 0x167   :  { %v1898_v39 = vpop.f32.mrb[56].mxu1  ;;  %v1835_v41 = vpop.f32.mrb[57].mxu0 }
 0x168   :  { %v1344_v18 = vadd.f32 %v1343_v8, %v1329_v15  ;;  %v1308_v20 = vadd.f32 %v1307_v14, %v1279_v16  ;;  %v1330_v22 = vmul.f32 %v1279_v16, %v1279_v16  ;;  %v1635_v23 = vpack.c.bf16 %v1279_v16, %v1276_v10  ;;  %v1899_v24 = vpop.f32.mrb[57].mxu1  ;;  %v1837_v26 = vpop.f32.mrb[58].mxu0 }
 0x169   :  { %v1836_v19 = vadd.f32 %v1835_v41, %v1834_v17  ;;  %v1900_v11 = vadd.f32 %v1899_v24, %v1898_v39  ;;  %v1901_v28 = vpop.f32.mrb[58].mxu1  ;;  %v1838_v13 = vpop.f32.mrb[59].mxu0 }
 0x16a   :  { %v1345_v29 = vadd.f32 %v1344_v18, %v1330_v22  ;;  %1651 = vst [vmem:[%s2455_s2 + $0x28] sm:$0xff] %v1635_v23   ;;  %v1839_v21 = vadd.f32 %v1838_v13, %v1837_v26  ;;  %v1902_v30 = vpop.f32.mrb[59].mxu1 }
 0x16b   :  { %v1187_v31 = vadd.f32 %v1836_v19, %v2402_v35  ;;  %v1903_v32 = vadd.f32 %v1902_v30, %v1901_v28 }
 0x16c   :  { %v1190_v33 = vadd.f32 %v1839_v21, %v2404_v37 }
 0x16d   :  { %v1284_v34 = vadd.f32 %v1900_v11, %v1187_v31 }
 0x16e   :  { %v1287_v36 = vadd.f32 %v1903_v32, %v1190_v33  ;;  %v1840_v38 = vpop.f32.mrb[60].mxu0 }
 0x16f   :  { %v1309_v40 = vadd.f32 %v1308_v20, %v1284_v34  ;;  %v1331_v53 = vmul.f32 %v1284_v34, %v1284_v34  ;;  %v1904_v42 = vpop.f32.mrb[60].mxu1  ;;  %v1841_v43 = vpop.f32.mrb[61].mxu0 }
 0x170   :  { %v1332_v44 = vmul.f32 %v1287_v36, %v1287_v36  ;;  %v1640_v45 = vpack.c.bf16 %v1287_v36, %v1284_v34  ;;  %v1842_v55 = vadd.f32 %v1841_v43, %v1840_v38  ;;  %v1905_v46 = vpop.f32.mrb[61].mxu1  ;;  %v1843_v47 = vpop.f32.mrb[62].mxu0 }
 0x171   :  { %v1346_v48 = vadd.f32 %v1345_v29, %v1331_v53  ;;  %v1310_v49 = vadd.f32 %v1309_v40, %v1287_v36  ;;  %v1906_v50 = vadd.f32 %v1905_v46, %v1904_v42  ;;  %v1907_v25 = vpop.f32.mrb[62].mxu1  ;;  %v1844_v35 = vpop.f32.mrb[63].mxu0 }
 0x172   :  { %1652 = vst [vmem:[%s2455_s2 + $0x30] sm:$0xff] %v1640_v45   ;;  %v1195_v37 = vadd.f32 %v1842_v55, %v2406_v51  ;;  %v1845_v52 = vadd.f32 %v1844_v35, %v1843_v47  ;;  %v1908_v56 = vpop.f32.mrb[63].mxu1 }
 0x173   :  { %v1347_v57 = vadd.f32 %v1346_v48, %v1332_v44  ;;  %v1909_v27 = vadd.f32 %v1908_v56, %v1907_v25 }
 0x174   :  { %v1292_v58 = vadd.f32 %v1906_v50, %v1195_v37  ;;  %v1198_v59 = vadd.f32 %v1845_v52, %v2408_v54 }
 0x176   :  { %v1311_v60 = vadd.f32 %v1310_v49, %v1292_v58  ;;  %v1333_v61 = vmul.f32 %v1292_v58, %v1292_v58  ;;  %v1295_v62 = vadd.f32 %v1909_v27, %v1198_v59 }
 0x178   :  { %v1348_v63 = vadd.f32 %v1347_v57, %v1333_v61  ;;  %v1312_v0 = vadd.f32 %v1311_v60, %v1295_v62  ;;  %v1334_v1 = vmul.f32 %v1295_v62, %v1295_v62  ;;  %v1645_v2 = vpack.c.bf16 %v1295_v62, %v1292_v58 }
 0x17a   :  { %v1313_v4 = vrot.slane %v1312_v0, 4  ;;  %v1349_v3 = vadd.f32 %v1348_v63, %v1334_v1  ;;  %1653 = vst [vmem:[%s2455_s2 + $0x38] sm:$0xff] %v1645_v2  }
 0x17c   :  { %v1314_v51 = vadd.f32 %v1313_v4, %v1312_v0  ;;  %v1350_v5 = vrot.slane %v1349_v3, 4 }
 0x17e   :  { %v1315_v6 = vrot.slane %v1314_v51, 2  ;;  %v1351_v7 = vadd.f32 %v1350_v5, %v1349_v3 }
 0x180   :  { %v1316_v8 = vadd.f32 %v1315_v6, %v1314_v51  ;;  %v1352_v9 = vrot.slane %v1351_v7, 2 }
 0x182   :  { %v1317_v54 = vrot.slane %v1316_v8, 1  ;;  %v1353_v10 = vadd.f32 %v1352_v9, %v1351_v7 }
 0x184   :  { %v1354_v12 = vrot.slane %v1353_v10, 1  ;;  %v1318_v14 = vadd.f32 %v1317_v54, %v1316_v8 }
 0x186   :  { %v1355_v15 = vadd.f32 %v1354_v12, %v1353_v10 }
 0x188   :  { %v1357_v16 = vsel %vm1356_vm0, %v1318_v14, %v1355_v15 }
 0x189   :  { %1358 = vst [vmem:[%s2456_s3] sm:$0x3] %v1357_v16 }

// kernel: discriminator_forward.7
= control target key start
LH: loop header
LB: loop body
LE: loop exit
PB: predicated region body
PF: predicated region fallthrough
CT: control target
= control target key end

     0   :  { %vm2209_vm0 = vcmask 1040384   ;;  %s3944_s1 = inlined_call_operand.vmem [shape: bf16[2048,256], index: 1, kind: input, shape index: {}]   ;;  %s3945_s0 = inlined_call_operand.vmem [shape: bf16[32,2048], index: 0, kind: input, shape index: {}]   ;;  %s3946_s2 = inlined_call_operand.vmem [shape: bf16[32,256], index: 2, kind: output, shape index: {0}]   ;;  %s3947_s3 = inlined_call_operand.vmem [shape: f32[1,2,256], index: 3, kind: output, shape index: {1}]  }
   0x1   :  { %v2613_v0 = vld [vmem:[%s3944_s1 + $0x4] ss:$8 sps:$4 sm:$0xff]   ;;  %v2617_v2 = vld [vmem:[%s3944_s1] ss:$8 sps:$4 sm:$0xff]   ;;  %v2619_v4 = vld [vmem:[%s3944_s1 + $0x14] ss:$8 sps:$4 sm:$0xff]  }
   0x2   :  { %v2615_v1 = vld [vmem:[%s3944_s1 + $0x404] ss:$8 sps:$4 sm:$0xff]   ;;  %1741 = vmatprep.subr.bf16.mxu1 %v2613_v0  ;;  %v2618_v3 = vld [vmem:[%s3944_s1 + $0x400] ss:$8 sps:$4 sm:$0xff]   ;;  %v2621_v5 = vld [vmem:[%s3944_s1 + $0x414] ss:$8 sps:$4 sm:$0xff]  }
   0x3   :  { %1953 = vmatprep.subr.bf16.mxu0 %v2615_v1  ;;  %1742 = vmatpush1.bf16.msra.mxu1 %v2617_v2  ;;  %v2623_v6 = vld [vmem:[%s3944_s1 + $0x10] ss:$8 sps:$4 sm:$0xff]   ;;  %v2625_v8 = vld [vmem:[%s3944_s1 + $0x24] ss:$8 sps:$4 sm:$0xff]   ;;  %v2629_v10 = vld [vmem:[%s3944_s1 + $0x20] ss:$8 sps:$4 sm:$0xff]  }
   0x4   :  { %1954 = vmatpush1.bf16.msra.mxu0 %v2618_v3  ;;  %1743 = vmatprep.subr.bf16.mxu1 %v2619_v4  ;;  %v2624_v7 = vld [vmem:[%s3944_s1 + $0x410] ss:$8 sps:$4 sm:$0xff]   ;;  %v2627_v9 = vld [vmem:[%s3944_s1 + $0x424] ss:$8 sps:$4 sm:$0xff]   ;;  %v2630_v11 = vld [vmem:[%s3944_s1 + $0x420] ss:$8 sps:$4 sm:$0xff]  }
   0x5   :  { %1955 = vmatprep.subr.bf16.mxu0 %v2621_v5  ;;  %v2631_v12 = vld [vmem:[%s3944_s1 + $0x34] ss:$8 sps:$4 sm:$0xff]   ;;  %v2635_v14 = vld [vmem:[%s3944_s1 + $0x30] ss:$8 sps:$4 sm:$0xff]   ;;  %v2637_v16 = vld [vmem:[%s3944_s1 + $0x44] ss:$8 sps:$4 sm:$0xff]  }
   0x6   :  { %v2633_v13 = vld [vmem:[%s3944_s1 + $0x434] ss:$8 sps:$4 sm:$0xff]   ;;  %v2636_v15 = vld [vmem:[%s3944_s1 + $0x430] ss:$8 sps:$4 sm:$0xff]   ;;  %v2639_v17 = vld [vmem:[%s3944_s1 + $0x444] ss:$8 sps:$4 sm:$0xff]  }
   0x7   :  { %1744 = vmatpush1.bf16.msra.mxu1 %v2623_v6  ;;  %v2641_v18 = vld [vmem:[%s3944_s1 + $0x40] ss:$8 sps:$4 sm:$0xff]   ;;  %v2643_v20 = vld [vmem:[%s3944_s1 + $0x54] ss:$8 sps:$4 sm:$0xff]   ;;  %v2647_v22 = vld [vmem:[%s3944_s1 + $0x50] ss:$8 sps:$4 sm:$0xff]  }
   0x8   :  { %1956 = vmatpush1.bf16.msra.mxu0 %v2624_v7  ;;  %1745 = vmatprep.subr.bf16.mxu1 %v2625_v8  ;;  %v2642_v19 = vld [vmem:[%s3944_s1 + $0x440] ss:$8 sps:$4 sm:$0xff]   ;;  %v2645_v21 = vld [vmem:[%s3944_s1 + $0x454] ss:$8 sps:$4 sm:$0xff]   ;;  %v2648_v23 = vld [vmem:[%s3944_s1 + $0x450] ss:$8 sps:$4 sm:$0xff]  }
   0x9   :  { %1957 = vmatprep.subr.bf16.mxu0 %v2627_v9  ;;  %v2649_v24 = vld [vmem:[%s3944_s1 + $0x64] ss:$8 sps:$4 sm:$0xff]   ;;  %v2653_v26 = vld [vmem:[%s3944_s1 + $0x60] ss:$8 sps:$4 sm:$0xff]   ;;  %v2655_v28 = vld [vmem:[%s3944_s1 + $0x74] ss:$8 sps:$4 sm:$0xff]  }
   0xa   :  { %v2651_v25 = vld [vmem:[%s3944_s1 + $0x464] ss:$8 sps:$4 sm:$0xff]   ;;  %v2654_v27 = vld [vmem:[%s3944_s1 + $0x460] ss:$8 sps:$4 sm:$0xff]   ;;  %v2657_v29 = vld [vmem:[%s3944_s1 + $0x474] ss:$8 sps:$4 sm:$0xff]  }
   0xb   :  { %1746 = vmatpush1.bf16.msra.mxu1 %v2629_v10  ;;  %v2659_v30 = vld [vmem:[%s3944_s1 + $0x70] ss:$8 sps:$4 sm:$0xff]   ;;  %v2661_v32 = vld [vmem:[%s3944_s1 + $0x84] ss:$8 sps:$4 sm:$0xff]   ;;  %v2665_v34 = vld [vmem:[%s3944_s1 + $0x80] ss:$8 sps:$4 sm:$0xff]  }
   0xc   :  { %1958 = vmatpush1.bf16.msra.mxu0 %v2630_v11  ;;  %1747 = vmatprep.subr.bf16.mxu1 %v2631_v12  ;;  %v2660_v31 = vld [vmem:[%s3944_s1 + $0x470] ss:$8 sps:$4 sm:$0xff]   ;;  %v2663_v33 = vld [vmem:[%s3944_s1 + $0x484] ss:$8 sps:$4 sm:$0xff]   ;;  %v2666_v35 = vld [vmem:[%s3944_s1 + $0x480] ss:$8 sps:$4 sm:$0xff]  }
   0xd   :  { %1959 = vmatprep.subr.bf16.mxu0 %v2633_v13  ;;  %v2667_v36 = vld [vmem:[%s3944_s1 + $0x94] ss:$8 sps:$4 sm:$0xff]   ;;  %v2671_v38 = vld [vmem:[%s3944_s1 + $0x90] ss:$8 sps:$4 sm:$0xff]   ;;  %v2673_v40 = vld [vmem:[%s3944_s1 + $0xa4] ss:$8 sps:$4 sm:$0xff]  }
   0xe   :  { %v2669_v37 = vld [vmem:[%s3944_s1 + $0x494] ss:$8 sps:$4 sm:$0xff]   ;;  %v2672_v39 = vld [vmem:[%s3944_s1 + $0x490] ss:$8 sps:$4 sm:$0xff]   ;;  %v2675_v41 = vld [vmem:[%s3944_s1 + $0x4a4] ss:$8 sps:$4 sm:$0xff]  }
   0xf   :  { %1748 = vmatpush1.bf16.msra.mxu1 %v2635_v14  ;;  %v2677_v42 = vld [vmem:[%s3944_s1 + $0xa0] ss:$8 sps:$4 sm:$0xff]   ;;  %v2679_v44 = vld [vmem:[%s3944_s1 + $0xb4] ss:$8 sps:$4 sm:$0xff]   ;;  %v2683_v46 = vld [vmem:[%s3944_s1 + $0xb0] ss:$8 sps:$4 sm:$0xff]  }
  0x10   :  { %1960 = vmatpush1.bf16.msra.mxu0 %v2636_v15  ;;  %1749 = vmatprep.subr.bf16.mxu1 %v2637_v16  ;;  %v2678_v43 = vld [vmem:[%s3944_s1 + $0x4a0] ss:$8 sps:$4 sm:$0xff]   ;;  %v2681_v45 = vld [vmem:[%s3944_s1 + $0x4b4] ss:$8 sps:$4 sm:$0xff]   ;;  %v2684_v47 = vld [vmem:[%s3944_s1 + $0x4b0] ss:$8 sps:$4 sm:$0xff]  }
  0x11   :  { %1961 = vmatprep.subr.bf16.mxu0 %v2639_v17  ;;  %v13_v48 = vld [vmem:[%s3945_s0] sm:$0xff]  ;;  %v2691_v58 = vld [vmem:[%s3944_s1 + $0xd4] ss:$8 sps:$4 sm:$0xff]   ;;  %v2695_v60 = vld [vmem:[%s3944_s1 + $0xd0] ss:$8 sps:$4 sm:$0xff]  }
  0x12   :  { %v21_v49 = vld [vmem:[%s3945_s0 + $0x40] sm:$0xff]  ;;  %v2693_v59 = vld [vmem:[%s3944_s1 + $0x4d4] ss:$8 sps:$4 sm:$0xff]   ;;  %v2696_v61 = vld [vmem:[%s3944_s1 + $0x4d0] ss:$8 sps:$4 sm:$0xff]  }
  0x13   :  { %1750 = vmatpush1.bf16.msra.mxu1 %v2641_v18  ;;  %v2685_v50 = vld [vmem:[%s3944_s1 + $0xc4] ss:$8 sps:$4 sm:$0xff]   ;;  %v2261_v52 = vcombine.high %v13_v48, %v21_v49  ;;  %v2689_v56 = vld [vmem:[%s3944_s1 + $0xc0] ss:$8 sps:$4 sm:$0xff]   ;;  %v2703_v2 = vld [vmem:[%s3944_s1 + $0xf4] ss:$8 sps:$4 sm:$0xff]   ;;  %v2260_v8 = vcombine.low %v13_v48, %v21_v49 }
  0x14   :  { %1962 = vmatpush1.bf16.msra.mxu0 %v2642_v19  ;;  %1751 = vmatprep.subr.bf16.mxu1 %v2643_v20  ;;  %v2687_v51 = vld [vmem:[%s3944_s1 + $0x4c4] ss:$8 sps:$4 sm:$0xff]   ;;  %v2690_v57 = vld [vmem:[%s3944_s1 + $0x4c0] ss:$8 sps:$4 sm:$0xff]   ;;  %v2705_v3 = vld [vmem:[%s3944_s1 + $0x4f4] ss:$8 sps:$4 sm:$0xff]  }
  0x15   :  { %1963 = vmatprep.subr.bf16.mxu0 %v2645_v21  ;;  %v17_v53 = vld [vmem:[%s3945_s0 + $0x20] sm:$0xff]  ;;  %1773 = vmatprep.mubr.bf16.mxu1 %v2261_v52  ;;  %v2707_v4 = vld [vmem:[%s3944_s1 + $0xf0] ss:$8 sps:$4 sm:$0xff]   ;;  %v2717_v12 = vld [vmem:[%s3944_s1 + $0x114] ss:$8 sps:$4 sm:$0xff]  }
  0x16   :  { %v25_v54 = vld [vmem:[%s3945_s0 + $0x60] sm:$0xff]  ;;  %v2708_v5 = vld [vmem:[%s3944_s1 + $0x4f0] ss:$8 sps:$4 sm:$0xff]   ;;  %v2720_v13 = vld [vmem:[%s3944_s1 + $0x514] ss:$8 sps:$4 sm:$0xff]  }
  0x17   :  { %1752 = vmatpush1.bf16.msra.mxu1 %v2647_v22  ;;  %v2269_v55 = vcombine.high %v17_v53, %v25_v54  ;;  %v2697_v62 = vld [vmem:[%s3944_s1 + $0xe4] ss:$8 sps:$4 sm:$0xff]   ;;  %v2701_v0 = vld [vmem:[%s3944_s1 + $0xe0] ss:$8 sps:$4 sm:$0xff]   ;;  %v2268_v10 = vcombine.low %v17_v53, %v25_v54  ;;  %v2715_v14 = vld [vmem:[%s3944_s1 + $0x110] ss:$8 sps:$4 sm:$0xff]  }
  0x18   :  { %1964 = vmatpush1.bf16.msra.mxu0 %v2648_v23  ;;  %1753 = vmatprep.subr.bf16.mxu1 %v2649_v24  ;;  %v2699_v63 = vld [vmem:[%s3944_s1 + $0x4e4] ss:$8 sps:$4 sm:$0xff]   ;;  %v2702_v1 = vld [vmem:[%s3944_s1 + $0x4e0] ss:$8 sps:$4 sm:$0xff]   ;;  %v2718_v15 = vld [vmem:[%s3944_s1 + $0x510] ss:$8 sps:$4 sm:$0xff]  }
  0x19   :  { %1965 = vmatprep.subr.bf16.mxu0 %v2651_v25  ;;  %1985 = vmatprep.mubr.bf16.mxu0 %v2269_v55  ;;  %v2711_v6 = vld [vmem:[%s3944_s1 + $0x104] ss:$8 sps:$4 sm:$0xff]   ;;  %v2709_v9 = vld [vmem:[%s3944_s1 + $0x100] ss:$8 sps:$4 sm:$0xff]   ;;  %v2729_v20 = vld [vmem:[%s3944_s1 + $0x134] ss:$8 sps:$4 sm:$0xff]  }
  0x1a   :  { %v2714_v7 = vld [vmem:[%s3944_s1 + $0x504] ss:$8 sps:$4 sm:$0xff]   ;;  %v2712_v11 = vld [vmem:[%s3944_s1 + $0x500] ss:$8 sps:$4 sm:$0xff]   ;;  %v2732_v21 = vld [vmem:[%s3944_s1 + $0x534] ss:$8 sps:$4 sm:$0xff]  }
  0x1b   :  { %1754 = vmatpush1.bf16.msra.mxu1 %v2653_v26  ;;  %v2723_v16 = vld [vmem:[%s3944_s1 + $0x124] ss:$8 sps:$4 sm:$0xff]   ;;  %v2721_v18 = vld [vmem:[%s3944_s1 + $0x120] ss:$8 sps:$4 sm:$0xff]   ;;  %v2727_v22 = vld [vmem:[%s3944_s1 + $0x130] ss:$8 sps:$4 sm:$0xff]  }
  0x1c   :  { %1966 = vmatpush1.bf16.msra.mxu0 %v2654_v27  ;;  %1755 = vmatprep.subr.bf16.mxu1 %v2655_v28  ;;  %v2726_v17 = vld [vmem:[%s3944_s1 + $0x524] ss:$8 sps:$4 sm:$0xff]   ;;  %v2724_v19 = vld [vmem:[%s3944_s1 + $0x520] ss:$8 sps:$4 sm:$0xff]   ;;  %v2730_v23 = vld [vmem:[%s3944_s1 + $0x530] ss:$8 sps:$4 sm:$0xff]  }
  0x1d   :  { %1967 = vmatprep.subr.bf16.mxu0 %v2657_v29  ;;  %v2735_v24 = vld [vmem:[%s3944_s1 + $0x144] ss:$8 sps:$4 sm:$0xff]   ;;  %v2733_v26 = vld [vmem:[%s3944_s1 + $0x140] ss:$8 sps:$4 sm:$0xff]   ;;  %v2741_v28 = vld [vmem:[%s3944_s1 + $0x154] ss:$8 sps:$4 sm:$0xff]  }
  0x1e   :  { %v2738_v25 = vld [vmem:[%s3944_s1 + $0x544] ss:$8 sps:$4 sm:$0xff]   ;;  %v2736_v27 = vld [vmem:[%s3944_s1 + $0x540] ss:$8 sps:$4 sm:$0xff]   ;;  %v2744_v29 = vld [vmem:[%s3944_s1 + $0x554] ss:$8 sps:$4 sm:$0xff]  }
  0x1f   :  { %1756 = vmatpush1.bf16.msra.mxu1 %v2659_v30  ;;  %v29_v30 = vld [vmem:[%s3945_s0 + $0x80] sm:$0xff]  ;;  %v3338_v49 = vld [vmem:[%s3945_s0 + $0x28] sm:$0xff]  ;;  %v2754_v52 = vld [vmem:[%s3944_s1 + $0x570] ss:$8 sps:$4 sm:$0xff]  }
  0x20   :  { %1968 = vmatpush1.bf16.msra.mxu0 %v2660_v31  ;;  %1757 = vmatprep.subr.bf16.mxu1 %v2661_v32  ;;  %v37_v31 = vld [vmem:[%s3945_s0 + $0xc0] sm:$0xff]  ;;  %v2739_v32 = vld [vmem:[%s3944_s1 + $0x150] ss:$8 sps:$4 sm:$0xff]  }
  0x21   :  { %1969 = vmatprep.subr.bf16.mxu0 %v2663_v33  ;;  %v2277_v33 = vcombine.high %v29_v30, %v37_v31  ;;  %v2759_v54 = vld [vmem:[%s3944_s1 + $0x184] ss:$8 sps:$4 sm:$0xff]  }
  0x22   :  { %v2762_v55 = vld [vmem:[%s3944_s1 + $0x584] ss:$8 sps:$4 sm:$0xff]  }
  0x23   :  { %1758 = vmatpush1.bf16.msra.mxu1 %v2665_v34  ;;  %v2742_v34 = vld [vmem:[%s3944_s1 + $0x550] ss:$8 sps:$4 sm:$0xff]  }
  0x24   :  { %1970 = vmatpush1.bf16.msra.mxu0 %v2666_v35  ;;  %1759 = vmatprep.subr.bf16.mxu1 %v2667_v36  ;;  %v33_v35 = vld [vmem:[%s3945_s0 + $0xa0] sm:$0xff] }
  0x25   :  { %1971 = vmatprep.subr.bf16.mxu0 %v2669_v37  ;;  %v41_v36 = vld [vmem:[%s3945_s0 + $0xe0] sm:$0xff]  ;;  %v2276_v37 = vcombine.low %v29_v30, %v37_v31  ;;  %v2813_v30 = vld [vmem:[%s3944_s1 + $0x214] ss:$8 sps:$4 sm:$0xff]  }
  0x26   :  { %v2816_v31 = vld [vmem:[%s3944_s1 + $0x614] ss:$8 sps:$4 sm:$0xff]  }
  0x27   :  { %1760 = vmatpush1.bf16.msra.mxu1 %v2671_v38  ;;  %v2747_v38 = vld [vmem:[%s3944_s1 + $0x164] ss:$8 sps:$4 sm:$0xff]  }
  0x28   :  { %1972 = vmatpush1.bf16.msra.mxu0 %v2672_v39  ;;  %1761 = vmatprep.subr.bf16.mxu1 %v2673_v40  ;;  %v2285_v39 = vcombine.high %v33_v35, %v41_v36  ;;  %v2284_v40 = vcombine.low %v33_v35, %v41_v36  ;;  %v2811_v36 = vld [vmem:[%s3944_s1 + $0x210] ss:$8 sps:$4 sm:$0xff]  }
  0x29   :  { %1973 = vmatprep.subr.bf16.mxu0 %v2675_v41  ;;  %v2750_v41 = vld [vmem:[%s3944_s1 + $0x564] ss:$8 sps:$4 sm:$0xff]  }
  0x2b   :  { %1762 = vmatpush1.bf16.msra.mxu1 %v2677_v42  ;;  %v2745_v42 = vld [vmem:[%s3944_s1 + $0x160] ss:$8 sps:$4 sm:$0xff]  }
  0x2c   :  { %1974 = vmatpush1.bf16.msra.mxu0 %v2678_v43  ;;  %1763 = vmatprep.subr.bf16.mxu1 %v2679_v44  ;;  %v2748_v43 = vld [vmem:[%s3944_s1 + $0x560] ss:$8 sps:$4 sm:$0xff]  }
  0x2d   :  { %1975 = vmatprep.subr.bf16.mxu0 %v2681_v45  ;;  %v3320_v44 = vld [vmem:[%s3945_s0 + $0x8] sm:$0xff] }
  0x2e   :  { %v3325_v45 = vld [vmem:[%s3945_s0 + $0x48] sm:$0xff] }
  0x2f   :  { %1764 = vmatpush1.bf16.msra.mxu1 %v2683_v46  ;;  %v2753_v46 = vld [vmem:[%s3944_s1 + $0x174] ss:$8 sps:$4 sm:$0xff]   ;;  %v2263_v48 = vcombine.high %v3320_v44, %v3325_v45 }
  0x30   :  { %1976 = vmatpush1.bf16.msra.mxu0 %v2684_v47  ;;  %1765 = vmatprep.subr.bf16.mxu1 %v2685_v50  ;;  %v2756_v47 = vld [vmem:[%s3944_s1 + $0x574] ss:$8 sps:$4 sm:$0xff]   ;;  %v3343_v50 = vld [vmem:[%s3945_s0 + $0x68] sm:$0xff] }
  0x31   :  { %1977 = vmatprep.subr.bf16.mxu0 %v2687_v51  ;;  %v2751_v51 = vld [vmem:[%s3944_s1 + $0x170] ss:$8 sps:$4 sm:$0xff]   ;;  %v2271_v53 = vcombine.high %v3338_v49, %v3343_v50 }
  0x33   :  { %1766 = vmatpush1.bf16.msra.mxu1 %v2689_v56  ;;  %v2757_v56 = vld [vmem:[%s3944_s1 + $0x180] ss:$8 sps:$4 sm:$0xff]  }
  0x34   :  { %1978 = vmatpush1.bf16.msra.mxu0 %v2690_v57  ;;  %1767 = vmatprep.subr.bf16.mxu1 %v2691_v58  ;;  %v2760_v57 = vld [vmem:[%s3944_s1 + $0x580] ss:$8 sps:$4 sm:$0xff]   ;;  %v2765_v58 = vld [vmem:[%s3944_s1 + $0x194] ss:$8 sps:$4 sm:$0xff]  }
  0x35   :  { %1979 = vmatprep.subr.bf16.mxu0 %v2693_v59  ;;  %v2768_v59 = vld [vmem:[%s3944_s1 + $0x594] ss:$8 sps:$4 sm:$0xff]  }
  0x37   :  { %1768 = vmatpush1.bf16.msra.mxu1 %v2695_v60  ;;  %v2763_v60 = vld [vmem:[%s3944_s1 + $0x190] ss:$8 sps:$4 sm:$0xff]  }
  0x38   :  { %1980 = vmatpush1.bf16.msra.mxu0 %v2696_v61  ;;  %1769 = vmatprep.subr.bf16.mxu1 %v2697_v62  ;;  %v2766_v61 = vld [vmem:[%s3944_s1 + $0x590] ss:$8 sps:$4 sm:$0xff]   ;;  %v2771_v62 = vld [vmem:[%s3944_s1 + $0x1a4] ss:$8 sps:$4 sm:$0xff]  }
  0x39   :  { %1981 = vmatprep.subr.bf16.mxu0 %v2699_v63  ;;  %v2774_v63 = vld [vmem:[%s3944_s1 + $0x5a4] ss:$8 sps:$4 sm:$0xff]  }
  0x3b   :  { %1770 = vmatpush1.bf16.msra.mxu1 %v2701_v0  ;;  %v2769_v0 = vld [vmem:[%s3944_s1 + $0x1a0] ss:$8 sps:$4 sm:$0xff]  }
  0x3c   :  { %1982 = vmatpush1.bf16.msra.mxu0 %v2702_v1  ;;  %1771 = vmatprep.subr.bf16.mxu1 %v2703_v2  ;;  %v2772_v1 = vld [vmem:[%s3944_s1 + $0x5a0] ss:$8 sps:$4 sm:$0xff]   ;;  %v2777_v2 = vld [vmem:[%s3944_s1 + $0x1b4] ss:$8 sps:$4 sm:$0xff]  }
  0x3d   :  { %1983 = vmatprep.subr.bf16.mxu0 %v2705_v3  ;;  %v2780_v3 = vld [vmem:[%s3944_s1 + $0x5b4] ss:$8 sps:$4 sm:$0xff]  }
  0x3f   :  { %1772 = vmatpush1.bf16.msra.mxu1 %v2707_v4  ;;  %v2775_v4 = vld [vmem:[%s3944_s1 + $0x1b0] ss:$8 sps:$4 sm:$0xff]  }
  0x40   :  { %1984 = vmatpush1.bf16.msra.mxu0 %v2708_v5  ;;  %1794 = vmatprep.subr.bf16.mxu1 %v2711_v6  ;;  %v2778_v5 = vld [vmem:[%s3944_s1 + $0x5b0] ss:$8 sps:$4 sm:$0xff]   ;;  %v2783_v6 = vld [vmem:[%s3944_s1 + $0x1c4] ss:$8 sps:$4 sm:$0xff]  }
  0x41   :  { %2006 = vmatprep.subr.bf16.mxu0 %v2714_v7  ;;  %v2786_v7 = vld [vmem:[%s3944_s1 + $0x5c4] ss:$8 sps:$4 sm:$0xff]  }
  0x42   :  { %1774 = vmatmul.mubr.bf16.vlgmr.msra.gmra.mrb[0].mxu1 %v2260_v8  ;;  %v2781_v8 = vld [vmem:[%s3944_s1 + $0x1c0] ss:$8 sps:$4 sm:$0xff]  }
  0x43   :  { %1986 = vmatmul.mubr.bf16.vlgmr.msra.gmra.mrb[0].mxu0 %v2268_v10  ;;  %1795 = vmatpush1.bf16.msra.mxu1 %v2709_v9  ;;  %v2784_v9 = vld [vmem:[%s3944_s1 + $0x5c0] ss:$8 sps:$4 sm:$0xff]   ;;  %v2789_v10 = vld [vmem:[%s3944_s1 + $0x1d4] ss:$8 sps:$4 sm:$0xff]  }
  0x44   :  { %2007 = vmatpush1.bf16.msra.mxu0 %v2712_v11  ;;  %1796 = vmatprep.subr.bf16.mxu1 %v2717_v12  ;;  %v2792_v11 = vld [vmem:[%s3944_s1 + $0x5d4] ss:$8 sps:$4 sm:$0xff]   ;;  %v2787_v12 = vld [vmem:[%s3944_s1 + $0x1d0] ss:$8 sps:$4 sm:$0xff]  }
  0x45   :  { %2008 = vmatprep.subr.bf16.mxu0 %v2720_v13  ;;  %1783 = vmatprep.mubr.bf16.mxu1 %v2277_v33  ;;  %v2790_v13 = vld [vmem:[%s3944_s1 + $0x5d0] ss:$8 sps:$4 sm:$0xff]   ;;  %v42_v33 = vld [vmem:[%s3945_s0 + $0xe8] sm:$0xff] }
  0x46   :  { %1995 = vmatprep.mubr.bf16.mxu0 %v2285_v39  ;;  %v2822_v39 = vld [vmem:[%s3944_s1 + $0x624] ss:$8 sps:$4 sm:$0xff]  }
  0x47   :  { %1797 = vmatpush1.bf16.msra.mxu1 %v2715_v14  ;;  %v2795_v14 = vld [vmem:[%s3944_s1 + $0x1e4] ss:$8 sps:$4 sm:$0xff]  }
  0x48   :  { %2009 = vmatpush1.bf16.msra.mxu0 %v2718_v15  ;;  %1798 = vmatprep.subr.bf16.mxu1 %v2723_v16  ;;  %v2798_v15 = vld [vmem:[%s3944_s1 + $0x5e4] ss:$8 sps:$4 sm:$0xff]   ;;  %v2793_v16 = vld [vmem:[%s3944_s1 + $0x1e0] ss:$8 sps:$4 sm:$0xff]  }
  0x49   :  { %2010 = vmatprep.subr.bf16.mxu0 %v2726_v17  ;;  %v2796_v17 = vld [vmem:[%s3944_s1 + $0x5e0] ss:$8 sps:$4 sm:$0xff]  }
  0x4a   :  { %1784 = vmatmul.mubr.bf16.gmra.mrb[4].mxu1 %v2276_v37  ;;  %v2814_v37 = vld [vmem:[%s3944_s1 + $0x610] ss:$8 sps:$4 sm:$0xff]  }
  0x4b   :  { %1799 = vmatpush1.bf16.msra.mxu1 %v2721_v18  ;;  %1996 = vmatmul.mubr.bf16.gmra.mrb[4].mxu0 %v2284_v40  ;;  %v2801_v18 = vld [vmem:[%s3944_s1 + $0x1f4] ss:$8 sps:$4 sm:$0xff]   ;;  %v2817_v40 = vld [vmem:[%s3944_s1 + $0x220] ss:$8 sps:$4 sm:$0xff]  }
  0x4c   :  { %2011 = vmatpush1.bf16.msra.mxu0 %v2724_v19  ;;  %1800 = vmatprep.subr.bf16.mxu1 %v2729_v20  ;;  %v2804_v19 = vld [vmem:[%s3944_s1 + $0x5f4] ss:$8 sps:$4 sm:$0xff]   ;;  %v2799_v20 = vld [vmem:[%s3944_s1 + $0x1f0] ss:$8 sps:$4 sm:$0xff]  }
  0x4d   :  { %2012 = vmatprep.subr.bf16.mxu0 %v2732_v21  ;;  %1826 = vmatprep.mubr.bf16.mxu1 %v2263_v48  ;;  %v2802_v21 = vld [vmem:[%s3944_s1 + $0x5f0] ss:$8 sps:$4 sm:$0xff]   ;;  %v2825_v48 = vld [vmem:[%s3944_s1 + $0x234] ss:$8 sps:$4 sm:$0xff]  }
  0x4e   :  { %2038 = vmatprep.mubr.bf16.mxu0 %v2271_v53  ;;  %v2826_v53 = vld [vmem:[%s3944_s1 + $0x630] ss:$8 sps:$4 sm:$0xff]  }
  0x4f   :  { %1801 = vmatpush1.bf16.msra.mxu1 %v2727_v22  ;;  %v2807_v22 = vld [vmem:[%s3944_s1 + $0x204] ss:$8 sps:$4 sm:$0xff]  }
  0x50   :  { %2013 = vmatpush1.bf16.msra.mxu0 %v2730_v23  ;;  %1802 = vmatprep.subr.bf16.mxu1 %v2735_v24  ;;  %v2810_v23 = vld [vmem:[%s3944_s1 + $0x604] ss:$8 sps:$4 sm:$0xff]   ;;  %v2805_v24 = vld [vmem:[%s3944_s1 + $0x200] ss:$8 sps:$4 sm:$0xff]  }
  0x51   :  { %2014 = vmatprep.subr.bf16.mxu0 %v2738_v25  ;;  %v2808_v25 = vld [vmem:[%s3944_s1 + $0x600] ss:$8 sps:$4 sm:$0xff]  }
  0x53   :  { %1803 = vmatpush1.bf16.msra.mxu1 %v2733_v26  ;;  %v30_v26 = vld [vmem:[%s3945_s0 + $0x88] sm:$0xff] }
  0x54   :  { %2015 = vmatpush1.bf16.msra.mxu0 %v2736_v27  ;;  %1804 = vmatprep.subr.bf16.mxu1 %v2741_v28  ;;  %v2262_v27 = vcombine.low %v3320_v44, %v3325_v45  ;;  %v2270_v28 = vcombine.low %v3338_v49, %v3343_v50  ;;  %v3509_v45 = vld [vmem:[%s3945_s0 + $0x50] sm:$0xff] }
  0x55   :  { %2016 = vmatprep.subr.bf16.mxu0 %v2744_v29  ;;  %v38_v29 = vld [vmem:[%s3945_s0 + $0xc8] sm:$0xff]  ;;  %v2828_v49 = vld [vmem:[%s3944_s1 + $0x634] ss:$8 sps:$4 sm:$0xff]  }
  0x57   :  { %1805 = vmatpush1.bf16.msra.mxu1 %v2739_v32  ;;  %v34_v32 = vld [vmem:[%s3945_s0 + $0xa8] sm:$0xff] }
  0x58   :  { %2017 = vmatpush1.bf16.msra.mxu0 %v2742_v34  ;;  %1806 = vmatprep.subr.bf16.mxu1 %v2747_v38  ;;  %v2279_v34 = vcombine.high %v30_v26, %v38_v29  ;;  %v2287_v35 = vcombine.high %v34_v32, %v42_v33  ;;  %v2819_v38 = vld [vmem:[%s3944_s1 + $0x224] ss:$8 sps:$4 sm:$0xff]   ;;  %v2286_v44 = vcombine.low %v34_v32, %v42_v33  ;;  %v2889_v32 = vld [vmem:[%s3944_s1 + $0x2e0] ss:$8 sps:$4 sm:$0xff]  }
  0x59   :  { %2018 = vmatprep.subr.bf16.mxu0 %v2750_v41  ;;  %v2820_v41 = vld [vmem:[%s3944_s1 + $0x620] ss:$8 sps:$4 sm:$0xff]  }
  0x5a   :  { %v2892_v33 = vld [vmem:[%s3944_s1 + $0x6e0] ss:$8 sps:$4 sm:$0xff]  }
  0x5b   :  { %1807 = vmatpush1.bf16.msra.mxu1 %v2745_v42  ;;  %v3504_v42 = vld [vmem:[%s3945_s0 + $0x10] sm:$0xff] }
  0x5c   :  { %2019 = vmatpush1.bf16.msra.mxu0 %v2748_v43  ;;  %1808 = vmatprep.subr.bf16.mxu1 %v2753_v46  ;;  %v2278_v43 = vcombine.low %v30_v26, %v38_v29  ;;  %v3514_v46 = vld [vmem:[%s3945_s0 + $0x30] sm:$0xff]  ;;  %v2265_v50 = vcombine.high %v3504_v42, %v3509_v45 }
  0x5d   :  { %2020 = vmatprep.subr.bf16.mxu0 %v2756_v47  ;;  %v3519_v47 = vld [vmem:[%s3945_s0 + $0x70] sm:$0xff] }
  0x5e   :  { %v2885_v26 = vld [vmem:[%s3944_s1 + $0x2d4] ss:$8 sps:$4 sm:$0xff]   ;;  %v2886_v29 = vld [vmem:[%s3944_s1 + $0x6d0] ss:$8 sps:$4 sm:$0xff]  }
  0x5f   :  { %1809 = vmatpush1.bf16.msra.mxu1 %v2751_v51  ;;  %v2273_v51 = vcombine.high %v3514_v46, %v3519_v47 }
  0x60   :  { %2021 = vmatpush1.bf16.msra.mxu0 %v2754_v52  ;;  %1810 = vmatprep.subr.bf16.mxu1 %v2759_v54  ;;  %v2823_v52 = vld [vmem:[%s3944_s1 + $0x230] ss:$8 sps:$4 sm:$0xff]   ;;  %v2831_v54 = vld [vmem:[%s3944_s1 + $0x244] ss:$8 sps:$4 sm:$0xff]  }
  0x61   :  { %2022 = vmatprep.subr.bf16.mxu0 %v2762_v55  ;;  %v2834_v55 = vld [vmem:[%s3944_s1 + $0x644] ss:$8 sps:$4 sm:$0xff]  }
  0x63   :  { %1811 = vmatpush1.bf16.msra.mxu1 %v2757_v56  ;;  %v2829_v56 = vld [vmem:[%s3944_s1 + $0x240] ss:$8 sps:$4 sm:$0xff]  }
  0x64   :  { %2023 = vmatpush1.bf16.msra.mxu0 %v2760_v57  ;;  %1812 = vmatprep.subr.bf16.mxu1 %v2765_v58  ;;  %v2832_v57 = vld [vmem:[%s3944_s1 + $0x640] ss:$8 sps:$4 sm:$0xff]   ;;  %v2837_v58 = vld [vmem:[%s3944_s1 + $0x254] ss:$8 sps:$4 sm:$0xff]  }
  0x65   :  { %2024 = vmatprep.subr.bf16.mxu0 %v2768_v59  ;;  %v2840_v59 = vld [vmem:[%s3944_s1 + $0x654] ss:$8 sps:$4 sm:$0xff]  }
  0x67   :  { %1813 = vmatpush1.bf16.msra.mxu1 %v2763_v60  ;;  %v2835_v60 = vld [vmem:[%s3944_s1 + $0x250] ss:$8 sps:$4 sm:$0xff]  }
  0x68   :  { %2025 = vmatpush1.bf16.msra.mxu0 %v2766_v61  ;;  %1814 = vmatprep.subr.bf16.mxu1 %v2771_v62  ;;  %v2838_v61 = vld [vmem:[%s3944_s1 + $0x650] ss:$8 sps:$4 sm:$0xff]   ;;  %v2843_v62 = vld [vmem:[%s3944_s1 + $0x264] ss:$8 sps:$4 sm:$0xff]  }
  0x69   :  { %2026 = vmatprep.subr.bf16.mxu0 %v2774_v63  ;;  %v2846_v63 = vld [vmem:[%s3944_s1 + $0x664] ss:$8 sps:$4 sm:$0xff]  }
  0x6b   :  { %1815 = vmatpush1.bf16.msra.mxu1 %v2769_v0  ;;  %v2841_v0 = vld [vmem:[%s3944_s1 + $0x260] ss:$8 sps:$4 sm:$0xff]  }
  0x6c   :  { %2027 = vmatpush1.bf16.msra.mxu0 %v2772_v1  ;;  %1816 = vmatprep.subr.bf16.mxu1 %v2777_v2  ;;  %v2844_v1 = vld [vmem:[%s3944_s1 + $0x660] ss:$8 sps:$4 sm:$0xff]   ;;  %v2849_v2 = vld [vmem:[%s3944_s1 + $0x274] ss:$8 sps:$4 sm:$0xff]  }
  0x6d   :  { %2028 = vmatprep.subr.bf16.mxu0 %v2780_v3  ;;  %v2852_v3 = vld [vmem:[%s3944_s1 + $0x674] ss:$8 sps:$4 sm:$0xff]  }
  0x6f   :  { %1817 = vmatpush1.bf16.msra.mxu1 %v2775_v4  ;;  %v2847_v4 = vld [vmem:[%s3944_s1 + $0x270] ss:$8 sps:$4 sm:$0xff]  }
  0x70   :  { %2029 = vmatpush1.bf16.msra.mxu0 %v2778_v5  ;;  %1818 = vmatprep.subr.bf16.mxu1 %v2783_v6  ;;  %v2850_v5 = vld [vmem:[%s3944_s1 + $0x670] ss:$8 sps:$4 sm:$0xff]   ;;  %v2855_v6 = vld [vmem:[%s3944_s1 + $0x284] ss:$8 sps:$4 sm:$0xff]  }
  0x71   :  { %2030 = vmatprep.subr.bf16.mxu0 %v2786_v7  ;;  %v2858_v7 = vld [vmem:[%s3944_s1 + $0x684] ss:$8 sps:$4 sm:$0xff]  }
  0x73   :  { %1819 = vmatpush1.bf16.msra.mxu1 %v2781_v8  ;;  %v2853_v8 = vld [vmem:[%s3944_s1 + $0x280] ss:$8 sps:$4 sm:$0xff]  }
  0x74   :  { %2031 = vmatpush1.bf16.msra.mxu0 %v2784_v9  ;;  %1820 = vmatprep.subr.bf16.mxu1 %v2789_v10  ;;  %v2856_v9 = vld [vmem:[%s3944_s1 + $0x680] ss:$8 sps:$4 sm:$0xff]   ;;  %v2861_v10 = vld [vmem:[%s3944_s1 + $0x294] ss:$8 sps:$4 sm:$0xff]  }
  0x75   :  { %2032 = vmatprep.subr.bf16.mxu0 %v2792_v11  ;;  %v2864_v11 = vld [vmem:[%s3944_s1 + $0x694] ss:$8 sps:$4 sm:$0xff]  }
  0x77   :  { %1821 = vmatpush1.bf16.msra.mxu1 %v2787_v12  ;;  %v2859_v12 = vld [vmem:[%s3944_s1 + $0x290] ss:$8 sps:$4 sm:$0xff]  }
  0x78   :  { %2033 = vmatpush1.bf16.msra.mxu0 %v2790_v13  ;;  %1822 = vmatprep.subr.bf16.mxu1 %v2795_v14  ;;  %v2862_v13 = vld [vmem:[%s3944_s1 + $0x690] ss:$8 sps:$4 sm:$0xff]   ;;  %v2867_v14 = vld [vmem:[%s3944_s1 + $0x2a4] ss:$8 sps:$4 sm:$0xff]  }
  0x79   :  { %2034 = vmatprep.subr.bf16.mxu0 %v2798_v15  ;;  %v2870_v15 = vld [vmem:[%s3944_s1 + $0x6a4] ss:$8 sps:$4 sm:$0xff]  }
  0x7b   :  { %1823 = vmatpush1.bf16.msra.mxu1 %v2793_v16  ;;  %v2865_v16 = vld [vmem:[%s3944_s1 + $0x2a0] ss:$8 sps:$4 sm:$0xff]  }
  0x7c   :  { %2035 = vmatpush1.bf16.msra.mxu0 %v2796_v17  ;;  %1824 = vmatprep.subr.bf16.mxu1 %v2801_v18  ;;  %v2868_v17 = vld [vmem:[%s3944_s1 + $0x6a0] ss:$8 sps:$4 sm:$0xff]   ;;  %v2873_v18 = vld [vmem:[%s3944_s1 + $0x2b4] ss:$8 sps:$4 sm:$0xff]  }
  0x7d   :  { %2036 = vmatprep.subr.bf16.mxu0 %v2804_v19  ;;  %v2876_v19 = vld [vmem:[%s3944_s1 + $0x6b4] ss:$8 sps:$4 sm:$0xff]  }
  0x7f   :  { %1825 = vmatpush1.bf16.msra.mxu1 %v2799_v20  ;;  %v2871_v20 = vld [vmem:[%s3944_s1 + $0x2b0] ss:$8 sps:$4 sm:$0xff]  }
  0x80   :  { %2037 = vmatpush1.bf16.msra.mxu0 %v2802_v21  ;;  %1847 = vmatprep.subr.bf16.mxu1 %v2807_v22  ;;  %v2874_v21 = vld [vmem:[%s3944_s1 + $0x6b0] ss:$8 sps:$4 sm:$0xff]   ;;  %v2879_v22 = vld [vmem:[%s3944_s1 + $0x2c4] ss:$8 sps:$4 sm:$0xff]  }
  0x81   :  { %2059 = vmatprep.subr.bf16.mxu0 %v2810_v23  ;;  %v2882_v23 = vld [vmem:[%s3944_s1 + $0x6c4] ss:$8 sps:$4 sm:$0xff]  }
  0x82   :  { %1827 = vmatmul.mubr.bf16.vlgmr.msra.gmra.mrb[0].mxu1 %v2262_v27  ;;  %v2888_v27 = vld [vmem:[%s3944_s1 + $0x6d4] ss:$8 sps:$4 sm:$0xff]  }
  0x83   :  { %2039 = vmatmul.mubr.bf16.vlgmr.msra.gmra.mrb[0].mxu0 %v2270_v28  ;;  %1848 = vmatpush1.bf16.msra.mxu1 %v2805_v24  ;;  %v2877_v24 = vld [vmem:[%s3944_s1 + $0x2c0] ss:$8 sps:$4 sm:$0xff]   ;;  %v2883_v28 = vld [vmem:[%s3944_s1 + $0x2d0] ss:$8 sps:$4 sm:$0xff]  }
  0x84   :  { %2060 = vmatpush1.bf16.msra.mxu0 %v2808_v25  ;;  %1849 = vmatprep.subr.bf16.mxu1 %v2813_v30  ;;  %v2880_v25 = vld [vmem:[%s3944_s1 + $0x6c0] ss:$8 sps:$4 sm:$0xff]   ;;  %v2891_v30 = vld [vmem:[%s3944_s1 + $0x2e4] ss:$8 sps:$4 sm:$0xff]  }
  0x85   :  { %2061 = vmatprep.subr.bf16.mxu0 %v2816_v31  ;;  %1836 = vmatprep.mubr.bf16.mxu1 %v2279_v34  ;;  %v2894_v31 = vld [vmem:[%s3944_s1 + $0x6e4] ss:$8 sps:$4 sm:$0xff]   ;;  %v2897_v34 = vld [vmem:[%s3944_s1 + $0x2f4] ss:$8 sps:$4 sm:$0xff]  }
  0x86   :  { %2048 = vmatprep.mubr.bf16.mxu0 %v2287_v35  ;;  %v2900_v35 = vld [vmem:[%s3944_s1 + $0x6f4] ss:$8 sps:$4 sm:$0xff]  }
  0x87   :  { %1850 = vmatpush1.bf16.msra.mxu1 %v2811_v36  ;;  %v2895_v36 = vld [vmem:[%s3944_s1 + $0x2f0] ss:$8 sps:$4 sm:$0xff]  }
  0x88   :  { %2062 = vmatpush1.bf16.msra.mxu0 %v2814_v37  ;;  %1851 = vmatprep.subr.bf16.mxu1 %v2819_v38  ;;  %v2898_v37 = vld [vmem:[%s3944_s1 + $0x6f0] ss:$8 sps:$4 sm:$0xff]   ;;  %v2903_v38 = vld [vmem:[%s3944_s1 + $0x304] ss:$8 sps:$4 sm:$0xff]  }
  0x89   :  { %2063 = vmatprep.subr.bf16.mxu0 %v2822_v39  ;;  %v2906_v39 = vld [vmem:[%s3944_s1 + $0x704] ss:$8 sps:$4 sm:$0xff]  }
  0x8a   :  { %1837 = vmatmul.mubr.bf16.gmra.mrb[4].mxu1 %v2278_v43  ;;  %v2272_v43 = vcombine.low %v3514_v46, %v3519_v47  ;;  %v2909_v46 = vld [vmem:[%s3944_s1 + $0x314] ss:$8 sps:$4 sm:$0xff]  }
  0x8b   :  { %2049 = vmatmul.mubr.bf16.gmra.mrb[4].mxu0 %v2286_v44  ;;  %1852 = vmatpush1.bf16.msra.mxu1 %v2817_v40  ;;  %v31_v40 = vld [vmem:[%s3945_s0 + $0x90] sm:$0xff] }
  0x8c   :  { %2064 = vmatpush1.bf16.msra.mxu0 %v2820_v41  ;;  %1853 = vmatprep.subr.bf16.mxu1 %v2825_v48  ;;  %v2264_v41 = vcombine.low %v3504_v42, %v3509_v45  ;;  %v39_v44 = vld [vmem:[%s3945_s0 + $0xd0] sm:$0xff]  ;;  %v2901_v42 = vld [vmem:[%s3944_s1 + $0x300] ss:$8 sps:$4 sm:$0xff]  }
  0x8d   :  { %2065 = vmatprep.subr.bf16.mxu0 %v2828_v49  ;;  %1879 = vmatprep.mubr.bf16.mxu1 %v2265_v50  ;;  %v35_v48 = vld [vmem:[%s3945_s0 + $0xb0] sm:$0xff]  ;;  %v2904_v45 = vld [vmem:[%s3944_s1 + $0x700] ss:$8 sps:$4 sm:$0xff]   ;;  %v2281_v50 = vcombine.high %v31_v40, %v39_v44 }
  0x8e   :  { %2091 = vmatprep.mubr.bf16.mxu0 %v2273_v51  ;;  %v43_v49 = vld [vmem:[%s3945_s0 + $0xf0] sm:$0xff] }
  0x8f   :  { %1854 = vmatpush1.bf16.msra.mxu1 %v2823_v52  ;;  %v2912_v47 = vld [vmem:[%s3944_s1 + $0x714] ss:$8 sps:$4 sm:$0xff]   ;;  %v2289_v51 = vcombine.high %v35_v48, %v43_v49  ;;  %v2907_v52 = vld [vmem:[%s3944_s1 + $0x310] ss:$8 sps:$4 sm:$0xff]  }
  0x90   :  { %2066 = vmatpush1.bf16.msra.mxu0 %v2826_v53  ;;  %1855 = vmatprep.subr.bf16.mxu1 %v2831_v54  ;;  %v2910_v53 = vld [vmem:[%s3944_s1 + $0x710] ss:$8 sps:$4 sm:$0xff]   ;;  %v2915_v54 = vld [vmem:[%s3944_s1 + $0x324] ss:$8 sps:$4 sm:$0xff]  }
  0x91   :  { %2067 = vmatprep.subr.bf16.mxu0 %v2834_v55  ;;  %v2918_v55 = vld [vmem:[%s3944_s1 + $0x724] ss:$8 sps:$4 sm:$0xff]  }
  0x93   :  { %1856 = vmatpush1.bf16.msra.mxu1 %v2829_v56  ;;  %v3730_v56 = vld [vmem:[%s3945_s0 + $0x18] sm:$0xff] }
  0x94   :  { %2068 = vmatpush1.bf16.msra.mxu0 %v2832_v57  ;;  %1857 = vmatprep.subr.bf16.mxu1 %v2837_v58  ;;  %v2280_v57 = vcombine.low %v31_v40, %v39_v44  ;;  %v2288_v58 = vcombine.low %v35_v48, %v43_v49  ;;  %v2973_v40 = vld [vmem:[%s3944_s1 + $0x3c0] ss:$8 sps:$4 sm:$0xff]   ;;  %v2984_v44 = vld [vmem:[%s3944_s1 + $0x7d4] ss:$8 sps:$4 sm:$0xff]   ;;  %v2979_v48 = vld [vmem:[%s3944_s1 + $0x3d0] ss:$8 sps:$4 sm:$0xff]  }
  0x95   :  { %2069 = vmatprep.subr.bf16.mxu0 %v2840_v59  ;;  %v3735_v59 = vld [vmem:[%s3945_s0 + $0x58] sm:$0xff] }
  0x96   :  { %v2982_v49 = vld [vmem:[%s3944_s1 + $0x7d0] ss:$8 sps:$4 sm:$0xff]  }
  0x97   :  { %1858 = vmatpush1.bf16.msra.mxu1 %v2835_v60  ;;  %v3740_v60 = vld [vmem:[%s3945_s0 + $0x38] sm:$0xff] }
  0x98   :  { %2070 = vmatpush1.bf16.msra.mxu0 %v2838_v61  ;;  %1859 = vmatprep.subr.bf16.mxu1 %v2843_v62  ;;  %v3745_v61 = vld [vmem:[%s3945_s0 + $0x78] sm:$0xff]  ;;  %v2913_v62 = vld [vmem:[%s3944_s1 + $0x320] ss:$8 sps:$4 sm:$0xff]  }
  0x99   :  { %2071 = vmatprep.subr.bf16.mxu0 %v2846_v63  ;;  %v2916_v63 = vld [vmem:[%s3944_s1 + $0x720] ss:$8 sps:$4 sm:$0xff]  }
  0x9b   :  { %1860 = vmatpush1.bf16.msra.mxu1 %v2841_v0  ;;  %v2921_v0 = vld [vmem:[%s3944_s1 + $0x334] ss:$8 sps:$4 sm:$0xff]  }
  0x9c   :  { %2072 = vmatpush1.bf16.msra.mxu0 %v2844_v1  ;;  %1861 = vmatprep.subr.bf16.mxu1 %v2849_v2  ;;  %v2924_v1 = vld [vmem:[%s3944_s1 + $0x734] ss:$8 sps:$4 sm:$0xff]   ;;  %v2267_v2 = vcombine.high %v3730_v56, %v3735_v59 }
  0x9d   :  { %2073 = vmatprep.subr.bf16.mxu0 %v2852_v3  ;;  %v2275_v3 = vcombine.high %v3740_v60, %v3745_v61 }
  0x9f   :  { %1862 = vmatpush1.bf16.msra.mxu1 %v2847_v4  ;;  %v2919_v4 = vld [vmem:[%s3944_s1 + $0x330] ss:$8 sps:$4 sm:$0xff]  }
  0xa0   :  { %2074 = vmatpush1.bf16.msra.mxu0 %v2850_v5  ;;  %1863 = vmatprep.subr.bf16.mxu1 %v2855_v6  ;;  %v2922_v5 = vld [vmem:[%s3944_s1 + $0x730] ss:$8 sps:$4 sm:$0xff]   ;;  %v2927_v6 = vld [vmem:[%s3944_s1 + $0x344] ss:$8 sps:$4 sm:$0xff]  }
  0xa1   :  { %2075 = vmatprep.subr.bf16.mxu0 %v2858_v7  ;;  %v2930_v7 = vld [vmem:[%s3944_s1 + $0x744] ss:$8 sps:$4 sm:$0xff]  }
  0xa3   :  { %1864 = vmatpush1.bf16.msra.mxu1 %v2853_v8  ;;  %v2925_v8 = vld [vmem:[%s3944_s1 + $0x340] ss:$8 sps:$4 sm:$0xff]  }
  0xa4   :  { %2076 = vmatpush1.bf16.msra.mxu0 %v2856_v9  ;;  %1865 = vmatprep.subr.bf16.mxu1 %v2861_v10  ;;  %v2928_v9 = vld [vmem:[%s3944_s1 + $0x740] ss:$8 sps:$4 sm:$0xff]   ;;  %v2933_v10 = vld [vmem:[%s3944_s1 + $0x354] ss:$8 sps:$4 sm:$0xff]  }
  0xa5   :  { %2077 = vmatprep.subr.bf16.mxu0 %v2864_v11  ;;  %v2936_v11 = vld [vmem:[%s3944_s1 + $0x754] ss:$8 sps:$4 sm:$0xff]  }
  0xa7   :  { %1866 = vmatpush1.bf16.msra.mxu1 %v2859_v12  ;;  %v2931_v12 = vld [vmem:[%s3944_s1 + $0x350] ss:$8 sps:$4 sm:$0xff]  }
  0xa8   :  { %2078 = vmatpush1.bf16.msra.mxu0 %v2862_v13  ;;  %1867 = vmatprep.subr.bf16.mxu1 %v2867_v14  ;;  %v2934_v13 = vld [vmem:[%s3944_s1 + $0x750] ss:$8 sps:$4 sm:$0xff]   ;;  %v2939_v14 = vld [vmem:[%s3944_s1 + $0x364] ss:$8 sps:$4 sm:$0xff]  }
  0xa9   :  { %2079 = vmatprep.subr.bf16.mxu0 %v2870_v15  ;;  %v2942_v15 = vld [vmem:[%s3944_s1 + $0x764] ss:$8 sps:$4 sm:$0xff]  }
  0xab   :  { %1868 = vmatpush1.bf16.msra.mxu1 %v2865_v16  ;;  %v2937_v16 = vld [vmem:[%s3944_s1 + $0x360] ss:$8 sps:$4 sm:$0xff]  }
  0xac   :  { %2080 = vmatpush1.bf16.msra.mxu0 %v2868_v17  ;;  %1869 = vmatprep.subr.bf16.mxu1 %v2873_v18  ;;  %v2940_v17 = vld [vmem:[%s3944_s1 + $0x760] ss:$8 sps:$4 sm:$0xff]   ;;  %v2945_v18 = vld [vmem:[%s3944_s1 + $0x374] ss:$8 sps:$4 sm:$0xff]  }
  0xad   :  { %2081 = vmatprep.subr.bf16.mxu0 %v2876_v19  ;;  %v2948_v19 = vld [vmem:[%s3944_s1 + $0x774] ss:$8 sps:$4 sm:$0xff]  }
  0xaf   :  { %1870 = vmatpush1.bf16.msra.mxu1 %v2871_v20  ;;  %v2943_v20 = vld [vmem:[%s3944_s1 + $0x370] ss:$8 sps:$4 sm:$0xff]  }
  0xb0   :  { %2082 = vmatpush1.bf16.msra.mxu0 %v2874_v21  ;;  %1871 = vmatprep.subr.bf16.mxu1 %v2879_v22  ;;  %v2946_v21 = vld [vmem:[%s3944_s1 + $0x770] ss:$8 sps:$4 sm:$0xff]   ;;  %v2951_v22 = vld [vmem:[%s3944_s1 + $0x384] ss:$8 sps:$4 sm:$0xff]  }
  0xb1   :  { %2083 = vmatprep.subr.bf16.mxu0 %v2882_v23  ;;  %v2954_v23 = vld [vmem:[%s3944_s1 + $0x784] ss:$8 sps:$4 sm:$0xff]  }
  0xb3   :  { %1872 = vmatpush1.bf16.msra.mxu1 %v2877_v24  ;;  %v2949_v24 = vld [vmem:[%s3944_s1 + $0x380] ss:$8 sps:$4 sm:$0xff]  }
  0xb4   :  { %2084 = vmatpush1.bf16.msra.mxu0 %v2880_v25  ;;  %1873 = vmatprep.subr.bf16.mxu1 %v2885_v26  ;;  %v2952_v25 = vld [vmem:[%s3944_s1 + $0x780] ss:$8 sps:$4 sm:$0xff]   ;;  %v2957_v26 = vld [vmem:[%s3944_s1 + $0x394] ss:$8 sps:$4 sm:$0xff]  }
  0xb5   :  { %2085 = vmatprep.subr.bf16.mxu0 %v2888_v27  ;;  %v2960_v27 = vld [vmem:[%s3944_s1 + $0x794] ss:$8 sps:$4 sm:$0xff]  }
  0xb7   :  { %1874 = vmatpush1.bf16.msra.mxu1 %v2883_v28  ;;  %v2955_v28 = vld [vmem:[%s3944_s1 + $0x390] ss:$8 sps:$4 sm:$0xff]  }
  0xb8   :  { %2086 = vmatpush1.bf16.msra.mxu0 %v2886_v29  ;;  %1875 = vmatprep.subr.bf16.mxu1 %v2891_v30  ;;  %v2958_v29 = vld [vmem:[%s3944_s1 + $0x790] ss:$8 sps:$4 sm:$0xff]   ;;  %v2963_v30 = vld [vmem:[%s3944_s1 + $0x3a4] ss:$8 sps:$4 sm:$0xff]  }
  0xb9   :  { %2087 = vmatprep.subr.bf16.mxu0 %v2894_v31  ;;  %v2966_v31 = vld [vmem:[%s3944_s1 + $0x7a4] ss:$8 sps:$4 sm:$0xff]  }
  0xbb   :  { %1876 = vmatpush1.bf16.msra.mxu1 %v2889_v32  ;;  %v2961_v32 = vld [vmem:[%s3944_s1 + $0x3a0] ss:$8 sps:$4 sm:$0xff]  }
  0xbc   :  { %2088 = vmatpush1.bf16.msra.mxu0 %v2892_v33  ;;  %1877 = vmatprep.subr.bf16.mxu1 %v2897_v34  ;;  %v2964_v33 = vld [vmem:[%s3944_s1 + $0x7a0] ss:$8 sps:$4 sm:$0xff]   ;;  %v2969_v34 = vld [vmem:[%s3944_s1 + $0x3b4] ss:$8 sps:$4 sm:$0xff]  }
  0xbd   :  { %2089 = vmatprep.subr.bf16.mxu0 %v2900_v35  ;;  %v2972_v35 = vld [vmem:[%s3944_s1 + $0x7b4] ss:$8 sps:$4 sm:$0xff]  }
  0xbf   :  { %1878 = vmatpush1.bf16.msra.mxu1 %v2895_v36  ;;  %v2967_v36 = vld [vmem:[%s3944_s1 + $0x3b0] ss:$8 sps:$4 sm:$0xff]  }
  0xc0   :  { %2090 = vmatpush1.bf16.msra.mxu0 %v2898_v37  ;;  %1900 = vmatprep.subr.bf16.mxu1 %v2903_v38  ;;  %v2970_v37 = vld [vmem:[%s3944_s1 + $0x7b0] ss:$8 sps:$4 sm:$0xff]   ;;  %v2975_v38 = vld [vmem:[%s3944_s1 + $0x3c4] ss:$8 sps:$4 sm:$0xff]  }
  0xc1   :  { %2112 = vmatprep.subr.bf16.mxu0 %v2906_v39  ;;  %v2978_v39 = vld [vmem:[%s3944_s1 + $0x7c4] ss:$8 sps:$4 sm:$0xff]  }
  0xc2   :  { %1880 = vmatmul.mubr.bf16.vlgmr.msra.gmra.mrb[0].mxu1 %v2264_v41  ;;  %v2976_v41 = vld [vmem:[%s3944_s1 + $0x7c0] ss:$8 sps:$4 sm:$0xff]  }
  0xc3   :  { %2092 = vmatmul.mubr.bf16.vlgmr.msra.gmra.mrb[0].mxu0 %v2272_v43  ;;  %1901 = vmatpush1.bf16.msra.mxu1 %v2901_v42  ;;  %v2981_v43 = vld [vmem:[%s3944_s1 + $0x3d4] ss:$8 sps:$4 sm:$0xff]   ;;  %v2987_v42 = vld [vmem:[%s3944_s1 + $0x3e4] ss:$8 sps:$4 sm:$0xff]  }
  0xc4   :  { %2113 = vmatpush1.bf16.msra.mxu0 %v2904_v45  ;;  %1902 = vmatprep.subr.bf16.mxu1 %v2909_v46  ;;  %v2990_v45 = vld [vmem:[%s3944_s1 + $0x7e4] ss:$8 sps:$4 sm:$0xff]   ;;  %v2985_v46 = vld [vmem:[%s3944_s1 + $0x3e0] ss:$8 sps:$4 sm:$0xff]  }
  0xc5   :  { %2114 = vmatprep.subr.bf16.mxu0 %v2912_v47  ;;  %1889 = vmatprep.mubr.bf16.mxu1 %v2281_v50  ;;  %v2988_v47 = vld [vmem:[%s3944_s1 + $0x7e0] ss:$8 sps:$4 sm:$0xff]   ;;  %v2993_v50 = vld [vmem:[%s3944_s1 + $0x3f4] ss:$8 sps:$4 sm:$0xff]  }
  0xc6   :  { %2101 = vmatprep.mubr.bf16.mxu0 %v2289_v51  ;;  %v2996_v51 = vld [vmem:[%s3944_s1 + $0x7f4] ss:$8 sps:$4 sm:$0xff]  }
  0xc7   :  { %1903 = vmatpush1.bf16.msra.mxu1 %v2907_v52  ;;  %v2991_v52 = vld [vmem:[%s3944_s1 + $0x3f0] ss:$8 sps:$4 sm:$0xff]  }
  0xc8   :  { %2115 = vmatpush1.bf16.msra.mxu0 %v2910_v53  ;;  %1904 = vmatprep.subr.bf16.mxu1 %v2915_v54  ;;  %v2994_v53 = vld [vmem:[%s3944_s1 + $0x7f0] ss:$8 sps:$4 sm:$0xff]  }
  0xc9   :  { %2116 = vmatprep.subr.bf16.mxu0 %v2918_v55  ;;  %v32_v54 = vld [vmem:[%s3945_s0 + $0x98] sm:$0xff] }
  0xca   :  { %1890 = vmatmul.mubr.bf16.gmra.mrb[4].mxu1 %v2280_v57  ;;  %v40_v55 = vld [vmem:[%s3945_s0 + $0xd8] sm:$0xff] }
  0xcb   :  { %2102 = vmatmul.mubr.bf16.gmra.mrb[4].mxu0 %v2288_v58  ;;  %1905 = vmatpush1.bf16.msra.mxu1 %v2913_v62  ;;  %v36_v57 = vld [vmem:[%s3945_s0 + $0xb8] sm:$0xff]  ;;  %v2266_v62 = vcombine.low %v3730_v56, %v3735_v59 }
  0xcc   :  { %2117 = vmatpush1.bf16.msra.mxu0 %v2916_v63  ;;  %1906 = vmatprep.subr.bf16.mxu1 %v2921_v0  ;;  %v44_v58 = vld [vmem:[%s3945_s0 + $0xf8] sm:$0xff]  ;;  %v2274_v63 = vcombine.low %v3740_v60, %v3745_v61  ;;  %v2283_v0 = vcombine.high %v32_v54, %v40_v55 }
  0xcd   :  { %2118 = vmatprep.subr.bf16.mxu0 %v2924_v1  ;;  %1932 = vmatprep.mubr.bf16.mxu1 %v2267_v2  ;;  %v2291_v1 = vcombine.high %v36_v57, %v44_v58  ;;  %v2282_v2 = vcombine.low %v32_v54, %v40_v55 }
  0xce   :  { %2144 = vmatprep.mubr.bf16.mxu0 %v2275_v3  ;;  %v2290_v3 = vcombine.low %v36_v57, %v44_v58 }
  0xcf   :  { %1907 = vmatpush1.bf16.msra.mxu1 %v2919_v4 }
  0xd0   :  { %2119 = vmatpush1.bf16.msra.mxu0 %v2922_v5  ;;  %1908 = vmatprep.subr.bf16.mxu1 %v2927_v6 }
  0xd1   :  { %2120 = vmatprep.subr.bf16.mxu0 %v2930_v7 }
  0xd3   :  { %1909 = vmatpush1.bf16.msra.mxu1 %v2925_v8 }
  0xd4   :  { %2121 = vmatpush1.bf16.msra.mxu0 %v2928_v9  ;;  %1910 = vmatprep.subr.bf16.mxu1 %v2933_v10 }
  0xd5   :  { %2122 = vmatprep.subr.bf16.mxu0 %v2936_v11 }
  0xd7   :  { %1911 = vmatpush1.bf16.msra.mxu1 %v2931_v12 }
  0xd8   :  { %2123 = vmatpush1.bf16.msra.mxu0 %v2934_v13  ;;  %1912 = vmatprep.subr.bf16.mxu1 %v2939_v14 }
  0xd9   :  { %2124 = vmatprep.subr.bf16.mxu0 %v2942_v15 }
  0xdb   :  { %1913 = vmatpush1.bf16.msra.mxu1 %v2937_v16 }
  0xdc   :  { %2125 = vmatpush1.bf16.msra.mxu0 %v2940_v17  ;;  %1914 = vmatprep.subr.bf16.mxu1 %v2945_v18 }
  0xdd   :  { %2126 = vmatprep.subr.bf16.mxu0 %v2948_v19 }
  0xdf   :  { %1915 = vmatpush1.bf16.msra.mxu1 %v2943_v20 }
  0xe0   :  { %2127 = vmatpush1.bf16.msra.mxu0 %v2946_v21  ;;  %1916 = vmatprep.subr.bf16.mxu1 %v2951_v22 }
  0xe1   :  { %2128 = vmatprep.subr.bf16.mxu0 %v2954_v23 }
  0xe3   :  { %1917 = vmatpush1.bf16.msra.mxu1 %v2949_v24 }
  0xe4   :  { %2129 = vmatpush1.bf16.msra.mxu0 %v2952_v25  ;;  %1918 = vmatprep.subr.bf16.mxu1 %v2957_v26 }
  0xe5   :  { %2130 = vmatprep.subr.bf16.mxu0 %v2960_v27 }
  0xe7   :  { %1919 = vmatpush1.bf16.msra.mxu1 %v2955_v28 }
  0xe8   :  { %2131 = vmatpush1.bf16.msra.mxu0 %v2958_v29  ;;  %1920 = vmatprep.subr.bf16.mxu1 %v2963_v30 }
  0xe9   :  { %2132 = vmatprep.subr.bf16.mxu0 %v2966_v31 }
  0xeb   :  { %1921 = vmatpush1.bf16.msra.mxu1 %v2961_v32 }
  0xec   :  { %2133 = vmatpush1.bf16.msra.mxu0 %v2964_v33  ;;  %1922 = vmatprep.subr.bf16.mxu1 %v2969_v34 }
  0xed   :  { %2134 = vmatprep.subr.bf16.mxu0 %v2972_v35 }
  0xef   :  { %1923 = vmatpush1.bf16.msra.mxu1 %v2967_v36 }
  0xf0   :  { %2135 = vmatpush1.bf16.msra.mxu0 %v2970_v37  ;;  %1924 = vmatprep.subr.bf16.mxu1 %v2975_v38 }
  0xf1   :  { %2136 = vmatprep.subr.bf16.mxu0 %v2978_v39 }
  0xf3   :  { %1925 = vmatpush1.bf16.msra.mxu1 %v2973_v40 }
  0xf4   :  { %2137 = vmatpush1.bf16.msra.mxu0 %v2976_v41  ;;  %1926 = vmatprep.subr.bf16.mxu1 %v2981_v43 }
  0xf5   :  { %2138 = vmatprep.subr.bf16.mxu0 %v2984_v44 }
  0xf7   :  { %1927 = vmatpush1.bf16.msra.mxu1 %v2979_v48 }
  0xf8   :  { %2139 = vmatpush1.bf16.msra.mxu0 %v2982_v49  ;;  %1928 = vmatprep.subr.bf16.mxu1 %v2987_v42 }
  0xf9   :  { %2140 = vmatprep.subr.bf16.mxu0 %v2990_v45 }
  0xfb   :  { %1929 = vmatpush1.bf16.msra.mxu1 %v2985_v46 }
  0xfc   :  { %2141 = vmatpush1.bf16.msra.mxu0 %v2988_v47  ;;  %1930 = vmatprep.subr.bf16.mxu1 %v2993_v50 }
  0xfd   :  { %2142 = vmatprep.subr.bf16.mxu0 %v2996_v51 }
  0xff   :  { %1931 = vmatpush1.bf16.msra.mxu1 %v2991_v52 }
 0x100   :  { %2143 = vmatpush1.bf16.msra.mxu0 %v2994_v53 }
 0x102   :  { %1933 = vmatmul.mubr.bf16.vlgmr.msra.gmra.mrb[0].mxu1 %v2266_v62 }
 0x103   :  { %2145 = vmatmul.mubr.bf16.vlgmr.msra.gmra.mrb[0].mxu0 %v2274_v63  ;;  %1942 = vmatprep.mubr.bf16.mxu1 %v2283_v0 }
 0x104   :  { %2154 = vmatprep.mubr.bf16.mxu0 %v2291_v1 }
 0x10a   :  { %1943 = vmatmul.mubr.bf16.gmra.mrb[4].mxu1 %v2282_v2 }
 0x10b   :  { %2155 = vmatmul.mubr.bf16.gmra.mrb[4].mxu0 %v2290_v3 }
 0x1d5   :  { %v1934_v4 = vpop.f32.mrb[0].mxu1 }
 0x1d6   :  { %v2146_v5 = vpop.f32.mrb[0].mxu0  ;;  %v1936_v7 = vpop.f32.mrb[1].mxu1 }
 0x1d7   :  { %v2557_v6 = vadd.f32 %v2146_v5, %v1934_v4  ;;  %v2148_v56 = vpop.f32.mrb[1].mxu0  ;;  %v1938_v8 = vpop.f32.mrb[2].mxu1 }
 0x1d8   :  { %v2558_v59 = vadd.f32 %v2148_v56, %v1936_v7  ;;  %v2150_v60 = vpop.f32.mrb[2].mxu0  ;;  %v1940_v9 = vpop.f32.mrb[3].mxu1 }
 0x1d9   :  { %v2559_v61 = vadd.f32 %v2150_v60, %v1938_v8  ;;  %v2152_v10 = vpop.f32.mrb[3].mxu0  ;;  %v2183_v13 = vmul.f32 %v2557_v6, %v2557_v6 }
 0x1da   :  { %v2553_v11 = vpack.c.bf16 %v2558_v59, %v2557_v6  ;;  %v2560_v12 = vadd.f32 %v2152_v10, %v1940_v9  ;;  %v2184_v16 = vmul.f32 %v2558_v59, %v2558_v59 }
 0x1db   :  { %v2165_v14 = vadd.f32 %v2559_v61, %v2557_v6  ;;  %v2185_v15 = vmul.f32 %v2559_v61, %v2559_v61 }
 0x1dc   :  { %2248 = vst [vmem:[%s3946_s2] sm:$0xff] %v2553_v11  ;;  %v2174_v17 = vadd.f32 %v2560_v12, %v2558_v59  ;;  %v2186_v18 = vmul.f32 %v2560_v12, %v2560_v12  ;;  %v2554_v19 = vpack.c.bf16 %v2560_v12, %v2559_v61 }
 0x1dd   :  { %v2191_v20 = vadd.f32 %v2185_v15, %v2183_v13  ;;  %v1944_v22 = vpop.f32.mrb[4].mxu1 }
 0x1de   :  { %v2200_v21 = vadd.f32 %v2186_v18, %v2184_v16  ;;  %2249 = vst [vmem:[%s3946_s2 + $0x8] sm:$0xff] %v2554_v19  ;;  %v2156_v23 = vpop.f32.mrb[4].mxu0  ;;  %v1946_v25 = vpop.f32.mrb[5].mxu1 }
 0x1df   :  { %v2561_v24 = vadd.f32 %v2156_v23, %v1944_v22  ;;  %v2158_v26 = vpop.f32.mrb[5].mxu0  ;;  %v1948_v28 = vpop.f32.mrb[6].mxu1 }
 0x1e0   :  { %v2562_v27 = vadd.f32 %v2158_v26, %v1946_v25  ;;  %v2160_v29 = vpop.f32.mrb[6].mxu0  ;;  %v1950_v33 = vpop.f32.mrb[7].mxu1 }
 0x1e1   :  { %v2166_v30 = vadd.f32 %v2561_v24, %v2165_v14  ;;  %v2187_v31 = vmul.f32 %v2561_v24, %v2561_v24  ;;  %v2563_v32 = vadd.f32 %v2160_v29, %v1948_v28  ;;  %v2162_v34 = vpop.f32.mrb[7].mxu0 }
 0x1e2   :  { %v2175_v35 = vadd.f32 %v2562_v27, %v2174_v17  ;;  %v2188_v36 = vmul.f32 %v2562_v27, %v2562_v27  ;;  %v2555_v37 = vpack.c.bf16 %v2562_v27, %v2561_v24  ;;  %v2564_v38 = vadd.f32 %v2162_v34, %v1950_v33 }
 0x1e3   :  { %v2192_v39 = vadd.f32 %v2191_v20, %v2187_v31  ;;  %v2167_v40 = vadd.f32 %v2563_v32, %v2166_v30  ;;  %v2189_v41 = vmul.f32 %v2563_v32, %v2563_v32 }
 0x1e4   :  { %v2201_v43 = vadd.f32 %v2200_v21, %v2188_v36  ;;  %2250 = vst [vmem:[%s3946_s2 + $0x10] sm:$0xff] %v2555_v37  ;;  %v2176_v44 = vadd.f32 %v2564_v38, %v2175_v35  ;;  %v2190_v48 = vmul.f32 %v2564_v38, %v2564_v38  ;;  %v2556_v49 = vpack.c.bf16 %v2564_v38, %v2563_v32 }
 0x1e5   :  { %v2168_v42 = vrot.slane %v2167_v40, 4  ;;  %v2193_v45 = vadd.f32 %v2192_v39, %v2189_v41 }
 0x1e6   :  { %v2177_v46 = vrot.slane %v2176_v44, 4  ;;  %v2202_v47 = vadd.f32 %v2201_v43, %v2190_v48  ;;  %2251 = vst [vmem:[%s3946_s2 + $0x18] sm:$0xff] %v2556_v49 }
 0x1e7   :  { %v2169_v50 = vadd.f32 %v2168_v42, %v2167_v40  ;;  %v2194_v51 = vrot.slane %v2193_v45, 4 }
 0x1e8   :  { %v2178_v52 = vadd.f32 %v2177_v46, %v2176_v44  ;;  %v2203_v53 = vrot.slane %v2202_v47, 4 }
 0x1e9   :  { %v2170_v54 = vrot.slane %v2169_v50, 2  ;;  %v2195_v55 = vadd.f32 %v2194_v51, %v2193_v45 }
 0x1ea   :  { %v2179_v57 = vrot.slane %v2178_v52, 2  ;;  %v2204_v58 = vadd.f32 %v2203_v53, %v2202_v47 }
 0x1eb   :  { %v2171_v62 = vadd.f32 %v2170_v54, %v2169_v50  ;;  %v2196_v63 = vrot.slane %v2195_v55, 2 }
 0x1ec   :  { %v2180_v0 = vadd.f32 %v2179_v57, %v2178_v52  ;;  %v2205_v1 = vrot.slane %v2204_v58, 2 }
 0x1ed   :  { %v2172_v2 = vrot.slane %v2171_v62, 1  ;;  %v2197_v3 = vadd.f32 %v2196_v63, %v2195_v55 }
 0x1ee   :  { %v2181_v4 = vrot.slane %v2180_v0, 1  ;;  %v2206_v5 = vadd.f32 %v2205_v1, %v2204_v58 }
 0x1ef   :  { %v2198_v6 = vrot.slane %v2197_v3, 1  ;;  %v2173_v56 = vadd.f32 %v2172_v2, %v2171_v62 }
 0x1f0   :  { %v2207_v7 = vrot.slane %v2206_v5, 1  ;;  %v2182_v8 = vadd.f32 %v2181_v4, %v2180_v0 }
 0x1f1   :  { %v2199_v59 = vadd.f32 %v2198_v6, %v2197_v3 }
 0x1f2   :  { %v2208_v60 = vadd.f32 %v2207_v7, %v2206_v5 }
 0x1f3   :  { %v2210_v61 = vsel %vm2209_vm0, %v2173_v56, %v2199_v59 }
 0x1f4   :  { %v2211_v9 = vsel %vm2209_vm0, %v2182_v8, %v2208_v60 }
 0x1f5   :  { %v2214_v10 = vcombine.low %v2210_v61, %v2211_v9 }
 0x1f7   :  { %2548 = vst.sshfl [vmem:[%s3947_s3] sm:$0x33 pattern:$0x76325410] %v2214_v10 }

// kernel: discriminator_forward.9
= control target key start
LH: loop header
LB: loop body
LE: loop exit
PB: predicated region body
PF: predicated region fallthrough
CT: control target
= control target key end

     0   :  { %s2276_s9 = smov 0   ;;  %s2278_s10 = smov 0   ;;  %s2458_s0 = inlined_call_operand.vmem [shape: bf16[8,8192], index: 0, kind: input, shape index: {}]   ;;  %s2459_s1 = inlined_call_operand.vmem [shape: bf16[8192,128], index: 1, kind: input, shape index: {}]   ;;  %s2460_s2 = inlined_call_operand.vmem [shape: f32[8,128], index: 2, kind: output, shape index: {}]  }
   0x1   :  { %s2280_s11 = smov 0  }
   0x2 LB: > { %s24_s12 = sadd.s32 1, %s2254_s10  ;;  %p1737_p0 = scmp.ge.s32.totalorder %s2258_s11, 1  ;;  %s2258_s11 = sphi %s2280_s11, %s12_s11   ;;  %s2254_s10 = sphi %s2278_s10, %s2462_s10   ;;  %s2250_s9 = sphi %s2276_s9, %s2461_s9  }
   0x3   : > { %p25_p1 = scmp.ge.s32.totalorder %s24_s12, 4  ;;  %p156_p2 = scmp.lt.s32.totalorder %s2258_s11, 5 }
   0x5   : > { %s2464_s12 = smov (%p25_p1, %s24_s12), 0  ;;  %p157_p3 = pnand %p1737_p0, %p156_p2 }
   0x6   : > { %s1738_s13 = sshll.u32 (!%p157_p3), %s2250_s9, 4  ;;  %s1740_s14 = sshll.u32 (!%p157_p3), %s2250_s9, 8 }
   0x7   : > { %160 = sbr.rel (%p157_p3) target bundleno = 384 (0x180), region = 28  ;;  %p195_p4 = scmp.lt.s32.totalorder (!%p157_p3), %s1738_s13, 63 }
   0x8   : > { %p203_p5 = scmp.lt.s32.totalorder (!%p157_p3), %s1740_s14, 1023  ;;  %p1742_p6 = scmp.ne.s32.totalorder (!%p157_p3), %s2250_s9, 0 }
   0xe   : > { %s2466_s13 = smov (!%p195_p4, %s1738_s13), 63  ;;  %s2468_s14 = smov (!%p203_p5, %s1740_s14), 1023 }
   0xf   : > { %s1739_s15 = sshll.u32 %s2466_s13, 2  ;;  %s1741_s19 = sshll.u32 %s2468_s14, 2  ;;  %v2260_v0 = vmov (!%p1742_p6), 0.0  }
  0x10   : > { %s2301_s18 = scalar_lea.vmem %s2458_s0, %s1739_s15  ;;  %s2306_s22 = scalar_lea.vmem %s2459_s1, %s1741_s19  ;;  %223 = vst [vmem:[#allocation2] sm:$0xff] (!%p1742_p6), %v2260_v0 }
  0x11   : > { %222 = sbr.rel (%p1742_p6) target bundleno = 24 (0x18), region = 32 }
  0x18 PF: > { %v2092_v1 = vld [vmem:[%s2306_s22 + $0x40] sm:$0xff]   ;;  %v2096_v5 = vld [vmem:[%s2306_s22 + $0x48] sm:$0xff]   ;;  %v2100_v9 = vld [vmem:[%s2306_s22 + $0x50] sm:$0xff]   ;;  %p1887_p7 = scmp.ne.s32.totalorder %s2250_s9, 3 }
  0x19   : > { %v2093_v2 = vld [vmem:[%s2306_s22 + $0xc0] sm:$0xff]   ;;  %1891 = vmatprep.subr.bf16.mxu0 %v2092_v1  ;;  %v2097_v6 = vld [vmem:[%s2306_s22 + $0xc8] sm:$0xff]   ;;  %v2101_v10 = vld [vmem:[%s2306_s22 + $0xd0] sm:$0xff]  }
  0x1a   : > { %v2094_v3 = vld [vmem:[%s2306_s22] sm:$0xff]   ;;  %1913 = vmatprep.subr.bf16.mxu1 %v2093_v2  ;;  %v2098_v7 = vld [vmem:[%s2306_s22 + $0x8] sm:$0xff]   ;;  %v2102_v11 = vld [vmem:[%s2306_s22 + $0x10] sm:$0xff]  }
  0x1b   : > { %v2095_v4 = vld [vmem:[%s2306_s22 + $0x80] sm:$0xff]   ;;  %1892 = vmatpush3.bf16.msra.mxu0 %v2094_v3  ;;  %v2099_v8 = vld [vmem:[%s2306_s22 + $0x88] sm:$0xff]   ;;  %v2103_v12 = vld [vmem:[%s2306_s22 + $0x90] sm:$0xff]  }
  0x1c   : > { %1914 = vmatpush3.bf16.msra.mxu1 %v2095_v4  ;;  %1893 = vmatprep.subr.bf16.mxu0 %v2096_v5  ;;  %v2104_v13 = vld [vmem:[%s2306_s22 + $0x58] sm:$0xff]   ;;  %v2108_v17 = vld [vmem:[%s2306_s22 + $0x60] sm:$0xff]   ;;  %v2112_v21 = vld [vmem:[%s2306_s22 + $0x68] sm:$0xff]  }
  0x1d   : > { %1915 = vmatprep.subr.bf16.mxu1 %v2097_v6  ;;  %v2105_v14 = vld [vmem:[%s2306_s22 + $0xd8] sm:$0xff]   ;;  %v2109_v18 = vld [vmem:[%s2306_s22 + $0xe0] sm:$0xff]   ;;  %v2113_v22 = vld [vmem:[%s2306_s22 + $0xe8] sm:$0xff]  }
  0x1e   : > { %v2106_v15 = vld [vmem:[%s2306_s22 + $0x18] sm:$0xff]   ;;  %v2110_v19 = vld [vmem:[%s2306_s22 + $0x20] sm:$0xff]   ;;  %v2114_v23 = vld [vmem:[%s2306_s22 + $0x28] sm:$0xff]  }
  0x1f   : > { %1894 = vmatpush3.bf16.msra.mxu0 %v2098_v7  ;;  %v2107_v16 = vld [vmem:[%s2306_s22 + $0x98] sm:$0xff]   ;;  %v2111_v20 = vld [vmem:[%s2306_s22 + $0xa0] sm:$0xff]   ;;  %v2115_v24 = vld [vmem:[%s2306_s22 + $0xa8] sm:$0xff]  }
  0x20   : > { %1916 = vmatpush3.bf16.msra.mxu1 %v2099_v8  ;;  %1895 = vmatprep.subr.bf16.mxu0 %v2100_v9  ;;  %v2116_v25 = vld [vmem:[%s2306_s22 + $0x70] sm:$0xff]   ;;  %v2120_v29 = vld [vmem:[%s2306_s22 + $0x78] sm:$0xff]   ;;  %v225_v33 = vld [vmem:[%s2301_s18] sm:$0xff] }
  0x21   : > { %1917 = vmatprep.subr.bf16.mxu1 %v2101_v10  ;;  %v2117_v26 = vld [vmem:[%s2306_s22 + $0xf0] sm:$0xff]   ;;  %v2121_v30 = vld [vmem:[%s2306_s22 + $0xf8] sm:$0xff]   ;;  %v226_v34 = vld [vmem:[%s2301_s18 + $0x8] sm:$0xff]  ;;  %v1743_v35 = vcombine.low %v225_v33, %v225_v33  ;;  %v1744_v36 = vcombine.high %v225_v33, %v225_v33 }
  0x22   : > { %v2118_v27 = vld [vmem:[%s2306_s22 + $0x30] sm:$0xff]   ;;  %v2122_v31 = vld [vmem:[%s2306_s22 + $0x38] sm:$0xff]   ;;  %v1745_v37 = vcombine.low %v226_v34, %v226_v34  ;;  %v1746_v38 = vcombine.high %v226_v34, %v226_v34  ;;  %v2128_v39 = vld [vmem:[%s2306_s22 + $0x140] sm:$0xff]  }
  0x23   : > { %1896 = vmatpush3.bf16.msra.mxu0 %v2102_v11  ;;  %v2119_v28 = vld [vmem:[%s2306_s22 + $0xb0] sm:$0xff]   ;;  %v2123_v32 = vld [vmem:[%s2306_s22 + $0xb8] sm:$0xff]   ;;  %v2129_v40 = vld [vmem:[%s2306_s22 + $0x1c0] sm:$0xff]   ;;  %1345 = vmatprep.mubr.bf16.mxu0 %v1744_v36 }
  0x24   : > { %1918 = vmatpush3.bf16.msra.mxu1 %v2103_v12  ;;  %1897 = vmatprep.subr.bf16.mxu0 %v2104_v13  ;;  %v2130_v41 = vld [vmem:[%s2306_s22 + $0x100] sm:$0xff]   ;;  %v2132_v43 = vld [vmem:[%s2306_s22 + $0x148] sm:$0xff]   ;;  %v2136_v47 = vld [vmem:[%s2306_s22 + $0x150] sm:$0xff]  }
  0x25   : > { %1919 = vmatprep.subr.bf16.mxu1 %v2105_v14  ;;  %1385 = vmatprep.mubr.bf16.mxu1 %v1746_v38  ;;  %v2131_v42 = vld [vmem:[%s2306_s22 + $0x180] sm:$0xff]   ;;  %v2133_v44 = vld [vmem:[%s2306_s22 + $0x1c8] sm:$0xff]   ;;  %v2137_v48 = vld [vmem:[%s2306_s22 + $0x1d0] sm:$0xff]  }
  0x26   : > { %v2134_v45 = vld [vmem:[%s2306_s22 + $0x108] sm:$0xff]   ;;  %v2138_v49 = vld [vmem:[%s2306_s22 + $0x110] sm:$0xff]   ;;  %v2140_v51 = vld [vmem:[%s2306_s22 + $0x158] sm:$0xff]  }
  0x27   : > { %1898 = vmatpush3.bf16.msra.mxu0 %v2106_v15  ;;  %v2135_v46 = vld [vmem:[%s2306_s22 + $0x188] sm:$0xff]   ;;  %v2139_v50 = vld [vmem:[%s2306_s22 + $0x190] sm:$0xff]   ;;  %v2141_v52 = vld [vmem:[%s2306_s22 + $0x1d8] sm:$0xff]  }
  0x28   : > { %1920 = vmatpush3.bf16.msra.mxu1 %v2107_v16  ;;  %1899 = vmatprep.subr.bf16.mxu0 %v2108_v17  ;;  %v2142_v53 = vld [vmem:[%s2306_s22 + $0x118] sm:$0xff]   ;;  %v2144_v55 = vld [vmem:[%s2306_s22 + $0x160] sm:$0xff]   ;;  %v2148_v59 = vld [vmem:[%s2306_s22 + $0x168] sm:$0xff]  }
  0x29   : > { %1921 = vmatprep.subr.bf16.mxu1 %v2109_v18  ;;  %v2143_v54 = vld [vmem:[%s2306_s22 + $0x198] sm:$0xff]   ;;  %v2145_v56 = vld [vmem:[%s2306_s22 + $0x1e0] sm:$0xff]   ;;  %v2149_v60 = vld [vmem:[%s2306_s22 + $0x1e8] sm:$0xff]  }
  0x2a   : > { %v2146_v57 = vld [vmem:[%s2306_s22 + $0x120] sm:$0xff]   ;;  %v2150_v61 = vld [vmem:[%s2306_s22 + $0x128] sm:$0xff]   ;;  %v2152_v63 = vld [vmem:[%s2306_s22 + $0x170] sm:$0xff]  }
  0x2b   : > { %1900 = vmatpush3.bf16.msra.mxu0 %v2110_v19  ;;  %v2147_v58 = vld [vmem:[%s2306_s22 + $0x1a0] sm:$0xff]   ;;  %v2151_v62 = vld [vmem:[%s2306_s22 + $0x1a8] sm:$0xff]   ;;  %v2153_v0 = vld [vmem:[%s2306_s22 + $0x1f0] sm:$0xff]  }
  0x2c   : > { %1922 = vmatpush3.bf16.msra.mxu1 %v2111_v20  ;;  %1901 = vmatprep.subr.bf16.mxu0 %v2112_v21  ;;  %v2154_v1 = vld [vmem:[%s2306_s22 + $0x130] sm:$0xff]   ;;  %v2156_v3 = vld [vmem:[%s2306_s22 + $0x178] sm:$0xff]   ;;  %v2164_v13 = vld [vmem:[%s2306_s22 + $0x240] sm:$0xff]  }
  0x2d   : > { %1923 = vmatprep.subr.bf16.mxu1 %v2113_v22  ;;  %v2155_v2 = vld [vmem:[%s2306_s22 + $0x1b0] sm:$0xff]   ;;  %v2157_v4 = vld [vmem:[%s2306_s22 + $0x1f8] sm:$0xff]   ;;  %v2165_v14 = vld [vmem:[%s2306_s22 + $0x2c0] sm:$0xff]  }
  0x2e   : > { %v2158_v5 = vld [vmem:[%s2306_s22 + $0x138] sm:$0xff]   ;;  %v227_v7 = vld [vmem:[%s2301_s18 + $0x10] sm:$0xff]  ;;  %v2166_v15 = vld [vmem:[%s2306_s22 + $0x200] sm:$0xff]  }
  0x2f   : > { %1902 = vmatpush3.bf16.msra.mxu0 %v2114_v23  ;;  %v2159_v6 = vld [vmem:[%s2306_s22 + $0x1b8] sm:$0xff]   ;;  %v1747_v8 = vcombine.low %v227_v7, %v227_v7  ;;  %v1748_v9 = vcombine.high %v227_v7, %v227_v7  ;;  %v2167_v16 = vld [vmem:[%s2306_s22 + $0x280] sm:$0xff]   ;;  %v2168_v17 = vld [vmem:[%s2306_s22 + $0x248] sm:$0xff]  }
  0x30   : > { %1924 = vmatpush3.bf16.msra.mxu1 %v2115_v24  ;;  %1903 = vmatprep.subr.bf16.mxu0 %v2116_v25  ;;  %v228_v10 = vld [vmem:[%s2301_s18 + $0x18] sm:$0xff]  ;;  %v2169_v18 = vld [vmem:[%s2306_s22 + $0x2c8] sm:$0xff]   ;;  %v2172_v21 = vld [vmem:[%s2306_s22 + $0x250] sm:$0xff]  }
  0x31   : > { %1925 = vmatprep.subr.bf16.mxu1 %v2117_v26  ;;  %v1749_v11 = vcombine.low %v228_v10, %v228_v10  ;;  %v1750_v12 = vcombine.high %v228_v10, %v228_v10  ;;  %v2170_v19 = vld [vmem:[%s2306_s22 + $0x208] sm:$0xff]   ;;  %v2173_v22 = vld [vmem:[%s2306_s22 + $0x2d0] sm:$0xff]   ;;  %v2176_v25 = vld [vmem:[%s2306_s22 + $0x258] sm:$0xff]  }
  0x32   : > { %v2171_v20 = vld [vmem:[%s2306_s22 + $0x288] sm:$0xff]   ;;  %v2174_v23 = vld [vmem:[%s2306_s22 + $0x210] sm:$0xff]   ;;  %v2177_v26 = vld [vmem:[%s2306_s22 + $0x2d8] sm:$0xff]  }
  0x33   : > { %1904 = vmatpush3.bf16.msra.mxu0 %v2118_v27  ;;  %v2175_v24 = vld [vmem:[%s2306_s22 + $0x290] sm:$0xff]   ;;  %v2178_v27 = vld [vmem:[%s2306_s22 + $0x218] sm:$0xff]   ;;  %v2184_v33 = vld [vmem:[%s2306_s22 + $0x268] sm:$0xff]  }
  0x34   : > { %1926 = vmatpush3.bf16.msra.mxu1 %v2119_v28  ;;  %1905 = vmatprep.subr.bf16.mxu0 %v2120_v29  ;;  %v2179_v28 = vld [vmem:[%s2306_s22 + $0x298] sm:$0xff]   ;;  %v2180_v29 = vld [vmem:[%s2306_s22 + $0x260] sm:$0xff]   ;;  %v2185_v34 = vld [vmem:[%s2306_s22 + $0x2e8] sm:$0xff]  }
  0x35   : > { %1927 = vmatprep.subr.bf16.mxu1 %v2121_v30  ;;  %v2181_v30 = vld [vmem:[%s2306_s22 + $0x2e0] sm:$0xff]   ;;  %v2187_v36 = vld [vmem:[%s2306_s22 + $0x2a8] sm:$0xff]   ;;  %v2189_v38 = vld [vmem:[%s2306_s22 + $0x2f0] sm:$0xff]  }
  0x36   : > { %v2220_v7 = vld [vmem:[%s2306_s22 + $0x368] sm:$0xff]  }
  0x37   : > { %1906 = vmatpush3.bf16.msra.mxu0 %v2122_v31  ;;  %v2182_v31 = vld [vmem:[%s2306_s22 + $0x220] sm:$0xff]   ;;  %v2223_v10 = vld [vmem:[%s2306_s22 + $0x3a8] sm:$0xff]  }
  0x38   : > { %1928 = vmatpush3.bf16.msra.mxu1 %v2123_v32  ;;  %1935 = vmatprep.subr.bf16.mxu0 %v2128_v39  ;;  %v2183_v32 = vld [vmem:[%s2306_s22 + $0x2a0] sm:$0xff]   ;;  %v2190_v39 = vld [vmem:[%s2306_s22 + $0x230] sm:$0xff]  }
  0x39   : > { %1957 = vmatprep.subr.bf16.mxu1 %v2129_v40  ;;  %v2191_v40 = vld [vmem:[%s2306_s22 + $0x2b0] sm:$0xff]  }
  0x3a   : > { %1346 = vmatmul.mubr.bf16.vlgmr.msra.gmra.mrb[0].mxu0 %v1743_v35  ;;  %v2186_v35 = vld [vmem:[%s2306_s22 + $0x228] sm:$0xff]  }
  0x3b   : > { %1386 = vmatmul.mubr.bf16.vlgmr.msra.gmra.mrb[0].mxu1 %v1745_v37  ;;  %1936 = vmatpush3.bf16.msra.mxu0 %v2130_v41  ;;  %v2188_v37 = vld [vmem:[%s2306_s22 + $0x270] sm:$0xff]   ;;  %v2192_v41 = vld [vmem:[%s2306_s22 + $0x278] sm:$0xff]  }
  0x3c   : > { %1958 = vmatpush3.bf16.msra.mxu1 %v2131_v42  ;;  %1937 = vmatprep.subr.bf16.mxu0 %v2132_v43  ;;  %v2193_v42 = vld [vmem:[%s2306_s22 + $0x2f8] sm:$0xff]  }
  0x3d   : > { %1959 = vmatprep.subr.bf16.mxu1 %v2133_v44  ;;  %1425 = vmatprep.mubr.bf16.mxu0 %v1748_v9  ;;  %v2194_v43 = vld [vmem:[%s2306_s22 + $0x238] sm:$0xff]   ;;  %v2222_v9 = vld [vmem:[%s2306_s22 + $0x328] sm:$0xff]  }
  0x3e   : > { %1465 = vmatprep.mubr.bf16.mxu1 %v1750_v12  ;;  %v2195_v44 = vld [vmem:[%s2306_s22 + $0x2b8] sm:$0xff]   ;;  %v2225_v12 = vld [vmem:[%s2306_s22 + $0x3f0] sm:$0xff]  }
  0x3f   : > { %1938 = vmatpush3.bf16.msra.mxu0 %v2134_v45  ;;  %v229_v45 = vld [vmem:[%s2301_s18 + $0x20] sm:$0xff] }
  0x40   : > { %1960 = vmatpush3.bf16.msra.mxu1 %v2135_v46  ;;  %1939 = vmatprep.subr.bf16.mxu0 %v2136_v47  ;;  %v230_v46 = vld [vmem:[%s2301_s18 + $0x28] sm:$0xff]  ;;  %v1751_v47 = vcombine.low %v229_v45, %v229_v45 }
  0x41   : > { %1961 = vmatprep.subr.bf16.mxu1 %v2137_v48  ;;  %v1752_v48 = vcombine.high %v229_v45, %v229_v45 }
  0x43   : > { %1940 = vmatpush3.bf16.msra.mxu0 %v2138_v49  ;;  %v1753_v49 = vcombine.low %v230_v46, %v230_v46 }
  0x44   : > { %1962 = vmatpush3.bf16.msra.mxu1 %v2139_v50  ;;  %1941 = vmatprep.subr.bf16.mxu0 %v2140_v51  ;;  %v1754_v50 = vcombine.high %v230_v46, %v230_v46  ;;  %v2200_v51 = vld [vmem:[%s2306_s22 + $0x340] sm:$0xff]  }
  0x45   : > { %1963 = vmatprep.subr.bf16.mxu1 %v2141_v52  ;;  %v2201_v52 = vld [vmem:[%s2306_s22 + $0x3c0] sm:$0xff]  }
  0x47   : > { %1942 = vmatpush3.bf16.msra.mxu0 %v2142_v53  ;;  %v2202_v53 = vld [vmem:[%s2306_s22 + $0x300] sm:$0xff]  }
  0x48   : > { %1964 = vmatpush3.bf16.msra.mxu1 %v2143_v54  ;;  %1943 = vmatprep.subr.bf16.mxu0 %v2144_v55  ;;  %v2203_v54 = vld [vmem:[%s2306_s22 + $0x380] sm:$0xff]   ;;  %v2204_v55 = vld [vmem:[%s2306_s22 + $0x348] sm:$0xff]  }
  0x49   : > { %1965 = vmatprep.subr.bf16.mxu1 %v2145_v56  ;;  %v2205_v56 = vld [vmem:[%s2306_s22 + $0x3c8] sm:$0xff]  }
  0x4b   : > { %1944 = vmatpush3.bf16.msra.mxu0 %v2146_v57  ;;  %v2206_v57 = vld [vmem:[%s2306_s22 + $0x308] sm:$0xff]  }
  0x4c   : > { %1966 = vmatpush3.bf16.msra.mxu1 %v2147_v58  ;;  %1945 = vmatprep.subr.bf16.mxu0 %v2148_v59  ;;  %v2207_v58 = vld [vmem:[%s2306_s22 + $0x388] sm:$0xff]   ;;  %v2208_v59 = vld [vmem:[%s2306_s22 + $0x350] sm:$0xff]  }
  0x4d   : > { %1967 = vmatprep.subr.bf16.mxu1 %v2149_v60  ;;  %v2209_v60 = vld [vmem:[%s2306_s22 + $0x3d0] sm:$0xff]  }
  0x4f   : > { %1946 = vmatpush3.bf16.msra.mxu0 %v2150_v61  ;;  %v2210_v61 = vld [vmem:[%s2306_s22 + $0x310] sm:$0xff]  }
  0x50   : > { %1968 = vmatpush3.bf16.msra.mxu1 %v2151_v62  ;;  %1947 = vmatprep.subr.bf16.mxu0 %v2152_v63  ;;  %v2211_v62 = vld [vmem:[%s2306_s22 + $0x390] sm:$0xff]   ;;  %v2212_v63 = vld [vmem:[%s2306_s22 + $0x358] sm:$0xff]  }
  0x51   : > { %1969 = vmatprep.subr.bf16.mxu1 %v2153_v0  ;;  %v2213_v0 = vld [vmem:[%s2306_s22 + $0x3d8] sm:$0xff]  }
  0x53   : > { %1948 = vmatpush3.bf16.msra.mxu0 %v2154_v1  ;;  %v2214_v1 = vld [vmem:[%s2306_s22 + $0x318] sm:$0xff]  }
  0x54   : > { %1970 = vmatpush3.bf16.msra.mxu1 %v2155_v2  ;;  %1949 = vmatprep.subr.bf16.mxu0 %v2156_v3  ;;  %v2215_v2 = vld [vmem:[%s2306_s22 + $0x398] sm:$0xff]   ;;  %v2216_v3 = vld [vmem:[%s2306_s22 + $0x360] sm:$0xff]  }
  0x55   : > { %1971 = vmatprep.subr.bf16.mxu1 %v2157_v4  ;;  %v2217_v4 = vld [vmem:[%s2306_s22 + $0x3e0] sm:$0xff]  }
  0x57   : > { %1950 = vmatpush3.bf16.msra.mxu0 %v2158_v5  ;;  %v2218_v5 = vld [vmem:[%s2306_s22 + $0x320] sm:$0xff]  }
  0x58   : > { %1972 = vmatpush3.bf16.msra.mxu1 %v2159_v6  ;;  %1979 = vmatprep.subr.bf16.mxu0 %v2164_v13  ;;  %v2219_v6 = vld [vmem:[%s2306_s22 + $0x3a0] sm:$0xff]   ;;  %v2226_v13 = vld [vmem:[%s2306_s22 + $0x330] sm:$0xff]  }
  0x59   : > { %2001 = vmatprep.subr.bf16.mxu1 %v2165_v14  ;;  %v2227_v14 = vld [vmem:[%s2306_s22 + $0x3b0] sm:$0xff]  }
  0x5a   : > { %1426 = vmatmul.mubr.bf16.vlgmr.msra.gmra.mrb[4].mxu0 %v1747_v8  ;;  %v2221_v8 = vld [vmem:[%s2306_s22 + $0x3e8] sm:$0xff]  }
  0x5b   : > { %1466 = vmatmul.mubr.bf16.vlgmr.msra.gmra.mrb[4].mxu1 %v1749_v11  ;;  %1980 = vmatpush3.bf16.msra.mxu0 %v2166_v15  ;;  %v2224_v11 = vld [vmem:[%s2306_s22 + $0x370] sm:$0xff]   ;;  %v2228_v15 = vld [vmem:[%s2306_s22 + $0x378] sm:$0xff]  }
  0x5c   : > { %2002 = vmatpush3.bf16.msra.mxu1 %v2167_v16  ;;  %1981 = vmatprep.subr.bf16.mxu0 %v2168_v17  ;;  %v2229_v16 = vld [vmem:[%s2306_s22 + $0x3f8] sm:$0xff]  }
  0x5d   : > { %2003 = vmatprep.subr.bf16.mxu1 %v2169_v18  ;;  %1505 = vmatprep.mubr.bf16.mxu0 %v1752_v48  ;;  %v2230_v17 = vld [vmem:[%s2306_s22 + $0x338] sm:$0xff]  }
  0x5e   : > { %1545 = vmatprep.mubr.bf16.mxu1 %v1754_v50  ;;  %v2231_v18 = vld [vmem:[%s2306_s22 + $0x3b8] sm:$0xff]  }
  0x5f   : > { %1982 = vmatpush3.bf16.msra.mxu0 %v2170_v19  ;;  %v231_v19 = vld [vmem:[%s2301_s18 + $0x30] sm:$0xff] }
  0x60   : > { %2004 = vmatpush3.bf16.msra.mxu1 %v2171_v20  ;;  %1983 = vmatprep.subr.bf16.mxu0 %v2172_v21  ;;  %v232_v20 = vld [vmem:[%s2301_s18 + $0x38] sm:$0xff]  ;;  %v1755_v21 = vcombine.low %v231_v19, %v231_v19 }
  0x61   : > { %2005 = vmatprep.subr.bf16.mxu1 %v2173_v22  ;;  %v1756_v22 = vcombine.high %v231_v19, %v231_v19 }
  0x63   : > { %1984 = vmatpush3.bf16.msra.mxu0 %v2174_v23  ;;  %v1757_v23 = vcombine.low %v232_v20, %v232_v20 }
  0x64   : > { %2006 = vmatpush3.bf16.msra.mxu1 %v2175_v24  ;;  %1985 = vmatprep.subr.bf16.mxu0 %v2176_v25  ;;  %v1758_v24 = vcombine.high %v232_v20, %v232_v20 }
  0x65   : > { %2007 = vmatprep.subr.bf16.mxu1 %v2177_v26 }
  0x67   : > { %1986 = vmatpush3.bf16.msra.mxu0 %v2178_v27 }
  0x68   : > { %2008 = vmatpush3.bf16.msra.mxu1 %v2179_v28  ;;  %1987 = vmatprep.subr.bf16.mxu0 %v2180_v29 }
  0x69   : > { %2009 = vmatprep.subr.bf16.mxu1 %v2181_v30 }
  0x6b   : > { %1988 = vmatpush3.bf16.msra.mxu0 %v2182_v31 }
  0x6c   : > { %2010 = vmatpush3.bf16.msra.mxu1 %v2183_v32  ;;  %1989 = vmatprep.subr.bf16.mxu0 %v2184_v33 }
  0x6d   : > { %2011 = vmatprep.subr.bf16.mxu1 %v2185_v34 }
  0x6f   : > { %1990 = vmatpush3.bf16.msra.mxu0 %v2186_v35 }
  0x70   : > { %2012 = vmatpush3.bf16.msra.mxu1 %v2187_v36  ;;  %1991 = vmatprep.subr.bf16.mxu0 %v2188_v37 }
  0x71   : > { %2013 = vmatprep.subr.bf16.mxu1 %v2189_v38 }
  0x73   : > { %1992 = vmatpush3.bf16.msra.mxu0 %v2190_v39 }
  0x74   : > { %2014 = vmatpush3.bf16.msra.mxu1 %v2191_v40  ;;  %1993 = vmatprep.subr.bf16.mxu0 %v2192_v41 }
  0x75   : > { %2015 = vmatprep.subr.bf16.mxu1 %v2193_v42 }
  0x77   : > { %1994 = vmatpush3.bf16.msra.mxu0 %v2194_v43 }
  0x78   : > { %2016 = vmatpush3.bf16.msra.mxu1 %v2195_v44  ;;  %2023 = vmatprep.subr.bf16.mxu0 %v2200_v51 }
  0x79   : > { %2045 = vmatprep.subr.bf16.mxu1 %v2201_v52 }
  0x7a   : > { %1506 = vmatmul.mubr.bf16.vlgmr.msra.gmra.mrb[8].mxu0 %v1751_v47 }
  0x7b   : > { %1546 = vmatmul.mubr.bf16.vlgmr.msra.gmra.mrb[8].mxu1 %v1753_v49  ;;  %2024 = vmatpush3.bf16.msra.mxu0 %v2202_v53 }
  0x7c   : > { %2046 = vmatpush3.bf16.msra.mxu1 %v2203_v54  ;;  %2025 = vmatprep.subr.bf16.mxu0 %v2204_v55 }
  0x7d   : > { %2047 = vmatprep.subr.bf16.mxu1 %v2205_v56  ;;  %1585 = vmatprep.mubr.bf16.mxu0 %v1756_v22 }
  0x7e   : > { %1625 = vmatprep.mubr.bf16.mxu1 %v1758_v24 }
  0x7f   : > { %2026 = vmatpush3.bf16.msra.mxu0 %v2206_v57 }
  0x80   : > { %2048 = vmatpush3.bf16.msra.mxu1 %v2207_v58  ;;  %2027 = vmatprep.subr.bf16.mxu0 %v2208_v59 }
  0x81   : > { %2049 = vmatprep.subr.bf16.mxu1 %v2209_v60 }
  0x83   : > { %2028 = vmatpush3.bf16.msra.mxu0 %v2210_v61 }
  0x84   : > { %2050 = vmatpush3.bf16.msra.mxu1 %v2211_v62  ;;  %2029 = vmatprep.subr.bf16.mxu0 %v2212_v63 }
  0x85   : > { %2051 = vmatprep.subr.bf16.mxu1 %v2213_v0 }
  0x87   : > { %2030 = vmatpush3.bf16.msra.mxu0 %v2214_v1 }
  0x88   : > { %2052 = vmatpush3.bf16.msra.mxu1 %v2215_v2  ;;  %2031 = vmatprep.subr.bf16.mxu0 %v2216_v3 }
  0x89   : > { %2053 = vmatprep.subr.bf16.mxu1 %v2217_v4 }
  0x8b   : > { %2032 = vmatpush3.bf16.msra.mxu0 %v2218_v5 }
  0x8c   : > { %2054 = vmatpush3.bf16.msra.mxu1 %v2219_v6  ;;  %2033 = vmatprep.subr.bf16.mxu0 %v2220_v7  ;;  %v224_v7 = vld [vmem:[#allocation2] sm:$0xff] }
  0x8d   : > { %2055 = vmatprep.subr.bf16.mxu1 %v2221_v8 }
  0x8f   : > { %2034 = vmatpush3.bf16.msra.mxu0 %v2222_v9 }
  0x90   : > { %2056 = vmatpush3.bf16.msra.mxu1 %v2223_v10  ;;  %2035 = vmatprep.subr.bf16.mxu0 %v2224_v11 }
  0x91   : > { %2057 = vmatprep.subr.bf16.mxu1 %v2225_v12 }
  0x93   : > { %2036 = vmatpush3.bf16.msra.mxu0 %v2226_v13 }
  0x94   : > { %2058 = vmatpush3.bf16.msra.mxu1 %v2227_v14  ;;  %2037 = vmatprep.subr.bf16.mxu0 %v2228_v15 }
  0x95   : > { %2059 = vmatprep.subr.bf16.mxu1 %v2229_v16 }
  0x97   : > { %2038 = vmatpush3.bf16.msra.mxu0 %v2230_v17 }
  0x98   : > { %2060 = vmatpush3.bf16.msra.mxu1 %v2231_v18 }
  0x9a   : > { %1586 = vmatmul.mubr.bf16.vlgmr.msra.gmra.mrb[12].mxu0 %v1755_v21 }
  0x9b   : > { %1626 = vmatmul.mubr.bf16.vlgmr.msra.gmra.mrb[12].mxu1 %v1757_v23 }
 0x10d   : > { %v1907_v25 = vpop.f32.mrb[0].mxu0 }
 0x10e   : > { %v1929_v26 = vpop.f32.mrb[0].mxu1  ;;  %v1908_v27 = vpop.f32.mrb[1].mxu0 }
 0x10f   : > { %v1930_v28 = vpop.f32.mrb[1].mxu1  ;;  %v1909_v29 = vadd.f32 %v1908_v27, %v1907_v25  ;;  %v1910_v31 = vpop.f32.mrb[2].mxu0 }
 0x110   : > { %v1931_v30 = vadd.f32 %v1930_v28, %v1929_v26  ;;  %v1932_v32 = vpop.f32.mrb[2].mxu1  ;;  %v1911_v33 = vpop.f32.mrb[3].mxu0 }
 0x111   : > { %v1933_v34 = vpop.f32.mrb[3].mxu1 }
 0x112   : > { %v1388_v35 = vadd.f32 %v1931_v30, %v1909_v29 }
 0x12d   : > { %v1951_v36 = vpop.f32.mrb[4].mxu0 }
 0x12e   : > { %v1973_v37 = vpop.f32.mrb[4].mxu1  ;;  %v1952_v38 = vpop.f32.mrb[5].mxu0 }
 0x12f   : > { %v1974_v39 = vpop.f32.mrb[5].mxu1  ;;  %v1953_v40 = vadd.f32 %v1952_v38, %v1951_v36  ;;  %v1954_v42 = vpop.f32.mrb[6].mxu0 }
 0x130   : > { %v1975_v41 = vadd.f32 %v1974_v39, %v1973_v37  ;;  %v1976_v43 = vpop.f32.mrb[6].mxu1  ;;  %v1955_v44 = vpop.f32.mrb[7].mxu0 }
 0x131   : > { %v1977_v45 = vpop.f32.mrb[7].mxu1  ;;  %v1428_v46 = vadd.f32 %v1953_v40, %v1388_v35 }
 0x133   : > { %v1468_v47 = vadd.f32 %v1975_v41, %v1428_v46 }
 0x14d   : > { %v1995_v48 = vpop.f32.mrb[8].mxu0 }
 0x14e   : > { %v2017_v49 = vpop.f32.mrb[8].mxu1  ;;  %v1996_v50 = vpop.f32.mrb[9].mxu0 }
 0x14f   : > { %v1997_v51 = vadd.f32 %v1996_v50, %v1995_v48  ;;  %v2018_v52 = vpop.f32.mrb[9].mxu1  ;;  %v1998_v53 = vpop.f32.mrb[10].mxu0 }
 0x150   : > { %v2019_v54 = vadd.f32 %v2018_v52, %v2017_v49  ;;  %v2020_v55 = vpop.f32.mrb[10].mxu1  ;;  %v1999_v56 = vpop.f32.mrb[11].mxu0 }
 0x151   : > { %v1508_v57 = vadd.f32 %v1997_v51, %v1468_v47  ;;  %v2021_v58 = vpop.f32.mrb[11].mxu1 }
 0x153   : > { %v1548_v59 = vadd.f32 %v2019_v54, %v1508_v57 }
 0x16d   : > { %v2039_v60 = vpop.f32.mrb[12].mxu0 }
 0x16e   : > { %v2061_v61 = vpop.f32.mrb[12].mxu1  ;;  %v2040_v62 = vpop.f32.mrb[13].mxu0 }
 0x16f   : > { %v2041_v63 = vadd.f32 %v2040_v62, %v2039_v60  ;;  %v2062_v0 = vpop.f32.mrb[13].mxu1  ;;  %v2042_v1 = vpop.f32.mrb[14].mxu0 }
 0x170   : > { %v2063_v2 = vadd.f32 %v2062_v0, %v2061_v61  ;;  %v2064_v3 = vpop.f32.mrb[14].mxu1  ;;  %v2043_v4 = vpop.f32.mrb[15].mxu0 }
 0x171   : > { %v1588_v5 = vadd.f32 %v2041_v63, %v1548_v59  ;;  %v2065_v6 = vpop.f32.mrb[15].mxu1  ;;  %1638 = sbr.rel (%p1887_p7) target bundleno = 384 (0x180), region = 36 }
 0x173   : > { %v1628_v8 = vadd.f32 %v2063_v2, %v1588_v5 }
 0x175   : > { %v1633_v9 = vadd.f32 %v1628_v8, %v224_v7 }
 0x177   : > { %1634 = vst [vmem:[#allocation2] sm:$0xff] %v1633_v9 }
 0x17e   : > { %v1639_v10 = vld [vmem:[#allocation2] sm:$0xff] }
 0x17f   : > { %1640 = vst [vmem:[%s2460_s2] sm:$0xff] %v1639_v10 }
 0x180 PF: > { %s12_s11 = sadd.s32 1, %s2258_s11   ;;  %s2461_s9 = smov %s2254_s10 }
 0x181   : > { %p9_p8 = scmp.ge.s32.totalorder %s12_s11, 6   ;;  %s2462_s10 = smov %s2464_s12 }
 0x183   :  { %11 = sbr.rel (!%p9_p8) target bundleno = 2 (0x2), region = 69 }

// kernel: discriminator_forward.8
= control target key start
LH: loop header
LB: loop body
LE: loop exit
PB: predicated region body
PF: predicated region fallthrough
CT: control target
= control target key end

     0   :  { %s5758_s12 = smov 0   ;;  %s5760_s13 = smov 0   ;;  %s6480_s0 = inlined_call_operand.vmem [shape: bf16[8,4096], index: 0, kind: input, shape index: {}]   ;;  %s6481_s1 = inlined_call_operand.vmem [shape: bf16[4096,512], index: 1, kind: input, shape index: {}]   ;;  %s6482_s2 = inlined_call_operand.vmem [shape: bf16[8,512], index: 2, kind: output, shape index: {0}]   ;;  %s6483_s3 = inlined_call_operand.vmem [shape: f32[1,2,512], index: 3, kind: output, shape index: {1}]  }
   0x1   :  { %s5762_s14 = smov 0  }
   0x2 LB: > { %s26_s15 = sadd.s32 1, %s5730_s13  ;;  %p4355_p0 = scmp.ge.s32.totalorder %s5734_s14, 1  ;;  %s5734_s14 = sphi %s5762_s14, %s14_s14   ;;  %s5730_s13 = sphi %s5760_s13, %s6485_s13   ;;  %s5726_s12 = sphi %s5758_s12, %s6484_s12  }
   0x3   : > { %p27_p1 = scmp.ge.s32.totalorder %s26_s15, 2  ;;  %p189_p2 = scmp.lt.s32.totalorder %s5734_s14, 3 }
   0x5   : > { %s6487_s15 = smov (%p27_p1, %s26_s15), 0  ;;  %p190_p3 = pnand %p4355_p0, %p189_p2 }
   0x6   : > { %s4356_s16 = sshll.u32 (!%p190_p3), %s5726_s12, 4  ;;  %s4358_s17 = sshll.u32 (!%p190_p3), %s5726_s12, 8 }
   0x7   : > { %193 = sbr.rel (%p190_p3) target bundleno = 786 (0x312), region = 28  ;;  %p243_p4 = scmp.lt.s32.totalorder (!%p190_p3), %s4356_s16, 31 }
   0x8   : > { %p252_p5 = scmp.lt.s32.totalorder (!%p190_p3), %s4358_s17, 511  ;;  %p4361_p6 = scmp.ne.s32.totalorder (!%p190_p3), %s5726_s12, 0 }
   0xe   : > { %s6489_s16 = smov (!%p243_p4, %s4356_s16), 31  ;;  %s6491_s17 = smov (!%p252_p5, %s4358_s17), 511 }
   0xf   : > { %s4357_s18 = sshll.u32 %s6489_s16, 2  ;;  %s4899_s22 = sshll.u32 %s6491_s17, 4  ;;  %v5736_v0 = vmov (!%p4361_p6), 0.0  }
  0x10   : > { %s5783_s21 = scalar_lea.vmem %s6480_s0, %s4357_s18  ;;  %s5788_s25 = scalar_lea.vmem %s6481_s1, %s4899_s22  ;;  %286 = vst [vmem:[#allocation2] sm:$0xff] (!%p4361_p6), %v5736_v0  ;;  %287 = vst [vmem:[#allocation2 + $0x8] sm:$0xff] (!%p4361_p6), %v5736_v0 }
  0x11   : > { %285 = sbr.rel (%p4361_p6) target bundleno = 24 (0x18), region = 32  ;;  %288 = vst [vmem:[#allocation2 + $0x10] sm:$0xff] (!%p4361_p6), %v5736_v0  ;;  %289 = vst [vmem:[#allocation2 + $0x18] sm:$0xff] (!%p4361_p6), %v5736_v0 }
  0x18 PF: > { %v4928_v1 = vld [vmem:[%s5788_s25 + $0x4] ss:$16 sps:$4 sm:$0xff]   ;;  %v4932_v3 = vld [vmem:[%s5788_s25] ss:$16 sps:$4 sm:$0xff]   ;;  %v295_v49 = vld [vmem:[%s5783_s21 + $0x8] sm:$0xff]  ;;  %p4890_p7 = scmp.ne.s32.totalorder %s5726_s12, 1 }
  0x19   : > { %v4930_v2 = vld [vmem:[%s5788_s25 + $0x204] ss:$16 sps:$4 sm:$0xff]   ;;  %3430 = vmatprep.subr.bf16.mxu0 %v4928_v1  ;;  %v4933_v4 = vld [vmem:[%s5788_s25 + $0x200] ss:$16 sps:$4 sm:$0xff]   ;;  %v5843_v52 = vcombine.high %v295_v49, %v295_v49  ;;  %vm4154_vm0 = vcmask (!%p4890_p7), 1040384  }
  0x1a   : > { %3471 = vmatprep.subr.bf16.mxu1 %v4930_v2  ;;  %v4934_v5 = vld [vmem:[%s5788_s25 + $0x24] ss:$16 sps:$4 sm:$0xff]   ;;  %3431 = vmatpush1.bf16.msra.mxu0 %v4932_v3  ;;  %v4938_v7 = vld [vmem:[%s5788_s25 + $0x20] ss:$16 sps:$4 sm:$0xff]  }
  0x1b   : > { %3472 = vmatpush1.bf16.msra.mxu1 %v4933_v4  ;;  %v4936_v6 = vld [vmem:[%s5788_s25 + $0x224] ss:$16 sps:$4 sm:$0xff]   ;;  %3432 = vmatprep.subr.bf16.mxu0 %v4934_v5  ;;  %v4939_v8 = vld [vmem:[%s5788_s25 + $0x220] ss:$16 sps:$4 sm:$0xff]  }
  0x1c   : > { %3473 = vmatprep.subr.bf16.mxu1 %v4936_v6  ;;  %v4940_v9 = vld [vmem:[%s5788_s25 + $0x44] ss:$16 sps:$4 sm:$0xff]   ;;  %v4944_v11 = vld [vmem:[%s5788_s25 + $0x40] ss:$16 sps:$4 sm:$0xff]   ;;  %3503 = vmatprep.mubr.bf16.mxu1 %v5843_v52 }
  0x1d   : > { %v4942_v10 = vld [vmem:[%s5788_s25 + $0x244] ss:$16 sps:$4 sm:$0xff]   ;;  %v4945_v12 = vld [vmem:[%s5788_s25 + $0x240] ss:$16 sps:$4 sm:$0xff]  }
  0x1e   : > { %3433 = vmatpush1.bf16.msra.mxu0 %v4938_v7  ;;  %v4946_v13 = vld [vmem:[%s5788_s25 + $0x64] ss:$16 sps:$4 sm:$0xff]   ;;  %v4950_v15 = vld [vmem:[%s5788_s25 + $0x60] ss:$16 sps:$4 sm:$0xff]  }
  0x1f   : > { %3474 = vmatpush1.bf16.msra.mxu1 %v4939_v8  ;;  %3434 = vmatprep.subr.bf16.mxu0 %v4940_v9  ;;  %v4948_v14 = vld [vmem:[%s5788_s25 + $0x264] ss:$16 sps:$4 sm:$0xff]   ;;  %v4951_v16 = vld [vmem:[%s5788_s25 + $0x260] ss:$16 sps:$4 sm:$0xff]   ;;  %v5867_v8 = vcombine.low %v295_v49, %v295_v49 }
  0x20   : > { %3475 = vmatprep.subr.bf16.mxu1 %v4942_v10  ;;  %v4952_v17 = vld [vmem:[%s5788_s25 + $0x84] ss:$16 sps:$4 sm:$0xff]   ;;  %v4956_v19 = vld [vmem:[%s5788_s25 + $0x80] ss:$16 sps:$4 sm:$0xff]  }
  0x21   : > { %v4954_v18 = vld [vmem:[%s5788_s25 + $0x284] ss:$16 sps:$4 sm:$0xff]   ;;  %v4957_v20 = vld [vmem:[%s5788_s25 + $0x280] ss:$16 sps:$4 sm:$0xff]  }
  0x22   : > { %3435 = vmatpush1.bf16.msra.mxu0 %v4944_v11  ;;  %v4958_v21 = vld [vmem:[%s5788_s25 + $0xa4] ss:$16 sps:$4 sm:$0xff]   ;;  %v4962_v23 = vld [vmem:[%s5788_s25 + $0xa0] ss:$16 sps:$4 sm:$0xff]  }
  0x23   : > { %3476 = vmatpush1.bf16.msra.mxu1 %v4945_v12  ;;  %3436 = vmatprep.subr.bf16.mxu0 %v4946_v13  ;;  %v4960_v22 = vld [vmem:[%s5788_s25 + $0x2a4] ss:$16 sps:$4 sm:$0xff]   ;;  %v4963_v24 = vld [vmem:[%s5788_s25 + $0x2a0] ss:$16 sps:$4 sm:$0xff]  }
  0x24   : > { %3477 = vmatprep.subr.bf16.mxu1 %v4948_v14  ;;  %v4964_v25 = vld [vmem:[%s5788_s25 + $0xc4] ss:$16 sps:$4 sm:$0xff]   ;;  %v4968_v27 = vld [vmem:[%s5788_s25 + $0xc0] ss:$16 sps:$4 sm:$0xff]  }
  0x25   : > { %v4966_v26 = vld [vmem:[%s5788_s25 + $0x2c4] ss:$16 sps:$4 sm:$0xff]   ;;  %v4969_v28 = vld [vmem:[%s5788_s25 + $0x2c0] ss:$16 sps:$4 sm:$0xff]  }
  0x26   : > { %3437 = vmatpush1.bf16.msra.mxu0 %v4950_v15  ;;  %v4970_v29 = vld [vmem:[%s5788_s25 + $0xe4] ss:$16 sps:$4 sm:$0xff]   ;;  %v4974_v31 = vld [vmem:[%s5788_s25 + $0xe0] ss:$16 sps:$4 sm:$0xff]  }
  0x27   : > { %3478 = vmatpush1.bf16.msra.mxu1 %v4951_v16  ;;  %3438 = vmatprep.subr.bf16.mxu0 %v4952_v17  ;;  %v4972_v30 = vld [vmem:[%s5788_s25 + $0x2e4] ss:$16 sps:$4 sm:$0xff]   ;;  %v4975_v32 = vld [vmem:[%s5788_s25 + $0x2e0] ss:$16 sps:$4 sm:$0xff]  }
  0x28   : > { %3479 = vmatprep.subr.bf16.mxu1 %v4954_v18  ;;  %v4976_v33 = vld [vmem:[%s5788_s25 + $0x104] ss:$16 sps:$4 sm:$0xff]   ;;  %v4980_v35 = vld [vmem:[%s5788_s25 + $0x100] ss:$16 sps:$4 sm:$0xff]  }
  0x29   : > { %v4978_v34 = vld [vmem:[%s5788_s25 + $0x304] ss:$16 sps:$4 sm:$0xff]   ;;  %v4981_v36 = vld [vmem:[%s5788_s25 + $0x300] ss:$16 sps:$4 sm:$0xff]  }
  0x2a   : > { %3439 = vmatpush1.bf16.msra.mxu0 %v4956_v19  ;;  %v4982_v37 = vld [vmem:[%s5788_s25 + $0x124] ss:$16 sps:$4 sm:$0xff]   ;;  %v4986_v39 = vld [vmem:[%s5788_s25 + $0x120] ss:$16 sps:$4 sm:$0xff]  }
  0x2b   : > { %3480 = vmatpush1.bf16.msra.mxu1 %v4957_v20  ;;  %3440 = vmatprep.subr.bf16.mxu0 %v4958_v21  ;;  %v4984_v38 = vld [vmem:[%s5788_s25 + $0x324] ss:$16 sps:$4 sm:$0xff]   ;;  %v4987_v40 = vld [vmem:[%s5788_s25 + $0x320] ss:$16 sps:$4 sm:$0xff]  }
  0x2c   : > { %3481 = vmatprep.subr.bf16.mxu1 %v4960_v22  ;;  %v4988_v41 = vld [vmem:[%s5788_s25 + $0x144] ss:$16 sps:$4 sm:$0xff]   ;;  %v4992_v43 = vld [vmem:[%s5788_s25 + $0x140] ss:$16 sps:$4 sm:$0xff]  }
  0x2d   : > { %v4990_v42 = vld [vmem:[%s5788_s25 + $0x344] ss:$16 sps:$4 sm:$0xff]   ;;  %v4993_v44 = vld [vmem:[%s5788_s25 + $0x340] ss:$16 sps:$4 sm:$0xff]  }
  0x2e   : > { %3441 = vmatpush1.bf16.msra.mxu0 %v4962_v23  ;;  %v4994_v45 = vld [vmem:[%s5788_s25 + $0x164] ss:$16 sps:$4 sm:$0xff]   ;;  %v4998_v50 = vld [vmem:[%s5788_s25 + $0x160] ss:$16 sps:$4 sm:$0xff]  }
  0x2f   : > { %3482 = vmatpush1.bf16.msra.mxu1 %v4963_v24  ;;  %3442 = vmatprep.subr.bf16.mxu0 %v4964_v25  ;;  %v4996_v46 = vld [vmem:[%s5788_s25 + $0x364] ss:$16 sps:$4 sm:$0xff]   ;;  %v4999_v51 = vld [vmem:[%s5788_s25 + $0x360] ss:$16 sps:$4 sm:$0xff]  }
  0x30   : > { %3483 = vmatprep.subr.bf16.mxu1 %v4966_v26  ;;  %v294_v47 = vld [vmem:[%s5783_s21] sm:$0xff] }
  0x31   : > { %v5838_v48 = vcombine.high %v294_v47, %v294_v47  ;;  %v5000_v53 = vld [vmem:[%s5788_s25 + $0x184] ss:$16 sps:$4 sm:$0xff]   ;;  %v5004_v55 = vld [vmem:[%s5788_s25 + $0x180] ss:$16 sps:$4 sm:$0xff]   ;;  %v5865_v7 = vcombine.low %v294_v47, %v294_v47 }
  0x32   : > { %3443 = vmatpush1.bf16.msra.mxu0 %v4968_v27  ;;  %v5002_v54 = vld [vmem:[%s5788_s25 + $0x384] ss:$16 sps:$4 sm:$0xff]   ;;  %v5005_v56 = vld [vmem:[%s5788_s25 + $0x380] ss:$16 sps:$4 sm:$0xff]  }
  0x33   : > { %3484 = vmatpush1.bf16.msra.mxu1 %v4969_v28  ;;  %3444 = vmatprep.subr.bf16.mxu0 %v4970_v29  ;;  %v5006_v57 = vld [vmem:[%s5788_s25 + $0x1a4] ss:$16 sps:$4 sm:$0xff]   ;;  %v5010_v59 = vld [vmem:[%s5788_s25 + $0x1a0] ss:$16 sps:$4 sm:$0xff]  }
  0x34   : > { %3485 = vmatprep.subr.bf16.mxu1 %v4972_v30  ;;  %3462 = vmatprep.mubr.bf16.mxu0 %v5838_v48  ;;  %v5008_v58 = vld [vmem:[%s5788_s25 + $0x3a4] ss:$16 sps:$4 sm:$0xff]   ;;  %v5011_v60 = vld [vmem:[%s5788_s25 + $0x3a0] ss:$16 sps:$4 sm:$0xff]  }
  0x35   : > { %v5012_v61 = vld [vmem:[%s5788_s25 + $0x1c4] ss:$16 sps:$4 sm:$0xff]   ;;  %v5016_v63 = vld [vmem:[%s5788_s25 + $0x1c0] ss:$16 sps:$4 sm:$0xff]  }
  0x36   : > { %3445 = vmatpush1.bf16.msra.mxu0 %v4974_v31  ;;  %v5014_v62 = vld [vmem:[%s5788_s25 + $0x3c4] ss:$16 sps:$4 sm:$0xff]   ;;  %v5017_v0 = vld [vmem:[%s5788_s25 + $0x3c0] ss:$16 sps:$4 sm:$0xff]  }
  0x37   : > { %3486 = vmatpush1.bf16.msra.mxu1 %v4975_v32  ;;  %3446 = vmatprep.subr.bf16.mxu0 %v4976_v33  ;;  %v5018_v1 = vld [vmem:[%s5788_s25 + $0x1e4] ss:$16 sps:$4 sm:$0xff]   ;;  %v5022_v3 = vld [vmem:[%s5788_s25 + $0x1e0] ss:$16 sps:$4 sm:$0xff]  }
  0x38   : > { %3487 = vmatprep.subr.bf16.mxu1 %v4978_v34  ;;  %v5020_v2 = vld [vmem:[%s5788_s25 + $0x3e4] ss:$16 sps:$4 sm:$0xff]   ;;  %v5023_v4 = vld [vmem:[%s5788_s25 + $0x3e0] ss:$16 sps:$4 sm:$0xff]   ;;  %v5899_v34 = vld [vmem:[%s5783_s21 + $0x18] sm:$0xff] }
  0x39   : > { %v5030_v5 = vld [vmem:[%s5788_s25 + $0x404] ss:$16 sps:$4 sm:$0xff]   ;;  %v5028_v9 = vld [vmem:[%s5788_s25 + $0x400] ss:$16 sps:$4 sm:$0xff]  }
  0x3a   : > { %3447 = vmatpush1.bf16.msra.mxu0 %v4980_v35  ;;  %v5033_v6 = vld [vmem:[%s5788_s25 + $0x604] ss:$16 sps:$4 sm:$0xff]   ;;  %v5031_v10 = vld [vmem:[%s5788_s25 + $0x600] ss:$16 sps:$4 sm:$0xff]  }
  0x3b   : > { %3488 = vmatpush1.bf16.msra.mxu1 %v4981_v36  ;;  %3448 = vmatprep.subr.bf16.mxu0 %v4982_v37  ;;  %v5036_v11 = vld [vmem:[%s5788_s25 + $0x424] ss:$16 sps:$4 sm:$0xff]   ;;  %v5034_v13 = vld [vmem:[%s5788_s25 + $0x420] ss:$16 sps:$4 sm:$0xff]  }
  0x3c   : > { %3489 = vmatprep.subr.bf16.mxu1 %v4984_v38  ;;  %v5039_v12 = vld [vmem:[%s5788_s25 + $0x624] ss:$16 sps:$4 sm:$0xff]   ;;  %v5037_v14 = vld [vmem:[%s5788_s25 + $0x620] ss:$16 sps:$4 sm:$0xff]   ;;  %v5909_v38 = vcombine.high %v5899_v34, %v5899_v34 }
  0x3d   : > { %v5042_v15 = vld [vmem:[%s5788_s25 + $0x444] ss:$16 sps:$4 sm:$0xff]   ;;  %v5040_v17 = vld [vmem:[%s5788_s25 + $0x440] ss:$16 sps:$4 sm:$0xff]  }
  0x3e   : > { %3449 = vmatpush1.bf16.msra.mxu0 %v4986_v39  ;;  %v5045_v16 = vld [vmem:[%s5788_s25 + $0x644] ss:$16 sps:$4 sm:$0xff]   ;;  %v5043_v18 = vld [vmem:[%s5788_s25 + $0x640] ss:$16 sps:$4 sm:$0xff]  }
  0x3f   : > { %3490 = vmatpush1.bf16.msra.mxu1 %v4987_v40  ;;  %3450 = vmatprep.subr.bf16.mxu0 %v4988_v41  ;;  %v5048_v19 = vld [vmem:[%s5788_s25 + $0x464] ss:$16 sps:$4 sm:$0xff]   ;;  %v5046_v21 = vld [vmem:[%s5788_s25 + $0x460] ss:$16 sps:$4 sm:$0xff]  }
  0x40   : > { %3491 = vmatprep.subr.bf16.mxu1 %v4990_v42  ;;  %v5051_v20 = vld [vmem:[%s5788_s25 + $0x664] ss:$16 sps:$4 sm:$0xff]   ;;  %v5049_v22 = vld [vmem:[%s5788_s25 + $0x660] ss:$16 sps:$4 sm:$0xff]  }
  0x41   : > { %v5054_v23 = vld [vmem:[%s5788_s25 + $0x484] ss:$16 sps:$4 sm:$0xff]   ;;  %v5052_v25 = vld [vmem:[%s5788_s25 + $0x480] ss:$16 sps:$4 sm:$0xff]  }
  0x42   : > { %3451 = vmatpush1.bf16.msra.mxu0 %v4992_v43  ;;  %v5057_v24 = vld [vmem:[%s5788_s25 + $0x684] ss:$16 sps:$4 sm:$0xff]   ;;  %v5055_v26 = vld [vmem:[%s5788_s25 + $0x680] ss:$16 sps:$4 sm:$0xff]  }
  0x43   : > { %3492 = vmatpush1.bf16.msra.mxu1 %v4993_v44  ;;  %3452 = vmatprep.subr.bf16.mxu0 %v4994_v45  ;;  %v5060_v27 = vld [vmem:[%s5788_s25 + $0x4a4] ss:$16 sps:$4 sm:$0xff]   ;;  %v5058_v29 = vld [vmem:[%s5788_s25 + $0x4a0] ss:$16 sps:$4 sm:$0xff]  }
  0x44   : > { %3493 = vmatprep.subr.bf16.mxu1 %v4996_v46  ;;  %v5063_v28 = vld [vmem:[%s5788_s25 + $0x6a4] ss:$16 sps:$4 sm:$0xff]   ;;  %v5061_v30 = vld [vmem:[%s5788_s25 + $0x6a0] ss:$16 sps:$4 sm:$0xff]  }
  0x45   : > { %v5066_v31 = vld [vmem:[%s5788_s25 + $0x4c4] ss:$16 sps:$4 sm:$0xff]   ;;  %v5064_v35 = vld [vmem:[%s5788_s25 + $0x4c0] ss:$16 sps:$4 sm:$0xff]  }
  0x46   : > { %3453 = vmatpush1.bf16.msra.mxu0 %v4998_v50  ;;  %v5069_v32 = vld [vmem:[%s5788_s25 + $0x6c4] ss:$16 sps:$4 sm:$0xff]   ;;  %v5067_v36 = vld [vmem:[%s5788_s25 + $0x6c0] ss:$16 sps:$4 sm:$0xff]  }
  0x47   : > { %3494 = vmatpush1.bf16.msra.mxu1 %v4999_v51  ;;  %3454 = vmatprep.subr.bf16.mxu0 %v5000_v53  ;;  %v5896_v33 = vld [vmem:[%s5783_s21 + $0x10] sm:$0xff] }
  0x48   : > { %3495 = vmatprep.subr.bf16.mxu1 %v5002_v54  ;;  %v5905_v37 = vcombine.high %v5896_v33, %v5896_v33  ;;  %v5072_v39 = vld [vmem:[%s5788_s25 + $0x4e4] ss:$16 sps:$4 sm:$0xff]   ;;  %v5070_v41 = vld [vmem:[%s5788_s25 + $0x4e0] ss:$16 sps:$4 sm:$0xff]  }
  0x49   : > { %v5075_v40 = vld [vmem:[%s5788_s25 + $0x6e4] ss:$16 sps:$4 sm:$0xff]   ;;  %v5073_v42 = vld [vmem:[%s5788_s25 + $0x6e0] ss:$16 sps:$4 sm:$0xff]  }
  0x4a   : > { %3455 = vmatpush1.bf16.msra.mxu0 %v5004_v55  ;;  %v5078_v43 = vld [vmem:[%s5788_s25 + $0x504] ss:$16 sps:$4 sm:$0xff]   ;;  %v5076_v45 = vld [vmem:[%s5788_s25 + $0x500] ss:$16 sps:$4 sm:$0xff]  }
  0x4b   : > { %3496 = vmatpush1.bf16.msra.mxu1 %v5005_v56  ;;  %3456 = vmatprep.subr.bf16.mxu0 %v5006_v57  ;;  %v5081_v44 = vld [vmem:[%s5788_s25 + $0x704] ss:$16 sps:$4 sm:$0xff]   ;;  %v5079_v46 = vld [vmem:[%s5788_s25 + $0x700] ss:$16 sps:$4 sm:$0xff]  }
  0x4c   : > { %3497 = vmatprep.subr.bf16.mxu1 %v5008_v58  ;;  %v5084_v47 = vld [vmem:[%s5788_s25 + $0x524] ss:$16 sps:$4 sm:$0xff]   ;;  %v5082_v50 = vld [vmem:[%s5788_s25 + $0x520] ss:$16 sps:$4 sm:$0xff]  }
  0x4d   : > { %v5087_v49 = vld [vmem:[%s5788_s25 + $0x724] ss:$16 sps:$4 sm:$0xff]   ;;  %v5085_v51 = vld [vmem:[%s5788_s25 + $0x720] ss:$16 sps:$4 sm:$0xff]  }
  0x4e   : > { %3457 = vmatpush1.bf16.msra.mxu0 %v5010_v59  ;;  %v5090_v53 = vld [vmem:[%s5788_s25 + $0x544] ss:$16 sps:$4 sm:$0xff]   ;;  %v5088_v55 = vld [vmem:[%s5788_s25 + $0x540] ss:$16 sps:$4 sm:$0xff]  }
  0x4f   : > { %3498 = vmatpush1.bf16.msra.mxu1 %v5011_v60  ;;  %3458 = vmatprep.subr.bf16.mxu0 %v5012_v61  ;;  %v5093_v54 = vld [vmem:[%s5788_s25 + $0x744] ss:$16 sps:$4 sm:$0xff]   ;;  %v5091_v56 = vld [vmem:[%s5788_s25 + $0x740] ss:$16 sps:$4 sm:$0xff]  }
  0x50   : > { %3499 = vmatprep.subr.bf16.mxu1 %v5014_v62  ;;  %v5096_v57 = vld [vmem:[%s5788_s25 + $0x564] ss:$16 sps:$4 sm:$0xff]   ;;  %v5094_v59 = vld [vmem:[%s5788_s25 + $0x560] ss:$16 sps:$4 sm:$0xff]  }
  0x51   : > { %v5099_v58 = vld [vmem:[%s5788_s25 + $0x764] ss:$16 sps:$4 sm:$0xff]   ;;  %v5097_v60 = vld [vmem:[%s5788_s25 + $0x760] ss:$16 sps:$4 sm:$0xff]  }
  0x52   : > { %3459 = vmatpush1.bf16.msra.mxu0 %v5016_v63  ;;  %v5102_v61 = vld [vmem:[%s5788_s25 + $0x584] ss:$16 sps:$4 sm:$0xff]   ;;  %v5100_v63 = vld [vmem:[%s5788_s25 + $0x580] ss:$16 sps:$4 sm:$0xff]  }
  0x53   : > { %3500 = vmatpush1.bf16.msra.mxu1 %v5017_v0  ;;  %3460 = vmatprep.subr.bf16.mxu0 %v5018_v1  ;;  %v5105_v62 = vld [vmem:[%s5788_s25 + $0x784] ss:$16 sps:$4 sm:$0xff]   ;;  %v5103_v0 = vld [vmem:[%s5788_s25 + $0x780] ss:$16 sps:$4 sm:$0xff]  }
  0x54   : > { %3501 = vmatprep.subr.bf16.mxu1 %v5020_v2  ;;  %v5108_v1 = vld [vmem:[%s5788_s25 + $0x5a4] ss:$16 sps:$4 sm:$0xff]  }
  0x55   : > { %v5111_v2 = vld [vmem:[%s5788_s25 + $0x7a4] ss:$16 sps:$4 sm:$0xff]  }
  0x56   : > { %3461 = vmatpush1.bf16.msra.mxu0 %v5022_v3  ;;  %v5106_v3 = vld [vmem:[%s5788_s25 + $0x5a0] ss:$16 sps:$4 sm:$0xff]  }
  0x57   : > { %3502 = vmatpush1.bf16.msra.mxu1 %v5023_v4  ;;  %3512 = vmatprep.subr.bf16.mxu0 %v5030_v5  ;;  %v5109_v4 = vld [vmem:[%s5788_s25 + $0x7a0] ss:$16 sps:$4 sm:$0xff]   ;;  %v5114_v5 = vld [vmem:[%s5788_s25 + $0x5c4] ss:$16 sps:$4 sm:$0xff]  }
  0x58   : > { %3553 = vmatprep.subr.bf16.mxu1 %v5033_v6  ;;  %v5117_v6 = vld [vmem:[%s5788_s25 + $0x7c4] ss:$16 sps:$4 sm:$0xff]  }
  0x59   : > { %3463 = vmatmul.mubr.bf16.vlgmr.msra.gmra.mrb[0].mxu0 %v5865_v7 }
  0x5a   : > { %3504 = vmatmul.mubr.bf16.vlgmr.msra.gmra.mrb[0].mxu1 %v5867_v8  ;;  %3513 = vmatpush1.bf16.msra.mxu0 %v5028_v9  ;;  %v5112_v9 = vld [vmem:[%s5788_s25 + $0x5c0] ss:$16 sps:$4 sm:$0xff]  }
  0x5b   : > { %3554 = vmatpush1.bf16.msra.mxu1 %v5031_v10  ;;  %3514 = vmatprep.subr.bf16.mxu0 %v5036_v11  ;;  %v5115_v10 = vld [vmem:[%s5788_s25 + $0x7c0] ss:$16 sps:$4 sm:$0xff]   ;;  %v5120_v11 = vld [vmem:[%s5788_s25 + $0x5e4] ss:$16 sps:$4 sm:$0xff]  }
  0x5c   : > { %3555 = vmatprep.subr.bf16.mxu1 %v5039_v12  ;;  %3544 = vmatprep.mubr.bf16.mxu0 %v5905_v37  ;;  %v5123_v12 = vld [vmem:[%s5788_s25 + $0x7e4] ss:$16 sps:$4 sm:$0xff]  }
  0x5d   : > { %3585 = vmatprep.mubr.bf16.mxu1 %v5909_v38 }
  0x5e   : > { %3515 = vmatpush1.bf16.msra.mxu0 %v5034_v13  ;;  %v5118_v13 = vld [vmem:[%s5788_s25 + $0x5e0] ss:$16 sps:$4 sm:$0xff]  }
  0x5f   : > { %3556 = vmatpush1.bf16.msra.mxu1 %v5037_v14  ;;  %3516 = vmatprep.subr.bf16.mxu0 %v5042_v15  ;;  %v5121_v14 = vld [vmem:[%s5788_s25 + $0x7e0] ss:$16 sps:$4 sm:$0xff]   ;;  %v5130_v15 = vld [vmem:[%s5788_s25 + $0x804] ss:$16 sps:$4 sm:$0xff]  }
  0x60   : > { %3557 = vmatprep.subr.bf16.mxu1 %v5045_v16  ;;  %v5133_v16 = vld [vmem:[%s5788_s25 + $0xa04] ss:$16 sps:$4 sm:$0xff]  }
  0x62   : > { %3517 = vmatpush1.bf16.msra.mxu0 %v5040_v17  ;;  %v5953_v17 = vcombine.low %v5896_v33, %v5896_v33  ;;  %v5148_v33 = vld [vmem:[%s5788_s25 + $0x864] ss:$16 sps:$4 sm:$0xff]  }
  0x63   : > { %3558 = vmatpush1.bf16.msra.mxu1 %v5043_v18  ;;  %3518 = vmatprep.subr.bf16.mxu0 %v5048_v19  ;;  %v5957_v18 = vcombine.low %v5899_v34, %v5899_v34  ;;  %v5128_v19 = vld [vmem:[%s5788_s25 + $0x800] ss:$16 sps:$4 sm:$0xff]   ;;  %v5151_v34 = vld [vmem:[%s5788_s25 + $0xa64] ss:$16 sps:$4 sm:$0xff]  }
  0x64   : > { %3559 = vmatprep.subr.bf16.mxu1 %v5051_v20  ;;  %v5131_v20 = vld [vmem:[%s5788_s25 + $0xa00] ss:$16 sps:$4 sm:$0xff]  }
  0x66   : > { %3519 = vmatpush1.bf16.msra.mxu0 %v5046_v21  ;;  %v5136_v21 = vld [vmem:[%s5788_s25 + $0x824] ss:$16 sps:$4 sm:$0xff]  }
  0x67   : > { %3560 = vmatpush1.bf16.msra.mxu1 %v5049_v22  ;;  %3520 = vmatprep.subr.bf16.mxu0 %v5054_v23  ;;  %v5139_v22 = vld [vmem:[%s5788_s25 + $0xa24] ss:$16 sps:$4 sm:$0xff]  }
  0x68   : > { %3561 = vmatprep.subr.bf16.mxu1 %v5057_v24  ;;  %v5964_v23 = vld [vmem:[%s5783_s21 + $0x20] sm:$0xff]  ;;  %v5967_v24 = vld [vmem:[%s5783_s21 + $0x28] sm:$0xff] }
  0x6a   : > { %3521 = vmatpush1.bf16.msra.mxu0 %v5052_v25  ;;  %v5971_v25 = vcombine.high %v5964_v23, %v5964_v23 }
  0x6b   : > { %3562 = vmatpush1.bf16.msra.mxu1 %v5055_v26  ;;  %3522 = vmatprep.subr.bf16.mxu0 %v5060_v27  ;;  %v5975_v26 = vcombine.high %v5967_v24, %v5967_v24  ;;  %v5134_v27 = vld [vmem:[%s5788_s25 + $0x820] ss:$16 sps:$4 sm:$0xff]  }
  0x6c   : > { %3563 = vmatprep.subr.bf16.mxu1 %v5063_v28  ;;  %v5137_v28 = vld [vmem:[%s5788_s25 + $0xa20] ss:$16 sps:$4 sm:$0xff]  }
  0x6e   : > { %3523 = vmatpush1.bf16.msra.mxu0 %v5058_v29  ;;  %v5142_v29 = vld [vmem:[%s5788_s25 + $0x844] ss:$16 sps:$4 sm:$0xff]  }
  0x6f   : > { %3564 = vmatpush1.bf16.msra.mxu1 %v5061_v30  ;;  %3524 = vmatprep.subr.bf16.mxu0 %v5066_v31  ;;  %v5145_v30 = vld [vmem:[%s5788_s25 + $0xa44] ss:$16 sps:$4 sm:$0xff]   ;;  %v5140_v31 = vld [vmem:[%s5788_s25 + $0x840] ss:$16 sps:$4 sm:$0xff]  }
  0x70   : > { %3565 = vmatprep.subr.bf16.mxu1 %v5069_v32  ;;  %v5143_v32 = vld [vmem:[%s5788_s25 + $0xa40] ss:$16 sps:$4 sm:$0xff]  }
  0x72   : > { %3525 = vmatpush1.bf16.msra.mxu0 %v5064_v35  ;;  %v5146_v35 = vld [vmem:[%s5788_s25 + $0x860] ss:$16 sps:$4 sm:$0xff]  }
  0x73   : > { %3566 = vmatpush1.bf16.msra.mxu1 %v5067_v36  ;;  %3526 = vmatprep.subr.bf16.mxu0 %v5072_v39  ;;  %v5149_v36 = vld [vmem:[%s5788_s25 + $0xa60] ss:$16 sps:$4 sm:$0xff]   ;;  %v5154_v39 = vld [vmem:[%s5788_s25 + $0x884] ss:$16 sps:$4 sm:$0xff]  }
  0x74   : > { %3567 = vmatprep.subr.bf16.mxu1 %v5075_v40  ;;  %v5157_v40 = vld [vmem:[%s5788_s25 + $0xa84] ss:$16 sps:$4 sm:$0xff]  }
  0x76   : > { %3527 = vmatpush1.bf16.msra.mxu0 %v5070_v41  ;;  %v5152_v41 = vld [vmem:[%s5788_s25 + $0x880] ss:$16 sps:$4 sm:$0xff]  }
  0x77   : > { %3568 = vmatpush1.bf16.msra.mxu1 %v5073_v42  ;;  %3528 = vmatprep.subr.bf16.mxu0 %v5078_v43  ;;  %v5155_v42 = vld [vmem:[%s5788_s25 + $0xa80] ss:$16 sps:$4 sm:$0xff]   ;;  %v5160_v43 = vld [vmem:[%s5788_s25 + $0x8a4] ss:$16 sps:$4 sm:$0xff]  }
  0x78   : > { %3569 = vmatprep.subr.bf16.mxu1 %v5081_v44  ;;  %v5163_v44 = vld [vmem:[%s5788_s25 + $0xaa4] ss:$16 sps:$4 sm:$0xff]  }
  0x7a   : > { %3529 = vmatpush1.bf16.msra.mxu0 %v5076_v45  ;;  %v5158_v45 = vld [vmem:[%s5788_s25 + $0x8a0] ss:$16 sps:$4 sm:$0xff]  }
  0x7b   : > { %3570 = vmatpush1.bf16.msra.mxu1 %v5079_v46  ;;  %3530 = vmatprep.subr.bf16.mxu0 %v5084_v47  ;;  %v5161_v46 = vld [vmem:[%s5788_s25 + $0xaa0] ss:$16 sps:$4 sm:$0xff]   ;;  %v5166_v47 = vld [vmem:[%s5788_s25 + $0x8c4] ss:$16 sps:$4 sm:$0xff]  }
  0x7c   : > { %3571 = vmatprep.subr.bf16.mxu1 %v5087_v49  ;;  %v5169_v49 = vld [vmem:[%s5788_s25 + $0xac4] ss:$16 sps:$4 sm:$0xff]  }
  0x7e   : > { %3531 = vmatpush1.bf16.msra.mxu0 %v5082_v50  ;;  %v5164_v50 = vld [vmem:[%s5788_s25 + $0x8c0] ss:$16 sps:$4 sm:$0xff]  }
  0x7f   : > { %3572 = vmatpush1.bf16.msra.mxu1 %v5085_v51  ;;  %3532 = vmatprep.subr.bf16.mxu0 %v5090_v53  ;;  %v5167_v51 = vld [vmem:[%s5788_s25 + $0xac0] ss:$16 sps:$4 sm:$0xff]   ;;  %v5172_v53 = vld [vmem:[%s5788_s25 + $0x8e4] ss:$16 sps:$4 sm:$0xff]  }
  0x80   : > { %3573 = vmatprep.subr.bf16.mxu1 %v5093_v54  ;;  %v5175_v54 = vld [vmem:[%s5788_s25 + $0xae4] ss:$16 sps:$4 sm:$0xff]  }
  0x82   : > { %3533 = vmatpush1.bf16.msra.mxu0 %v5088_v55  ;;  %v5170_v55 = vld [vmem:[%s5788_s25 + $0x8e0] ss:$16 sps:$4 sm:$0xff]  }
  0x83   : > { %3574 = vmatpush1.bf16.msra.mxu1 %v5091_v56  ;;  %3534 = vmatprep.subr.bf16.mxu0 %v5096_v57  ;;  %v5173_v56 = vld [vmem:[%s5788_s25 + $0xae0] ss:$16 sps:$4 sm:$0xff]   ;;  %v5178_v57 = vld [vmem:[%s5788_s25 + $0x904] ss:$16 sps:$4 sm:$0xff]  }
  0x84   : > { %3575 = vmatprep.subr.bf16.mxu1 %v5099_v58  ;;  %v5181_v58 = vld [vmem:[%s5788_s25 + $0xb04] ss:$16 sps:$4 sm:$0xff]  }
  0x86   : > { %3535 = vmatpush1.bf16.msra.mxu0 %v5094_v59  ;;  %v5176_v59 = vld [vmem:[%s5788_s25 + $0x900] ss:$16 sps:$4 sm:$0xff]  }
  0x87   : > { %3576 = vmatpush1.bf16.msra.mxu1 %v5097_v60  ;;  %3536 = vmatprep.subr.bf16.mxu0 %v5102_v61  ;;  %v5179_v60 = vld [vmem:[%s5788_s25 + $0xb00] ss:$16 sps:$4 sm:$0xff]   ;;  %v5184_v61 = vld [vmem:[%s5788_s25 + $0x924] ss:$16 sps:$4 sm:$0xff]  }
  0x88   : > { %3577 = vmatprep.subr.bf16.mxu1 %v5105_v62  ;;  %v5187_v62 = vld [vmem:[%s5788_s25 + $0xb24] ss:$16 sps:$4 sm:$0xff]  }
  0x8a   : > { %3537 = vmatpush1.bf16.msra.mxu0 %v5100_v63  ;;  %v5182_v63 = vld [vmem:[%s5788_s25 + $0x920] ss:$16 sps:$4 sm:$0xff]  }
  0x8b   : > { %3578 = vmatpush1.bf16.msra.mxu1 %v5103_v0  ;;  %3538 = vmatprep.subr.bf16.mxu0 %v5108_v1  ;;  %v5185_v0 = vld [vmem:[%s5788_s25 + $0xb20] ss:$16 sps:$4 sm:$0xff]   ;;  %v5190_v1 = vld [vmem:[%s5788_s25 + $0x944] ss:$16 sps:$4 sm:$0xff]  }
  0x8c   : > { %3579 = vmatprep.subr.bf16.mxu1 %v5111_v2  ;;  %v5193_v2 = vld [vmem:[%s5788_s25 + $0xb44] ss:$16 sps:$4 sm:$0xff]  }
  0x8e   : > { %3539 = vmatpush1.bf16.msra.mxu0 %v5106_v3  ;;  %v5188_v3 = vld [vmem:[%s5788_s25 + $0x940] ss:$16 sps:$4 sm:$0xff]  }
  0x8f   : > { %3580 = vmatpush1.bf16.msra.mxu1 %v5109_v4  ;;  %3540 = vmatprep.subr.bf16.mxu0 %v5114_v5  ;;  %v5191_v4 = vld [vmem:[%s5788_s25 + $0xb40] ss:$16 sps:$4 sm:$0xff]   ;;  %v5196_v5 = vld [vmem:[%s5788_s25 + $0x964] ss:$16 sps:$4 sm:$0xff]  }
  0x90   : > { %3581 = vmatprep.subr.bf16.mxu1 %v5117_v6  ;;  %v5199_v6 = vld [vmem:[%s5788_s25 + $0xb64] ss:$16 sps:$4 sm:$0xff]  }
  0x92   : > { %3541 = vmatpush1.bf16.msra.mxu0 %v5112_v9  ;;  %v5194_v9 = vld [vmem:[%s5788_s25 + $0x960] ss:$16 sps:$4 sm:$0xff]  }
  0x93   : > { %3582 = vmatpush1.bf16.msra.mxu1 %v5115_v10  ;;  %3542 = vmatprep.subr.bf16.mxu0 %v5120_v11  ;;  %v5197_v10 = vld [vmem:[%s5788_s25 + $0xb60] ss:$16 sps:$4 sm:$0xff]   ;;  %v5202_v11 = vld [vmem:[%s5788_s25 + $0x984] ss:$16 sps:$4 sm:$0xff]  }
  0x94   : > { %3583 = vmatprep.subr.bf16.mxu1 %v5123_v12  ;;  %v5205_v12 = vld [vmem:[%s5788_s25 + $0xb84] ss:$16 sps:$4 sm:$0xff]  }
  0x96   : > { %3543 = vmatpush1.bf16.msra.mxu0 %v5118_v13  ;;  %v5200_v13 = vld [vmem:[%s5788_s25 + $0x980] ss:$16 sps:$4 sm:$0xff]  }
  0x97   : > { %3584 = vmatpush1.bf16.msra.mxu1 %v5121_v14  ;;  %3594 = vmatprep.subr.bf16.mxu0 %v5130_v15  ;;  %v5203_v14 = vld [vmem:[%s5788_s25 + $0xb80] ss:$16 sps:$4 sm:$0xff]   ;;  %v5208_v15 = vld [vmem:[%s5788_s25 + $0x9a4] ss:$16 sps:$4 sm:$0xff]  }
  0x98   : > { %3635 = vmatprep.subr.bf16.mxu1 %v5133_v16  ;;  %v5211_v16 = vld [vmem:[%s5788_s25 + $0xba4] ss:$16 sps:$4 sm:$0xff]  }
  0x99   : > { %3545 = vmatmul.mubr.bf16.vlgmr.msra.gmra.mrb[4].mxu0 %v5953_v17 }
  0x9a   : > { %3586 = vmatmul.mubr.bf16.vlgmr.msra.gmra.mrb[4].mxu1 %v5957_v18  ;;  %3595 = vmatpush1.bf16.msra.mxu0 %v5128_v19  ;;  %v5206_v19 = vld [vmem:[%s5788_s25 + $0x9a0] ss:$16 sps:$4 sm:$0xff]  }
  0x9b   : > { %3636 = vmatpush1.bf16.msra.mxu1 %v5131_v20  ;;  %3596 = vmatprep.subr.bf16.mxu0 %v5136_v21  ;;  %v5209_v20 = vld [vmem:[%s5788_s25 + $0xba0] ss:$16 sps:$4 sm:$0xff]   ;;  %v5214_v21 = vld [vmem:[%s5788_s25 + $0x9c4] ss:$16 sps:$4 sm:$0xff]  }
  0x9c   : > { %3637 = vmatprep.subr.bf16.mxu1 %v5139_v22  ;;  %3626 = vmatprep.mubr.bf16.mxu0 %v5971_v25  ;;  %v5217_v22 = vld [vmem:[%s5788_s25 + $0xbc4] ss:$16 sps:$4 sm:$0xff]  }
  0x9d   : > { %3667 = vmatprep.mubr.bf16.mxu1 %v5975_v26 }
  0x9e   : > { %3597 = vmatpush1.bf16.msra.mxu0 %v5134_v27  ;;  %v5212_v27 = vld [vmem:[%s5788_s25 + $0x9c0] ss:$16 sps:$4 sm:$0xff]  }
  0x9f   : > { %3638 = vmatpush1.bf16.msra.mxu1 %v5137_v28  ;;  %3598 = vmatprep.subr.bf16.mxu0 %v5142_v29  ;;  %v5215_v28 = vld [vmem:[%s5788_s25 + $0xbc0] ss:$16 sps:$4 sm:$0xff]   ;;  %v5220_v29 = vld [vmem:[%s5788_s25 + $0x9e4] ss:$16 sps:$4 sm:$0xff]  }
  0xa0   : > { %3639 = vmatprep.subr.bf16.mxu1 %v5145_v30  ;;  %v5223_v30 = vld [vmem:[%s5788_s25 + $0xbe4] ss:$16 sps:$4 sm:$0xff]  }
  0xa2   : > { %3599 = vmatpush1.bf16.msra.mxu0 %v5140_v31  ;;  %v5218_v31 = vld [vmem:[%s5788_s25 + $0x9e0] ss:$16 sps:$4 sm:$0xff]  }
  0xa3   : > { %3640 = vmatpush1.bf16.msra.mxu1 %v5143_v32  ;;  %3600 = vmatprep.subr.bf16.mxu0 %v5148_v33  ;;  %v5221_v32 = vld [vmem:[%s5788_s25 + $0xbe0] ss:$16 sps:$4 sm:$0xff]   ;;  %v5230_v33 = vld [vmem:[%s5788_s25 + $0xc04] ss:$16 sps:$4 sm:$0xff]  }
  0xa4   : > { %3641 = vmatprep.subr.bf16.mxu1 %v5151_v34  ;;  %v5233_v34 = vld [vmem:[%s5788_s25 + $0xe04] ss:$16 sps:$4 sm:$0xff]  }
  0xa6   : > { %3601 = vmatpush1.bf16.msra.mxu0 %v5146_v35  ;;  %v5228_v35 = vld [vmem:[%s5788_s25 + $0xc00] ss:$16 sps:$4 sm:$0xff]  }
  0xa7   : > { %3642 = vmatpush1.bf16.msra.mxu1 %v5149_v36  ;;  %3602 = vmatprep.subr.bf16.mxu0 %v5154_v39  ;;  %v5231_v36 = vld [vmem:[%s5788_s25 + $0xe00] ss:$16 sps:$4 sm:$0xff]   ;;  %v6045_v39 = vcombine.low %v5964_v23, %v5964_v23 }
  0xa8   : > { %3643 = vmatprep.subr.bf16.mxu1 %v5157_v40  ;;  %v6049_v40 = vcombine.low %v5967_v24, %v5967_v24 }
  0xaa   : > { %3603 = vmatpush1.bf16.msra.mxu0 %v5152_v41  ;;  %v6052_v41 = vld [vmem:[%s5783_s21 + $0x30] sm:$0xff] }
  0xab   : > { %3644 = vmatpush1.bf16.msra.mxu1 %v5155_v42  ;;  %3604 = vmatprep.subr.bf16.mxu0 %v5160_v43  ;;  %v6055_v42 = vld [vmem:[%s5783_s21 + $0x38] sm:$0xff]  ;;  %v5236_v43 = vld [vmem:[%s5788_s25 + $0xc24] ss:$16 sps:$4 sm:$0xff]   ;;  %v6061_v23 = vcombine.high %v6052_v41, %v6052_v41 }
  0xac   : > { %3645 = vmatprep.subr.bf16.mxu1 %v5163_v44  ;;  %v5239_v44 = vld [vmem:[%s5788_s25 + $0xe24] ss:$16 sps:$4 sm:$0xff]   ;;  %v6065_v24 = vcombine.high %v6055_v42, %v6055_v42 }
  0xae   : > { %3605 = vmatpush1.bf16.msra.mxu0 %v5158_v45  ;;  %v5234_v45 = vld [vmem:[%s5788_s25 + $0xc20] ss:$16 sps:$4 sm:$0xff]  }
  0xaf   : > { %3646 = vmatpush1.bf16.msra.mxu1 %v5161_v46  ;;  %3606 = vmatprep.subr.bf16.mxu0 %v5166_v47  ;;  %v5237_v46 = vld [vmem:[%s5788_s25 + $0xe20] ss:$16 sps:$4 sm:$0xff]   ;;  %v5242_v47 = vld [vmem:[%s5788_s25 + $0xc44] ss:$16 sps:$4 sm:$0xff]  }
  0xb0   : > { %3647 = vmatprep.subr.bf16.mxu1 %v5169_v49  ;;  %v5245_v49 = vld [vmem:[%s5788_s25 + $0xe44] ss:$16 sps:$4 sm:$0xff]  }
  0xb2   : > { %3607 = vmatpush1.bf16.msra.mxu0 %v5164_v50  ;;  %v5240_v50 = vld [vmem:[%s5788_s25 + $0xc40] ss:$16 sps:$4 sm:$0xff]  }
  0xb3   : > { %3648 = vmatpush1.bf16.msra.mxu1 %v5167_v51  ;;  %3608 = vmatprep.subr.bf16.mxu0 %v5172_v53  ;;  %v5243_v51 = vld [vmem:[%s5788_s25 + $0xe40] ss:$16 sps:$4 sm:$0xff]   ;;  %v5248_v53 = vld [vmem:[%s5788_s25 + $0xc64] ss:$16 sps:$4 sm:$0xff]  }
  0xb4   : > { %3649 = vmatprep.subr.bf16.mxu1 %v5175_v54  ;;  %v5251_v54 = vld [vmem:[%s5788_s25 + $0xe64] ss:$16 sps:$4 sm:$0xff]  }
  0xb6   : > { %3609 = vmatpush1.bf16.msra.mxu0 %v5170_v55  ;;  %v5246_v55 = vld [vmem:[%s5788_s25 + $0xc60] ss:$16 sps:$4 sm:$0xff]  }
  0xb7   : > { %3650 = vmatpush1.bf16.msra.mxu1 %v5173_v56  ;;  %3610 = vmatprep.subr.bf16.mxu0 %v5178_v57  ;;  %v5249_v56 = vld [vmem:[%s5788_s25 + $0xe60] ss:$16 sps:$4 sm:$0xff]   ;;  %v5254_v57 = vld [vmem:[%s5788_s25 + $0xc84] ss:$16 sps:$4 sm:$0xff]  }
  0xb8   : > { %3651 = vmatprep.subr.bf16.mxu1 %v5181_v58  ;;  %v5257_v58 = vld [vmem:[%s5788_s25 + $0xe84] ss:$16 sps:$4 sm:$0xff]  }
  0xba   : > { %3611 = vmatpush1.bf16.msra.mxu0 %v5176_v59  ;;  %v5252_v59 = vld [vmem:[%s5788_s25 + $0xc80] ss:$16 sps:$4 sm:$0xff]  }
  0xbb   : > { %3652 = vmatpush1.bf16.msra.mxu1 %v5179_v60  ;;  %3612 = vmatprep.subr.bf16.mxu0 %v5184_v61  ;;  %v5255_v60 = vld [vmem:[%s5788_s25 + $0xe80] ss:$16 sps:$4 sm:$0xff]   ;;  %v5260_v61 = vld [vmem:[%s5788_s25 + $0xca4] ss:$16 sps:$4 sm:$0xff]  }
  0xbc   : > { %3653 = vmatprep.subr.bf16.mxu1 %v5187_v62  ;;  %v5263_v62 = vld [vmem:[%s5788_s25 + $0xea4] ss:$16 sps:$4 sm:$0xff]  }
  0xbe   : > { %3613 = vmatpush1.bf16.msra.mxu0 %v5182_v63  ;;  %v5258_v63 = vld [vmem:[%s5788_s25 + $0xca0] ss:$16 sps:$4 sm:$0xff]  }
  0xbf   : > { %3654 = vmatpush1.bf16.msra.mxu1 %v5185_v0  ;;  %3614 = vmatprep.subr.bf16.mxu0 %v5190_v1  ;;  %v5261_v0 = vld [vmem:[%s5788_s25 + $0xea0] ss:$16 sps:$4 sm:$0xff]   ;;  %v5266_v1 = vld [vmem:[%s5788_s25 + $0xcc4] ss:$16 sps:$4 sm:$0xff]  }
  0xc0   : > { %3655 = vmatprep.subr.bf16.mxu1 %v5193_v2  ;;  %v5269_v2 = vld [vmem:[%s5788_s25 + $0xec4] ss:$16 sps:$4 sm:$0xff]  }
  0xc2   : > { %3615 = vmatpush1.bf16.msra.mxu0 %v5188_v3  ;;  %v5264_v3 = vld [vmem:[%s5788_s25 + $0xcc0] ss:$16 sps:$4 sm:$0xff]  }
  0xc3   : > { %3656 = vmatpush1.bf16.msra.mxu1 %v5191_v4  ;;  %3616 = vmatprep.subr.bf16.mxu0 %v5196_v5  ;;  %v5267_v4 = vld [vmem:[%s5788_s25 + $0xec0] ss:$16 sps:$4 sm:$0xff]   ;;  %v5272_v5 = vld [vmem:[%s5788_s25 + $0xce4] ss:$16 sps:$4 sm:$0xff]  }
  0xc4   : > { %3657 = vmatprep.subr.bf16.mxu1 %v5199_v6  ;;  %v5275_v6 = vld [vmem:[%s5788_s25 + $0xee4] ss:$16 sps:$4 sm:$0xff]  }
  0xc6   : > { %3617 = vmatpush1.bf16.msra.mxu0 %v5194_v9  ;;  %v5270_v9 = vld [vmem:[%s5788_s25 + $0xce0] ss:$16 sps:$4 sm:$0xff]  }
  0xc7   : > { %3658 = vmatpush1.bf16.msra.mxu1 %v5197_v10  ;;  %3618 = vmatprep.subr.bf16.mxu0 %v5202_v11  ;;  %v5273_v10 = vld [vmem:[%s5788_s25 + $0xee0] ss:$16 sps:$4 sm:$0xff]   ;;  %v5278_v11 = vld [vmem:[%s5788_s25 + $0xd04] ss:$16 sps:$4 sm:$0xff]  }
  0xc8   : > { %3659 = vmatprep.subr.bf16.mxu1 %v5205_v12  ;;  %v5281_v12 = vld [vmem:[%s5788_s25 + $0xf04] ss:$16 sps:$4 sm:$0xff]  }
  0xca   : > { %3619 = vmatpush1.bf16.msra.mxu0 %v5200_v13  ;;  %v5276_v13 = vld [vmem:[%s5788_s25 + $0xd00] ss:$16 sps:$4 sm:$0xff]  }
  0xcb   : > { %3660 = vmatpush1.bf16.msra.mxu1 %v5203_v14  ;;  %3620 = vmatprep.subr.bf16.mxu0 %v5208_v15  ;;  %v5279_v14 = vld [vmem:[%s5788_s25 + $0xf00] ss:$16 sps:$4 sm:$0xff]   ;;  %v5284_v15 = vld [vmem:[%s5788_s25 + $0xd24] ss:$16 sps:$4 sm:$0xff]  }
  0xcc   : > { %3661 = vmatprep.subr.bf16.mxu1 %v5211_v16  ;;  %v5287_v16 = vld [vmem:[%s5788_s25 + $0xf24] ss:$16 sps:$4 sm:$0xff]  }
  0xce   : > { %3621 = vmatpush1.bf16.msra.mxu0 %v5206_v19  ;;  %v5282_v19 = vld [vmem:[%s5788_s25 + $0xd20] ss:$16 sps:$4 sm:$0xff]  }
  0xcf   : > { %3662 = vmatpush1.bf16.msra.mxu1 %v5209_v20  ;;  %3622 = vmatprep.subr.bf16.mxu0 %v5214_v21  ;;  %v5285_v20 = vld [vmem:[%s5788_s25 + $0xf20] ss:$16 sps:$4 sm:$0xff]   ;;  %v5290_v21 = vld [vmem:[%s5788_s25 + $0xd44] ss:$16 sps:$4 sm:$0xff]  }
  0xd0   : > { %3663 = vmatprep.subr.bf16.mxu1 %v5217_v22  ;;  %v5293_v22 = vld [vmem:[%s5788_s25 + $0xf44] ss:$16 sps:$4 sm:$0xff]  }
  0xd2   : > { %3623 = vmatpush1.bf16.msra.mxu0 %v5212_v27  ;;  %v5288_v27 = vld [vmem:[%s5788_s25 + $0xd40] ss:$16 sps:$4 sm:$0xff]  }
  0xd3   : > { %3664 = vmatpush1.bf16.msra.mxu1 %v5215_v28  ;;  %3624 = vmatprep.subr.bf16.mxu0 %v5220_v29  ;;  %v5291_v28 = vld [vmem:[%s5788_s25 + $0xf40] ss:$16 sps:$4 sm:$0xff]   ;;  %v5296_v29 = vld [vmem:[%s5788_s25 + $0xd64] ss:$16 sps:$4 sm:$0xff]  }
  0xd4   : > { %3665 = vmatprep.subr.bf16.mxu1 %v5223_v30  ;;  %v5299_v30 = vld [vmem:[%s5788_s25 + $0xf64] ss:$16 sps:$4 sm:$0xff]  }
  0xd6   : > { %3625 = vmatpush1.bf16.msra.mxu0 %v5218_v31  ;;  %v5294_v31 = vld [vmem:[%s5788_s25 + $0xd60] ss:$16 sps:$4 sm:$0xff]  }
  0xd7   : > { %3666 = vmatpush1.bf16.msra.mxu1 %v5221_v32  ;;  %3676 = vmatprep.subr.bf16.mxu0 %v5230_v33  ;;  %v5297_v32 = vld [vmem:[%s5788_s25 + $0xf60] ss:$16 sps:$4 sm:$0xff]   ;;  %v5302_v33 = vld [vmem:[%s5788_s25 + $0xd84] ss:$16 sps:$4 sm:$0xff]  }
  0xd8   : > { %3717 = vmatprep.subr.bf16.mxu1 %v5233_v34  ;;  %v5305_v34 = vld [vmem:[%s5788_s25 + $0xf84] ss:$16 sps:$4 sm:$0xff]  }
  0xd9   : > { %3627 = vmatmul.mubr.bf16.vlgmr.msra.gmra.mrb[8].mxu0 %v6045_v39 }
  0xda   : > { %3668 = vmatmul.mubr.bf16.vlgmr.msra.gmra.mrb[8].mxu1 %v6049_v40  ;;  %3677 = vmatpush1.bf16.msra.mxu0 %v5228_v35  ;;  %v5300_v35 = vld [vmem:[%s5788_s25 + $0xd80] ss:$16 sps:$4 sm:$0xff]  }
  0xdb   : > { %3718 = vmatpush1.bf16.msra.mxu1 %v5231_v36  ;;  %3678 = vmatprep.subr.bf16.mxu0 %v5236_v43  ;;  %v5303_v36 = vld [vmem:[%s5788_s25 + $0xf80] ss:$16 sps:$4 sm:$0xff]   ;;  %v5308_v43 = vld [vmem:[%s5788_s25 + $0xda4] ss:$16 sps:$4 sm:$0xff]  }
  0xdc   : > { %3719 = vmatprep.subr.bf16.mxu1 %v5239_v44  ;;  %3708 = vmatprep.mubr.bf16.mxu0 %v6061_v23  ;;  %v5311_v44 = vld [vmem:[%s5788_s25 + $0xfa4] ss:$16 sps:$4 sm:$0xff]  }
  0xdd   : > { %3749 = vmatprep.mubr.bf16.mxu1 %v6065_v24 }
  0xde   : > { %3679 = vmatpush1.bf16.msra.mxu0 %v5234_v45  ;;  %v5306_v45 = vld [vmem:[%s5788_s25 + $0xda0] ss:$16 sps:$4 sm:$0xff]  }
  0xdf   : > { %3720 = vmatpush1.bf16.msra.mxu1 %v5237_v46  ;;  %3680 = vmatprep.subr.bf16.mxu0 %v5242_v47  ;;  %v5309_v46 = vld [vmem:[%s5788_s25 + $0xfa0] ss:$16 sps:$4 sm:$0xff]   ;;  %v5314_v47 = vld [vmem:[%s5788_s25 + $0xdc4] ss:$16 sps:$4 sm:$0xff]  }
  0xe0   : > { %3721 = vmatprep.subr.bf16.mxu1 %v5245_v49  ;;  %v5317_v49 = vld [vmem:[%s5788_s25 + $0xfc4] ss:$16 sps:$4 sm:$0xff]  }
  0xe2   : > { %3681 = vmatpush1.bf16.msra.mxu0 %v5240_v50  ;;  %v5312_v50 = vld [vmem:[%s5788_s25 + $0xdc0] ss:$16 sps:$4 sm:$0xff]  }
  0xe3   : > { %3722 = vmatpush1.bf16.msra.mxu1 %v5243_v51  ;;  %3682 = vmatprep.subr.bf16.mxu0 %v5248_v53  ;;  %v5315_v51 = vld [vmem:[%s5788_s25 + $0xfc0] ss:$16 sps:$4 sm:$0xff]   ;;  %v5320_v53 = vld [vmem:[%s5788_s25 + $0xde4] ss:$16 sps:$4 sm:$0xff]  }
  0xe4   : > { %3723 = vmatprep.subr.bf16.mxu1 %v5251_v54  ;;  %v5323_v54 = vld [vmem:[%s5788_s25 + $0xfe4] ss:$16 sps:$4 sm:$0xff]  }
  0xe6   : > { %3683 = vmatpush1.bf16.msra.mxu0 %v5246_v55  ;;  %v5318_v55 = vld [vmem:[%s5788_s25 + $0xde0] ss:$16 sps:$4 sm:$0xff]  }
  0xe7   : > { %3724 = vmatpush1.bf16.msra.mxu1 %v5249_v56  ;;  %3684 = vmatprep.subr.bf16.mxu0 %v5254_v57  ;;  %v5321_v56 = vld [vmem:[%s5788_s25 + $0xfe0] ss:$16 sps:$4 sm:$0xff]   ;;  %v5330_v57 = vld [vmem:[%s5788_s25 + $0xc] ss:$16 sps:$4 sm:$0xff]  }
  0xe8   : > { %3725 = vmatprep.subr.bf16.mxu1 %v5257_v58  ;;  %v5333_v58 = vld [vmem:[%s5788_s25 + $0x20c] ss:$16 sps:$4 sm:$0xff]  }
  0xea   : > { %3685 = vmatpush1.bf16.msra.mxu0 %v5252_v59  ;;  %v6133_v59 = vcombine.low %v6052_v41, %v6052_v41  ;;  %v5334_v41 = vld [vmem:[%s5788_s25 + $0x28] ss:$16 sps:$4 sm:$0xff]  }
  0xeb   : > { %3726 = vmatpush1.bf16.msra.mxu1 %v5255_v60  ;;  %3686 = vmatprep.subr.bf16.mxu0 %v5260_v61  ;;  %v6137_v60 = vcombine.low %v6055_v42, %v6055_v42  ;;  %v5328_v61 = vld [vmem:[%s5788_s25 + $0x8] ss:$16 sps:$4 sm:$0xff]   ;;  %v5342_v42 = vld [vmem:[%s5788_s25 + $0x4c] ss:$16 sps:$4 sm:$0xff]  }
  0xec   : > { %3727 = vmatprep.subr.bf16.mxu1 %v5263_v62  ;;  %v5331_v62 = vld [vmem:[%s5788_s25 + $0x208] ss:$16 sps:$4 sm:$0xff]  }
  0xee   : > { %3687 = vmatpush1.bf16.msra.mxu0 %v5258_v63  ;;  %v5336_v63 = vld [vmem:[%s5788_s25 + $0x2c] ss:$16 sps:$4 sm:$0xff]  }
  0xef   : > { %3728 = vmatpush1.bf16.msra.mxu1 %v5261_v0  ;;  %3688 = vmatprep.subr.bf16.mxu0 %v5266_v1  ;;  %v5339_v0 = vld [vmem:[%s5788_s25 + $0x22c] ss:$16 sps:$4 sm:$0xff]   ;;  %v5337_v1 = vld [vmem:[%s5788_s25 + $0x228] ss:$16 sps:$4 sm:$0xff]  }
  0xf0   : > { %3729 = vmatprep.subr.bf16.mxu1 %v5269_v2  ;;  %v5345_v2 = vld [vmem:[%s5788_s25 + $0x24c] ss:$16 sps:$4 sm:$0xff]  }
  0xf2   : > { %3689 = vmatpush1.bf16.msra.mxu0 %v5264_v3  ;;  %v5340_v3 = vld [vmem:[%s5788_s25 + $0x48] ss:$16 sps:$4 sm:$0xff]  }
  0xf3   : > { %3730 = vmatpush1.bf16.msra.mxu1 %v5267_v4  ;;  %3690 = vmatprep.subr.bf16.mxu0 %v5272_v5  ;;  %v5343_v4 = vld [vmem:[%s5788_s25 + $0x248] ss:$16 sps:$4 sm:$0xff]   ;;  %v5348_v5 = vld [vmem:[%s5788_s25 + $0x6c] ss:$16 sps:$4 sm:$0xff]  }
  0xf4   : > { %3731 = vmatprep.subr.bf16.mxu1 %v5275_v6  ;;  %v5351_v6 = vld [vmem:[%s5788_s25 + $0x26c] ss:$16 sps:$4 sm:$0xff]  }
  0xf6   : > { %3691 = vmatpush1.bf16.msra.mxu0 %v5270_v9  ;;  %v5349_v9 = vld [vmem:[%s5788_s25 + $0x268] ss:$16 sps:$4 sm:$0xff]  }
  0xf7   : > { %3732 = vmatpush1.bf16.msra.mxu1 %v5273_v10  ;;  %3692 = vmatprep.subr.bf16.mxu0 %v5278_v11  ;;  %v5357_v10 = vld [vmem:[%s5788_s25 + $0x28c] ss:$16 sps:$4 sm:$0xff]   ;;  %v5352_v11 = vld [vmem:[%s5788_s25 + $0x88] ss:$16 sps:$4 sm:$0xff]  }
  0xf8   : > { %3733 = vmatprep.subr.bf16.mxu1 %v5281_v12  ;;  %v5355_v12 = vld [vmem:[%s5788_s25 + $0x288] ss:$16 sps:$4 sm:$0xff]  }
  0xfa   : > { %3693 = vmatpush1.bf16.msra.mxu0 %v5276_v13  ;;  %v5360_v13 = vld [vmem:[%s5788_s25 + $0xac] ss:$16 sps:$4 sm:$0xff]  }
  0xfb   : > { %3734 = vmatpush1.bf16.msra.mxu1 %v5279_v14  ;;  %3694 = vmatprep.subr.bf16.mxu0 %v5284_v15  ;;  %v5363_v14 = vld [vmem:[%s5788_s25 + $0x2ac] ss:$16 sps:$4 sm:$0xff]   ;;  %v5358_v15 = vld [vmem:[%s5788_s25 + $0xa8] ss:$16 sps:$4 sm:$0xff]  }
  0xfc   : > { %3735 = vmatprep.subr.bf16.mxu1 %v5287_v16  ;;  %v5361_v16 = vld [vmem:[%s5788_s25 + $0x2a8] ss:$16 sps:$4 sm:$0xff]  }
  0xfe   : > { %3695 = vmatpush1.bf16.msra.mxu0 %v5282_v19  ;;  %v5366_v19 = vld [vmem:[%s5788_s25 + $0xcc] ss:$16 sps:$4 sm:$0xff]  }
  0xff   : > { %3736 = vmatpush1.bf16.msra.mxu1 %v5285_v20  ;;  %3696 = vmatprep.subr.bf16.mxu0 %v5290_v21  ;;  %v5369_v20 = vld [vmem:[%s5788_s25 + $0x2cc] ss:$16 sps:$4 sm:$0xff]  }
 0x100   : > { %3737 = vmatprep.subr.bf16.mxu1 %v5293_v22 }
 0x102   : > { %3697 = vmatpush1.bf16.msra.mxu0 %v5288_v27  ;;  %v5364_v27 = vld [vmem:[%s5788_s25 + $0xc8] ss:$16 sps:$4 sm:$0xff]  }
 0x103   : > { %3738 = vmatpush1.bf16.msra.mxu1 %v5291_v28  ;;  %3698 = vmatprep.subr.bf16.mxu0 %v5296_v29  ;;  %v5367_v28 = vld [vmem:[%s5788_s25 + $0x2c8] ss:$16 sps:$4 sm:$0xff]  }
 0x104   : > { %3739 = vmatprep.subr.bf16.mxu1 %v5299_v30 }
 0x106   : > { %3699 = vmatpush1.bf16.msra.mxu0 %v5294_v31 }
 0x107   : > { %3740 = vmatpush1.bf16.msra.mxu1 %v5297_v32  ;;  %3700 = vmatprep.subr.bf16.mxu0 %v5302_v33 }
 0x108   : > { %3741 = vmatprep.subr.bf16.mxu1 %v5305_v34 }
 0x10a   : > { %3701 = vmatpush1.bf16.msra.mxu0 %v5300_v35 }
 0x10b   : > { %3742 = vmatpush1.bf16.msra.mxu1 %v5303_v36  ;;  %3702 = vmatprep.subr.bf16.mxu0 %v5308_v43  ;;  %v5372_v43 = vld [vmem:[%s5788_s25 + $0xec] ss:$16 sps:$4 sm:$0xff]  }
 0x10c   : > { %3743 = vmatprep.subr.bf16.mxu1 %v5311_v44  ;;  %v5375_v44 = vld [vmem:[%s5788_s25 + $0x2ec] ss:$16 sps:$4 sm:$0xff]  }
 0x10e   : > { %3703 = vmatpush1.bf16.msra.mxu0 %v5306_v45  ;;  %v5370_v45 = vld [vmem:[%s5788_s25 + $0xe8] ss:$16 sps:$4 sm:$0xff]  }
 0x10f   : > { %3744 = vmatpush1.bf16.msra.mxu1 %v5309_v46  ;;  %3704 = vmatprep.subr.bf16.mxu0 %v5314_v47  ;;  %v5373_v46 = vld [vmem:[%s5788_s25 + $0x2e8] ss:$16 sps:$4 sm:$0xff]   ;;  %v5378_v47 = vld [vmem:[%s5788_s25 + $0x10c] ss:$16 sps:$4 sm:$0xff]  }
 0x110   : > { %3745 = vmatprep.subr.bf16.mxu1 %v5317_v49  ;;  %v5381_v49 = vld [vmem:[%s5788_s25 + $0x30c] ss:$16 sps:$4 sm:$0xff]  }
 0x112   : > { %3705 = vmatpush1.bf16.msra.mxu0 %v5312_v50  ;;  %v5376_v50 = vld [vmem:[%s5788_s25 + $0x108] ss:$16 sps:$4 sm:$0xff]  }
 0x113   : > { %3746 = vmatpush1.bf16.msra.mxu1 %v5315_v51  ;;  %3706 = vmatprep.subr.bf16.mxu0 %v5320_v53  ;;  %v5379_v51 = vld [vmem:[%s5788_s25 + $0x308] ss:$16 sps:$4 sm:$0xff]   ;;  %v5384_v53 = vld [vmem:[%s5788_s25 + $0x12c] ss:$16 sps:$4 sm:$0xff]  }
 0x114   : > { %3747 = vmatprep.subr.bf16.mxu1 %v5323_v54  ;;  %v5387_v54 = vld [vmem:[%s5788_s25 + $0x32c] ss:$16 sps:$4 sm:$0xff]  }
 0x116   : > { %3707 = vmatpush1.bf16.msra.mxu0 %v5318_v55  ;;  %v5382_v55 = vld [vmem:[%s5788_s25 + $0x128] ss:$16 sps:$4 sm:$0xff]  }
 0x117   : > { %3748 = vmatpush1.bf16.msra.mxu1 %v5321_v56  ;;  %3758 = vmatprep.subr.bf16.mxu0 %v5330_v57  ;;  %v5385_v56 = vld [vmem:[%s5788_s25 + $0x328] ss:$16 sps:$4 sm:$0xff]   ;;  %v5390_v57 = vld [vmem:[%s5788_s25 + $0x14c] ss:$16 sps:$4 sm:$0xff]  }
 0x118   : > { %3799 = vmatprep.subr.bf16.mxu1 %v5333_v58  ;;  %v5393_v58 = vld [vmem:[%s5788_s25 + $0x34c] ss:$16 sps:$4 sm:$0xff]  }
 0x119   : > { %3709 = vmatmul.mubr.bf16.vlgmr.msra.gmra.mrb[12].mxu0 %v6133_v59 }
 0x11a   : > { %3750 = vmatmul.mubr.bf16.vlgmr.msra.gmra.mrb[12].mxu1 %v6137_v60  ;;  %3759 = vmatpush1.bf16.msra.mxu0 %v5328_v61  ;;  %v5388_v61 = vld [vmem:[%s5788_s25 + $0x148] ss:$16 sps:$4 sm:$0xff]  }
 0x11b   : > { %3800 = vmatpush1.bf16.msra.mxu1 %v5331_v62  ;;  %3760 = vmatprep.subr.bf16.mxu0 %v5336_v63  ;;  %v5391_v62 = vld [vmem:[%s5788_s25 + $0x348] ss:$16 sps:$4 sm:$0xff]   ;;  %v5396_v63 = vld [vmem:[%s5788_s25 + $0x16c] ss:$16 sps:$4 sm:$0xff]  }
 0x11c   : > { %3801 = vmatprep.subr.bf16.mxu1 %v5339_v0  ;;  %3790 = vmatprep.mubr.bf16.mxu0 %v5838_v48  ;;  %v5346_v48 = vld [vmem:[%s5788_s25 + $0x68] ss:$16 sps:$4 sm:$0xff]   ;;  %v5399_v0 = vld [vmem:[%s5788_s25 + $0x36c] ss:$16 sps:$4 sm:$0xff]  }
 0x11d   : > { %3831 = vmatprep.mubr.bf16.mxu1 %v5843_v52  ;;  %v5354_v52 = vld [vmem:[%s5788_s25 + $0x8c] ss:$16 sps:$4 sm:$0xff]  }
 0x11e   : > { %3761 = vmatpush1.bf16.msra.mxu0 %v5334_v41  ;;  %v5394_v41 = vld [vmem:[%s5788_s25 + $0x168] ss:$16 sps:$4 sm:$0xff]  }
 0x11f   : > { %3802 = vmatpush1.bf16.msra.mxu1 %v5337_v1  ;;  %3762 = vmatprep.subr.bf16.mxu0 %v5342_v42  ;;  %v5397_v1 = vld [vmem:[%s5788_s25 + $0x368] ss:$16 sps:$4 sm:$0xff]   ;;  %v5402_v42 = vld [vmem:[%s5788_s25 + $0x18c] ss:$16 sps:$4 sm:$0xff]  }
 0x120   : > { %3803 = vmatprep.subr.bf16.mxu1 %v5345_v2  ;;  %v5405_v2 = vld [vmem:[%s5788_s25 + $0x38c] ss:$16 sps:$4 sm:$0xff]  }
 0x122   : > { %3763 = vmatpush1.bf16.msra.mxu0 %v5340_v3  ;;  %v5400_v3 = vld [vmem:[%s5788_s25 + $0x188] ss:$16 sps:$4 sm:$0xff]  }
 0x123   : > { %3804 = vmatpush1.bf16.msra.mxu1 %v5343_v4  ;;  %3764 = vmatprep.subr.bf16.mxu0 %v5348_v5  ;;  %v5403_v4 = vld [vmem:[%s5788_s25 + $0x388] ss:$16 sps:$4 sm:$0xff]   ;;  %v5408_v5 = vld [vmem:[%s5788_s25 + $0x1ac] ss:$16 sps:$4 sm:$0xff]  }
 0x124   : > { %3805 = vmatprep.subr.bf16.mxu1 %v5351_v6  ;;  %v5411_v6 = vld [vmem:[%s5788_s25 + $0x3ac] ss:$16 sps:$4 sm:$0xff]  }
 0x126   : > { %3765 = vmatpush1.bf16.msra.mxu0 %v5346_v48  ;;  %v5406_v48 = vld [vmem:[%s5788_s25 + $0x1a8] ss:$16 sps:$4 sm:$0xff]  }
 0x127   : > { %3806 = vmatpush1.bf16.msra.mxu1 %v5349_v9  ;;  %3766 = vmatprep.subr.bf16.mxu0 %v5354_v52  ;;  %v5409_v9 = vld [vmem:[%s5788_s25 + $0x3a8] ss:$16 sps:$4 sm:$0xff]   ;;  %v5414_v52 = vld [vmem:[%s5788_s25 + $0x1cc] ss:$16 sps:$4 sm:$0xff]  }
 0x128   : > { %3807 = vmatprep.subr.bf16.mxu1 %v5357_v10  ;;  %v5417_v10 = vld [vmem:[%s5788_s25 + $0x3cc] ss:$16 sps:$4 sm:$0xff]  }
 0x12a   : > { %3767 = vmatpush1.bf16.msra.mxu0 %v5352_v11  ;;  %v5412_v11 = vld [vmem:[%s5788_s25 + $0x1c8] ss:$16 sps:$4 sm:$0xff]  }
 0x12b   : > { %3808 = vmatpush1.bf16.msra.mxu1 %v5355_v12  ;;  %3768 = vmatprep.subr.bf16.mxu0 %v5360_v13  ;;  %v5415_v12 = vld [vmem:[%s5788_s25 + $0x3c8] ss:$16 sps:$4 sm:$0xff]   ;;  %v5420_v13 = vld [vmem:[%s5788_s25 + $0x1ec] ss:$16 sps:$4 sm:$0xff]  }
 0x12c   : > { %3809 = vmatprep.subr.bf16.mxu1 %v5363_v14  ;;  %v3464_v21 = vpop.f32.mrb[0].mxu0  ;;  %v5423_v14 = vld [vmem:[%s5788_s25 + $0x3ec] ss:$16 sps:$4 sm:$0xff]  }
 0x12d   : > { %v3505_v22 = vpop.f32.mrb[0].mxu1  ;;  %v3466_v30 = vpop.f32.mrb[1].mxu0 }
 0x12e   : > { %v6169_v29 = vadd.f32 %v3505_v22, %v3464_v21  ;;  %v3507_v31 = vpop.f32.mrb[1].mxu1  ;;  %v3468_v33 = vpop.f32.mrb[2].mxu0  ;;  %3769 = vmatpush1.bf16.msra.mxu0 %v5358_v15  ;;  %v5418_v15 = vld [vmem:[%s5788_s25 + $0x1e8] ss:$16 sps:$4 sm:$0xff]  }
 0x12f   : > { %v6171_v32 = vadd.f32 %v3507_v31, %v3466_v30  ;;  %v3509_v34 = vpop.f32.mrb[2].mxu1  ;;  %3810 = vmatpush1.bf16.msra.mxu1 %v5361_v16  ;;  %v3469_v35 = vpop.f32.mrb[3].mxu0  ;;  %3770 = vmatprep.subr.bf16.mxu0 %v5366_v19  ;;  %v5421_v16 = vld [vmem:[%s5788_s25 + $0x3e8] ss:$16 sps:$4 sm:$0xff]   ;;  %v5426_v19 = vld [vmem:[%s5788_s25 + $0x40c] ss:$16 sps:$4 sm:$0xff]  }
 0x130   : > { %v3510_v36 = vpop.f32.mrb[3].mxu1  ;;  %3811 = vmatprep.subr.bf16.mxu1 %v5369_v20  ;;  %v5429_v20 = vld [vmem:[%s5788_s25 + $0x60c] ss:$16 sps:$4 sm:$0xff]   ;;  %v5424_v21 = vld [vmem:[%s5788_s25 + $0x408] ss:$16 sps:$4 sm:$0xff]  }
 0x131   : > { %v5427_v22 = vld [vmem:[%s5788_s25 + $0x608] ss:$16 sps:$4 sm:$0xff]   ;;  %v5438_v33 = vld [vmem:[%s5788_s25 + $0x44c] ss:$16 sps:$4 sm:$0xff]  }
 0x132   : > { %3771 = vmatpush1.bf16.msra.mxu0 %v5364_v27  ;;  %v5432_v27 = vld [vmem:[%s5788_s25 + $0x42c] ss:$16 sps:$4 sm:$0xff]   ;;  %v5430_v30 = vld [vmem:[%s5788_s25 + $0x428] ss:$16 sps:$4 sm:$0xff]  }
 0x133   : > { %3812 = vmatpush1.bf16.msra.mxu1 %v5367_v28  ;;  %3772 = vmatprep.subr.bf16.mxu0 %v5372_v43  ;;  %v5435_v28 = vld [vmem:[%s5788_s25 + $0x62c] ss:$16 sps:$4 sm:$0xff]   ;;  %v5433_v31 = vld [vmem:[%s5788_s25 + $0x628] ss:$16 sps:$4 sm:$0xff]  }
 0x134   : > { %3813 = vmatprep.subr.bf16.mxu1 %v5375_v44  ;;  %v5441_v34 = vld [vmem:[%s5788_s25 + $0x64c] ss:$16 sps:$4 sm:$0xff]   ;;  %v5442_v43 = vld [vmem:[%s5788_s25 + $0x468] ss:$16 sps:$4 sm:$0xff]  }
 0x135   : > { %v5444_v35 = vld [vmem:[%s5788_s25 + $0x46c] ss:$16 sps:$4 sm:$0xff]  }
 0x136   : > { %3773 = vmatpush1.bf16.msra.mxu0 %v5370_v45  ;;  %v5447_v36 = vld [vmem:[%s5788_s25 + $0x66c] ss:$16 sps:$4 sm:$0xff]   ;;  %v5448_v45 = vld [vmem:[%s5788_s25 + $0x488] ss:$16 sps:$4 sm:$0xff]  }
 0x137   : > { %3814 = vmatpush1.bf16.msra.mxu1 %v5373_v46  ;;  %3774 = vmatprep.subr.bf16.mxu0 %v5378_v47  ;;  %v5453_v44 = vld [vmem:[%s5788_s25 + $0x68c] ss:$16 sps:$4 sm:$0xff]   ;;  %v5451_v46 = vld [vmem:[%s5788_s25 + $0x688] ss:$16 sps:$4 sm:$0xff]  }
 0x138   : > { %3815 = vmatprep.subr.bf16.mxu1 %v5381_v49  ;;  %v5456_v47 = vld [vmem:[%s5788_s25 + $0x4ac] ss:$16 sps:$4 sm:$0xff]  }
 0x139   : > { %v5459_v49 = vld [vmem:[%s5788_s25 + $0x6ac] ss:$16 sps:$4 sm:$0xff]  }
 0x13a   : > { %3775 = vmatpush1.bf16.msra.mxu0 %v5376_v50  ;;  %v5454_v50 = vld [vmem:[%s5788_s25 + $0x4a8] ss:$16 sps:$4 sm:$0xff]  }
 0x13b   : > { %3816 = vmatpush1.bf16.msra.mxu1 %v5379_v51  ;;  %3776 = vmatprep.subr.bf16.mxu0 %v5384_v53  ;;  %v5457_v51 = vld [vmem:[%s5788_s25 + $0x6a8] ss:$16 sps:$4 sm:$0xff]   ;;  %v5462_v53 = vld [vmem:[%s5788_s25 + $0x4cc] ss:$16 sps:$4 sm:$0xff]  }
 0x13c   : > { %3817 = vmatprep.subr.bf16.mxu1 %v5387_v54  ;;  %v5465_v54 = vld [vmem:[%s5788_s25 + $0x6cc] ss:$16 sps:$4 sm:$0xff]  }
 0x13e   : > { %3777 = vmatpush1.bf16.msra.mxu0 %v5382_v55 }
 0x13f   : > { %3818 = vmatpush1.bf16.msra.mxu1 %v5385_v56  ;;  %3778 = vmatprep.subr.bf16.mxu0 %v5390_v57 }
 0x140   : > { %3819 = vmatprep.subr.bf16.mxu1 %v5393_v58 }
 0x142   : > { %3779 = vmatpush1.bf16.msra.mxu0 %v5388_v61 }
 0x143   : > { %3820 = vmatpush1.bf16.msra.mxu1 %v5391_v62  ;;  %3780 = vmatprep.subr.bf16.mxu0 %v5396_v63 }
 0x144   : > { %3821 = vmatprep.subr.bf16.mxu1 %v5399_v0 }
 0x146   : > { %3781 = vmatpush1.bf16.msra.mxu0 %v5394_v41  ;;  %v5460_v41 = vld [vmem:[%s5788_s25 + $0x4c8] ss:$16 sps:$4 sm:$0xff]  }
 0x147   : > { %3822 = vmatpush1.bf16.msra.mxu1 %v5397_v1  ;;  %3782 = vmatprep.subr.bf16.mxu0 %v5402_v42  ;;  %v5463_v1 = vld [vmem:[%s5788_s25 + $0x6c8] ss:$16 sps:$4 sm:$0xff]  }
 0x148   : > { %3823 = vmatprep.subr.bf16.mxu1 %v5405_v2 }
 0x14a   : > { %3783 = vmatpush1.bf16.msra.mxu0 %v5400_v3 }
 0x14b   : > { %3824 = vmatpush1.bf16.msra.mxu1 %v5403_v4  ;;  %3784 = vmatprep.subr.bf16.mxu0 %v5408_v5  ;;  %v5466_v5 = vld [vmem:[%s5788_s25 + $0x4e8] ss:$16 sps:$4 sm:$0xff]  }
 0x14c   : > { %3825 = vmatprep.subr.bf16.mxu1 %v5411_v6  ;;  %v5469_v6 = vld [vmem:[%s5788_s25 + $0x6e8] ss:$16 sps:$4 sm:$0xff]  }
 0x14e   : > { %3785 = vmatpush1.bf16.msra.mxu0 %v5406_v48  ;;  %v5474_v48 = vld [vmem:[%s5788_s25 + $0x50c] ss:$16 sps:$4 sm:$0xff]  }
 0x14f   : > { %3826 = vmatpush1.bf16.msra.mxu1 %v5409_v9  ;;  %3786 = vmatprep.subr.bf16.mxu0 %v5414_v52  ;;  %v5477_v9 = vld [vmem:[%s5788_s25 + $0x70c] ss:$16 sps:$4 sm:$0xff]   ;;  %v5472_v52 = vld [vmem:[%s5788_s25 + $0x508] ss:$16 sps:$4 sm:$0xff]  }
 0x150   : > { %3827 = vmatprep.subr.bf16.mxu1 %v5417_v10  ;;  %v5475_v10 = vld [vmem:[%s5788_s25 + $0x708] ss:$16 sps:$4 sm:$0xff]  }
 0x152   : > { %3787 = vmatpush1.bf16.msra.mxu0 %v5412_v11  ;;  %v5480_v11 = vld [vmem:[%s5788_s25 + $0x52c] ss:$16 sps:$4 sm:$0xff]  }
 0x153   : > { %3828 = vmatpush1.bf16.msra.mxu1 %v5415_v12  ;;  %3788 = vmatprep.subr.bf16.mxu0 %v5420_v13  ;;  %v5483_v12 = vld [vmem:[%s5788_s25 + $0x72c] ss:$16 sps:$4 sm:$0xff]   ;;  %v5478_v13 = vld [vmem:[%s5788_s25 + $0x528] ss:$16 sps:$4 sm:$0xff]  }
 0x154   : > { %3829 = vmatprep.subr.bf16.mxu1 %v5423_v14  ;;  %v5481_v14 = vld [vmem:[%s5788_s25 + $0x728] ss:$16 sps:$4 sm:$0xff]  }
 0x156   : > { %3789 = vmatpush1.bf16.msra.mxu0 %v5418_v15  ;;  %v5486_v15 = vld [vmem:[%s5788_s25 + $0x54c] ss:$16 sps:$4 sm:$0xff]  }
 0x157   : > { %3830 = vmatpush1.bf16.msra.mxu1 %v5421_v16  ;;  %3840 = vmatprep.subr.bf16.mxu0 %v5426_v19  ;;  %v5489_v16 = vld [vmem:[%s5788_s25 + $0x74c] ss:$16 sps:$4 sm:$0xff]   ;;  %v5484_v19 = vld [vmem:[%s5788_s25 + $0x548] ss:$16 sps:$4 sm:$0xff]  }
 0x158   : > { %3881 = vmatprep.subr.bf16.mxu1 %v5429_v20  ;;  %v5487_v20 = vld [vmem:[%s5788_s25 + $0x748] ss:$16 sps:$4 sm:$0xff]  }
 0x159   : > { %3791 = vmatmul.mubr.bf16.vlgmr.msra.gmra.mrb[16].mxu0 %v5865_v7  ;;  %v5436_v7 = vld [vmem:[%s5788_s25 + $0x448] ss:$16 sps:$4 sm:$0xff]  }
 0x15a   : > { %3832 = vmatmul.mubr.bf16.vlgmr.msra.gmra.mrb[16].mxu1 %v5867_v8  ;;  %3841 = vmatpush1.bf16.msra.mxu0 %v5424_v21  ;;  %v5439_v8 = vld [vmem:[%s5788_s25 + $0x648] ss:$16 sps:$4 sm:$0xff]   ;;  %v5492_v21 = vld [vmem:[%s5788_s25 + $0x56c] ss:$16 sps:$4 sm:$0xff]  }
 0x15b   : > { %3882 = vmatpush1.bf16.msra.mxu1 %v5427_v22  ;;  %3842 = vmatprep.subr.bf16.mxu0 %v5432_v27  ;;  %v5495_v22 = vld [vmem:[%s5788_s25 + $0x76c] ss:$16 sps:$4 sm:$0xff]   ;;  %v5490_v27 = vld [vmem:[%s5788_s25 + $0x568] ss:$16 sps:$4 sm:$0xff]  }
 0x15c   : > { %3883 = vmatprep.subr.bf16.mxu1 %v5435_v28  ;;  %3872 = vmatprep.mubr.bf16.mxu0 %v5905_v37  ;;  %v5445_v37 = vld [vmem:[%s5788_s25 + $0x668] ss:$16 sps:$4 sm:$0xff]  }
 0x15d   : > { %3913 = vmatprep.mubr.bf16.mxu1 %v5909_v38  ;;  %v5450_v38 = vld [vmem:[%s5788_s25 + $0x48c] ss:$16 sps:$4 sm:$0xff]   ;;  %v5493_v28 = vld [vmem:[%s5788_s25 + $0x768] ss:$16 sps:$4 sm:$0xff]  }
 0x15e   : > { %3843 = vmatpush1.bf16.msra.mxu0 %v5430_v30  ;;  %v5498_v30 = vld [vmem:[%s5788_s25 + $0x58c] ss:$16 sps:$4 sm:$0xff]  }
 0x15f   : > { %3884 = vmatpush1.bf16.msra.mxu1 %v5433_v31  ;;  %3844 = vmatprep.subr.bf16.mxu0 %v5438_v33  ;;  %v5501_v31 = vld [vmem:[%s5788_s25 + $0x78c] ss:$16 sps:$4 sm:$0xff]   ;;  %v5496_v33 = vld [vmem:[%s5788_s25 + $0x588] ss:$16 sps:$4 sm:$0xff]  }
 0x160   : > { %3885 = vmatprep.subr.bf16.mxu1 %v5441_v34  ;;  %v5499_v34 = vld [vmem:[%s5788_s25 + $0x788] ss:$16 sps:$4 sm:$0xff]  }
 0x162   : > { %3845 = vmatpush1.bf16.msra.mxu0 %v5436_v7  ;;  %v5504_v7 = vld [vmem:[%s5788_s25 + $0x5ac] ss:$16 sps:$4 sm:$0xff]  }
 0x163   : > { %3886 = vmatpush1.bf16.msra.mxu1 %v5439_v8  ;;  %3846 = vmatprep.subr.bf16.mxu0 %v5444_v35  ;;  %v5507_v8 = vld [vmem:[%s5788_s25 + $0x7ac] ss:$16 sps:$4 sm:$0xff]   ;;  %v5502_v35 = vld [vmem:[%s5788_s25 + $0x5a8] ss:$16 sps:$4 sm:$0xff]  }
 0x164   : > { %3887 = vmatprep.subr.bf16.mxu1 %v5447_v36  ;;  %v5505_v36 = vld [vmem:[%s5788_s25 + $0x7a8] ss:$16 sps:$4 sm:$0xff]  }
 0x166   : > { %3847 = vmatpush1.bf16.msra.mxu0 %v5442_v43  ;;  %v5510_v43 = vld [vmem:[%s5788_s25 + $0x5cc] ss:$16 sps:$4 sm:$0xff]  }
 0x167   : > { %3888 = vmatpush1.bf16.msra.mxu1 %v5445_v37  ;;  %3848 = vmatprep.subr.bf16.mxu0 %v5450_v38  ;;  %v5513_v37 = vld [vmem:[%s5788_s25 + $0x7cc] ss:$16 sps:$4 sm:$0xff]   ;;  %v5508_v38 = vld [vmem:[%s5788_s25 + $0x5c8] ss:$16 sps:$4 sm:$0xff]  }
 0x168   : > { %3889 = vmatprep.subr.bf16.mxu1 %v5453_v44  ;;  %v5511_v44 = vld [vmem:[%s5788_s25 + $0x7c8] ss:$16 sps:$4 sm:$0xff]  }
 0x16a   : > { %3849 = vmatpush1.bf16.msra.mxu0 %v5448_v45  ;;  %v5516_v45 = vld [vmem:[%s5788_s25 + $0x5ec] ss:$16 sps:$4 sm:$0xff]  }
 0x16b   : > { %3890 = vmatpush1.bf16.msra.mxu1 %v5451_v46  ;;  %3850 = vmatprep.subr.bf16.mxu0 %v5456_v47  ;;  %v5519_v46 = vld [vmem:[%s5788_s25 + $0x7ec] ss:$16 sps:$4 sm:$0xff]   ;;  %v5514_v47 = vld [vmem:[%s5788_s25 + $0x5e8] ss:$16 sps:$4 sm:$0xff]  }
 0x16c   : > { %3891 = vmatprep.subr.bf16.mxu1 %v5459_v49  ;;  %v3546_v55 = vpop.f32.mrb[4].mxu0  ;;  %v5517_v49 = vld [vmem:[%s5788_s25 + $0x7e8] ss:$16 sps:$4 sm:$0xff]  }
 0x16d   : > { %v3587_v56 = vpop.f32.mrb[4].mxu1  ;;  %v3547_v57 = vadd.f32 %v3546_v55, %v6169_v29  ;;  %v3548_v58 = vpop.f32.mrb[5].mxu0  ;;  %v5468_v29 = vld [vmem:[%s5788_s25 + $0x4ec] ss:$16 sps:$4 sm:$0xff]  }
 0x16e   : > { %v3589_v61 = vpop.f32.mrb[5].mxu1  ;;  %v3549_v62 = vadd.f32 %v3548_v58, %v6171_v32  ;;  %v3550_v63 = vpop.f32.mrb[6].mxu0  ;;  %3851 = vmatpush1.bf16.msra.mxu0 %v5454_v50  ;;  %v5471_v32 = vld [vmem:[%s5788_s25 + $0x6ec] ss:$16 sps:$4 sm:$0xff]   ;;  %v5529_v58 = vld [vmem:[%s5788_s25 + $0xa28] ss:$16 sps:$4 sm:$0xff]  }
 0x16f   : > { %v3591_v0 = vpop.f32.mrb[6].mxu1  ;;  %3892 = vmatpush1.bf16.msra.mxu1 %v5457_v51  ;;  %v6243_v42 = vadd.f32 %v3587_v56, %v3547_v57  ;;  %v3551_v2 = vpop.f32.mrb[7].mxu0  ;;  %3852 = vmatprep.subr.bf16.mxu0 %v5462_v53  ;;  %v5522_v50 = vld [vmem:[%s5788_s25 + $0x80c] ss:$16 sps:$4 sm:$0xff]   ;;  %v5520_v53 = vld [vmem:[%s5788_s25 + $0x808] ss:$16 sps:$4 sm:$0xff]  }
 0x170   : > { %v3592_v3 = vpop.f32.mrb[7].mxu1  ;;  %3893 = vmatprep.subr.bf16.mxu1 %v5465_v54  ;;  %v6247_v4 = vadd.f32 %v3589_v61, %v3549_v62  ;;  %v5525_v51 = vld [vmem:[%s5788_s25 + $0xa0c] ss:$16 sps:$4 sm:$0xff]   ;;  %v5523_v54 = vld [vmem:[%s5788_s25 + $0xa08] ss:$16 sps:$4 sm:$0xff]  }
 0x171   : > { %v5528_v55 = vld [vmem:[%s5788_s25 + $0x82c] ss:$16 sps:$4 sm:$0xff]   ;;  %v5526_v57 = vld [vmem:[%s5788_s25 + $0x828] ss:$16 sps:$4 sm:$0xff]  }
 0x172   : > { %3853 = vmatpush1.bf16.msra.mxu0 %v5460_v41  ;;  %v5531_v56 = vld [vmem:[%s5788_s25 + $0xa2c] ss:$16 sps:$4 sm:$0xff]   ;;  %v5538_v41 = vld [vmem:[%s5788_s25 + $0x868] ss:$16 sps:$4 sm:$0xff]  }
 0x173   : > { %3894 = vmatpush1.bf16.msra.mxu1 %v5463_v1  ;;  %3854 = vmatprep.subr.bf16.mxu0 %v5468_v29  ;;  %v5534_v61 = vld [vmem:[%s5788_s25 + $0x84c] ss:$16 sps:$4 sm:$0xff]   ;;  %v5544_v2 = vld [vmem:[%s5788_s25 + $0x888] ss:$16 sps:$4 sm:$0xff]  }
 0x174   : > { %3895 = vmatprep.subr.bf16.mxu1 %v5471_v32  ;;  %v5537_v62 = vld [vmem:[%s5788_s25 + $0xa4c] ss:$16 sps:$4 sm:$0xff]   ;;  %v5547_v3 = vld [vmem:[%s5788_s25 + $0xa88] ss:$16 sps:$4 sm:$0xff]  }
 0x175   : > { %v5540_v63 = vld [vmem:[%s5788_s25 + $0x86c] ss:$16 sps:$4 sm:$0xff]  }
 0x176   : > { %3855 = vmatpush1.bf16.msra.mxu0 %v5466_v5  ;;  %v5543_v0 = vld [vmem:[%s5788_s25 + $0xa6c] ss:$16 sps:$4 sm:$0xff]   ;;  %v5550_v5 = vld [vmem:[%s5788_s25 + $0x8a8] ss:$16 sps:$4 sm:$0xff]  }
 0x177   : > { %3896 = vmatpush1.bf16.msra.mxu1 %v5469_v6  ;;  %3856 = vmatprep.subr.bf16.mxu0 %v5474_v48  ;;  %v5549_v1 = vld [vmem:[%s5788_s25 + $0xa8c] ss:$16 sps:$4 sm:$0xff]   ;;  %v5553_v6 = vld [vmem:[%s5788_s25 + $0xaa8] ss:$16 sps:$4 sm:$0xff]  }
 0x178   : > { %3897 = vmatprep.subr.bf16.mxu1 %v5477_v9  ;;  %v5552_v29 = vld [vmem:[%s5788_s25 + $0x8ac] ss:$16 sps:$4 sm:$0xff]  }
 0x179   : > { %v5555_v32 = vld [vmem:[%s5788_s25 + $0xaac] ss:$16 sps:$4 sm:$0xff]  }
 0x17a   : > { %3857 = vmatpush1.bf16.msra.mxu0 %v5472_v52  ;;  %v5558_v48 = vld [vmem:[%s5788_s25 + $0x8cc] ss:$16 sps:$4 sm:$0xff]  }
 0x17b   : > { %3898 = vmatpush1.bf16.msra.mxu1 %v5475_v10  ;;  %3858 = vmatprep.subr.bf16.mxu0 %v5480_v11  ;;  %v5561_v9 = vld [vmem:[%s5788_s25 + $0xacc] ss:$16 sps:$4 sm:$0xff]  }
 0x17c   : > { %3899 = vmatprep.subr.bf16.mxu1 %v5483_v12 }
 0x17e   : > { %3859 = vmatpush1.bf16.msra.mxu0 %v5478_v13 }
 0x17f   : > { %3900 = vmatpush1.bf16.msra.mxu1 %v5481_v14  ;;  %3860 = vmatprep.subr.bf16.mxu0 %v5486_v15 }
 0x180   : > { %3901 = vmatprep.subr.bf16.mxu1 %v5489_v16 }
 0x182   : > { %3861 = vmatpush1.bf16.msra.mxu0 %v5484_v19  ;;  %v5556_v19 = vld [vmem:[%s5788_s25 + $0x8c8] ss:$16 sps:$4 sm:$0xff]  }
 0x183   : > { %3902 = vmatpush1.bf16.msra.mxu1 %v5487_v20  ;;  %3862 = vmatprep.subr.bf16.mxu0 %v5492_v21  ;;  %v5559_v20 = vld [vmem:[%s5788_s25 + $0xac8] ss:$16 sps:$4 sm:$0xff]  }
 0x184   : > { %3903 = vmatprep.subr.bf16.mxu1 %v5495_v22 }
 0x186   : > { %3863 = vmatpush1.bf16.msra.mxu0 %v5490_v27 }
 0x187   : > { %3904 = vmatpush1.bf16.msra.mxu1 %v5493_v28  ;;  %3864 = vmatprep.subr.bf16.mxu0 %v5498_v30  ;;  %v5562_v30 = vld [vmem:[%s5788_s25 + $0x8e8] ss:$16 sps:$4 sm:$0xff]  }
 0x188   : > { %3905 = vmatprep.subr.bf16.mxu1 %v5501_v31  ;;  %v5565_v31 = vld [vmem:[%s5788_s25 + $0xae8] ss:$16 sps:$4 sm:$0xff]  }
 0x18a   : > { %3865 = vmatpush1.bf16.msra.mxu0 %v5496_v33  ;;  %v5570_v33 = vld [vmem:[%s5788_s25 + $0x90c] ss:$16 sps:$4 sm:$0xff]  }
 0x18b   : > { %3906 = vmatpush1.bf16.msra.mxu1 %v5499_v34  ;;  %3866 = vmatprep.subr.bf16.mxu0 %v5504_v7  ;;  %v5573_v34 = vld [vmem:[%s5788_s25 + $0xb0c] ss:$16 sps:$4 sm:$0xff]   ;;  %v5568_v7 = vld [vmem:[%s5788_s25 + $0x908] ss:$16 sps:$4 sm:$0xff]  }
 0x18c   : > { %3907 = vmatprep.subr.bf16.mxu1 %v5507_v8  ;;  %v5571_v8 = vld [vmem:[%s5788_s25 + $0xb08] ss:$16 sps:$4 sm:$0xff]  }
 0x18e   : > { %3867 = vmatpush1.bf16.msra.mxu0 %v5502_v35  ;;  %v5576_v35 = vld [vmem:[%s5788_s25 + $0x92c] ss:$16 sps:$4 sm:$0xff]  }
 0x18f   : > { %3908 = vmatpush1.bf16.msra.mxu1 %v5505_v36  ;;  %3868 = vmatprep.subr.bf16.mxu0 %v5510_v43  ;;  %v5579_v36 = vld [vmem:[%s5788_s25 + $0xb2c] ss:$16 sps:$4 sm:$0xff]   ;;  %v5574_v43 = vld [vmem:[%s5788_s25 + $0x928] ss:$16 sps:$4 sm:$0xff]  }
 0x190   : > { %3909 = vmatprep.subr.bf16.mxu1 %v5513_v37  ;;  %v5577_v37 = vld [vmem:[%s5788_s25 + $0xb28] ss:$16 sps:$4 sm:$0xff]  }
 0x192   : > { %3869 = vmatpush1.bf16.msra.mxu0 %v5508_v38  ;;  %v5582_v38 = vld [vmem:[%s5788_s25 + $0x94c] ss:$16 sps:$4 sm:$0xff]  }
 0x193   : > { %3910 = vmatpush1.bf16.msra.mxu1 %v5511_v44  ;;  %3870 = vmatprep.subr.bf16.mxu0 %v5516_v45  ;;  %v5585_v44 = vld [vmem:[%s5788_s25 + $0xb4c] ss:$16 sps:$4 sm:$0xff]   ;;  %v5580_v45 = vld [vmem:[%s5788_s25 + $0x948] ss:$16 sps:$4 sm:$0xff]  }
 0x194   : > { %3911 = vmatprep.subr.bf16.mxu1 %v5519_v46  ;;  %v5583_v46 = vld [vmem:[%s5788_s25 + $0xb48] ss:$16 sps:$4 sm:$0xff]  }
 0x196   : > { %3871 = vmatpush1.bf16.msra.mxu0 %v5514_v47  ;;  %v5588_v47 = vld [vmem:[%s5788_s25 + $0x96c] ss:$16 sps:$4 sm:$0xff]  }
 0x197   : > { %3912 = vmatpush1.bf16.msra.mxu1 %v5517_v49  ;;  %3922 = vmatprep.subr.bf16.mxu0 %v5522_v50  ;;  %v5591_v49 = vld [vmem:[%s5788_s25 + $0xb6c] ss:$16 sps:$4 sm:$0xff]   ;;  %v5586_v50 = vld [vmem:[%s5788_s25 + $0x968] ss:$16 sps:$4 sm:$0xff]  }
 0x198   : > { %3963 = vmatprep.subr.bf16.mxu1 %v5525_v51  ;;  %v5589_v51 = vld [vmem:[%s5788_s25 + $0xb68] ss:$16 sps:$4 sm:$0xff]  }
 0x199   : > { %3873 = vmatmul.mubr.bf16.vlgmr.msra.gmra.mrb[20].mxu0 %v5953_v17  ;;  %v5532_v17 = vld [vmem:[%s5788_s25 + $0x848] ss:$16 sps:$4 sm:$0xff]  }
 0x19a   : > { %3914 = vmatmul.mubr.bf16.vlgmr.msra.gmra.mrb[20].mxu1 %v5957_v18  ;;  %3923 = vmatpush1.bf16.msra.mxu0 %v5520_v53  ;;  %v5535_v18 = vld [vmem:[%s5788_s25 + $0xa48] ss:$16 sps:$4 sm:$0xff]   ;;  %v5594_v53 = vld [vmem:[%s5788_s25 + $0x98c] ss:$16 sps:$4 sm:$0xff]  }
 0x19b   : > { %3964 = vmatpush1.bf16.msra.mxu1 %v5523_v54  ;;  %3924 = vmatprep.subr.bf16.mxu0 %v5528_v55  ;;  %v5597_v54 = vld [vmem:[%s5788_s25 + $0xb8c] ss:$16 sps:$4 sm:$0xff]   ;;  %v5592_v55 = vld [vmem:[%s5788_s25 + $0x988] ss:$16 sps:$4 sm:$0xff]  }
 0x19c   : > { %3965 = vmatprep.subr.bf16.mxu1 %v5531_v56  ;;  %3954 = vmatprep.mubr.bf16.mxu0 %v5971_v25  ;;  %v5541_v25 = vld [vmem:[%s5788_s25 + $0xa68] ss:$16 sps:$4 sm:$0xff]  }
 0x19d   : > { %3995 = vmatprep.mubr.bf16.mxu1 %v5975_v26  ;;  %v5546_v26 = vld [vmem:[%s5788_s25 + $0x88c] ss:$16 sps:$4 sm:$0xff]   ;;  %v5595_v56 = vld [vmem:[%s5788_s25 + $0xb88] ss:$16 sps:$4 sm:$0xff]  }
 0x19e   : > { %3925 = vmatpush1.bf16.msra.mxu0 %v5526_v57  ;;  %v5600_v57 = vld [vmem:[%s5788_s25 + $0x9ac] ss:$16 sps:$4 sm:$0xff]  }
 0x19f   : > { %3966 = vmatpush1.bf16.msra.mxu1 %v5529_v58  ;;  %3926 = vmatprep.subr.bf16.mxu0 %v5534_v61  ;;  %v5603_v58 = vld [vmem:[%s5788_s25 + $0xbac] ss:$16 sps:$4 sm:$0xff]   ;;  %v5598_v61 = vld [vmem:[%s5788_s25 + $0x9a8] ss:$16 sps:$4 sm:$0xff]  }
 0x1a0   : > { %3967 = vmatprep.subr.bf16.mxu1 %v5537_v62  ;;  %v5601_v62 = vld [vmem:[%s5788_s25 + $0xba8] ss:$16 sps:$4 sm:$0xff]  }
 0x1a2   : > { %3927 = vmatpush1.bf16.msra.mxu0 %v5532_v17  ;;  %v5606_v17 = vld [vmem:[%s5788_s25 + $0x9cc] ss:$16 sps:$4 sm:$0xff]  }
 0x1a3   : > { %3968 = vmatpush1.bf16.msra.mxu1 %v5535_v18  ;;  %3928 = vmatprep.subr.bf16.mxu0 %v5540_v63  ;;  %v5609_v18 = vld [vmem:[%s5788_s25 + $0xbcc] ss:$16 sps:$4 sm:$0xff]   ;;  %v5604_v63 = vld [vmem:[%s5788_s25 + $0x9c8] ss:$16 sps:$4 sm:$0xff]  }
 0x1a4   : > { %3969 = vmatprep.subr.bf16.mxu1 %v5543_v0  ;;  %v5607_v0 = vld [vmem:[%s5788_s25 + $0xbc8] ss:$16 sps:$4 sm:$0xff]  }
 0x1a6   : > { %3929 = vmatpush1.bf16.msra.mxu0 %v5538_v41  ;;  %v5612_v41 = vld [vmem:[%s5788_s25 + $0x9ec] ss:$16 sps:$4 sm:$0xff]  }
 0x1a7   : > { %3970 = vmatpush1.bf16.msra.mxu1 %v5541_v25  ;;  %3930 = vmatprep.subr.bf16.mxu0 %v5546_v26  ;;  %v5615_v25 = vld [vmem:[%s5788_s25 + $0xbec] ss:$16 sps:$4 sm:$0xff]   ;;  %v5610_v26 = vld [vmem:[%s5788_s25 + $0x9e8] ss:$16 sps:$4 sm:$0xff]  }
 0x1a8   : > { %3971 = vmatprep.subr.bf16.mxu1 %v5549_v1  ;;  %v5613_v1 = vld [vmem:[%s5788_s25 + $0xbe8] ss:$16 sps:$4 sm:$0xff]  }
 0x1aa   : > { %3931 = vmatpush1.bf16.msra.mxu0 %v5544_v2  ;;  %v5618_v2 = vld [vmem:[%s5788_s25 + $0xc0c] ss:$16 sps:$4 sm:$0xff]  }
 0x1ab   : > { %3972 = vmatpush1.bf16.msra.mxu1 %v5547_v3  ;;  %3932 = vmatprep.subr.bf16.mxu0 %v5552_v29  ;;  %v5621_v3 = vld [vmem:[%s5788_s25 + $0xe0c] ss:$16 sps:$4 sm:$0xff]   ;;  %v5616_v29 = vld [vmem:[%s5788_s25 + $0xc08] ss:$16 sps:$4 sm:$0xff]  }
 0x1ac   : > { %3973 = vmatprep.subr.bf16.mxu1 %v5555_v32  ;;  %v3628_v52 = vpop.f32.mrb[8].mxu0  ;;  %v5619_v32 = vld [vmem:[%s5788_s25 + $0xe08] ss:$16 sps:$4 sm:$0xff]  }
 0x1ad   : > { %v3669_v10 = vpop.f32.mrb[8].mxu1  ;;  %v3629_v11 = vadd.f32 %v3628_v52, %v6243_v42  ;;  %v3630_v12 = vpop.f32.mrb[9].mxu0  ;;  %v5564_v42 = vld [vmem:[%s5788_s25 + $0x8ec] ss:$16 sps:$4 sm:$0xff]  }
 0x1ae   : > { %v3671_v13 = vpop.f32.mrb[9].mxu1  ;;  %v3631_v14 = vadd.f32 %v3630_v12, %v6247_v4  ;;  %v3632_v15 = vpop.f32.mrb[10].mxu0  ;;  %3933 = vmatpush1.bf16.msra.mxu0 %v5550_v5  ;;  %v5567_v4 = vld [vmem:[%s5788_s25 + $0xaec] ss:$16 sps:$4 sm:$0xff]  }
 0x1af   : > { %v3673_v16 = vpop.f32.mrb[10].mxu1  ;;  %3974 = vmatpush1.bf16.msra.mxu1 %v5553_v6  ;;  %v6317_v21 = vadd.f32 %v3669_v10, %v3629_v11  ;;  %v3633_v22 = vpop.f32.mrb[11].mxu0  ;;  %3934 = vmatprep.subr.bf16.mxu0 %v5558_v48  ;;  %v5624_v5 = vld [vmem:[%s5788_s25 + $0xc2c] ss:$16 sps:$4 sm:$0xff]   ;;  %v5622_v48 = vld [vmem:[%s5788_s25 + $0xc28] ss:$16 sps:$4 sm:$0xff]  }
 0x1b0   : > { %v3674_v27 = vpop.f32.mrb[11].mxu1  ;;  %3975 = vmatprep.subr.bf16.mxu1 %v5561_v9  ;;  %v6321_v28 = vadd.f32 %v3671_v13, %v3631_v14  ;;  %v5627_v6 = vld [vmem:[%s5788_s25 + $0xe2c] ss:$16 sps:$4 sm:$0xff]   ;;  %v5625_v9 = vld [vmem:[%s5788_s25 + $0xe28] ss:$16 sps:$4 sm:$0xff]  }
 0x1b1   : > { %v5630_v52 = vld [vmem:[%s5788_s25 + $0xc4c] ss:$16 sps:$4 sm:$0xff]   ;;  %v5634_v13 = vld [vmem:[%s5788_s25 + $0xc68] ss:$16 sps:$4 sm:$0xff]  }
 0x1b2   : > { %3935 = vmatpush1.bf16.msra.mxu0 %v5556_v19  ;;  %v5633_v10 = vld [vmem:[%s5788_s25 + $0xe4c] ss:$16 sps:$4 sm:$0xff]   ;;  %v5640_v15 = vld [vmem:[%s5788_s25 + $0xc88] ss:$16 sps:$4 sm:$0xff]  }
 0x1b3   : > { %3976 = vmatpush1.bf16.msra.mxu1 %v5559_v20  ;;  %3936 = vmatprep.subr.bf16.mxu0 %v5564_v42  ;;  %v5636_v11 = vld [vmem:[%s5788_s25 + $0xc6c] ss:$16 sps:$4 sm:$0xff]   ;;  %v5643_v16 = vld [vmem:[%s5788_s25 + $0xe88] ss:$16 sps:$4 sm:$0xff]  }
 0x1b4   : > { %3977 = vmatprep.subr.bf16.mxu1 %v5567_v4  ;;  %v5639_v12 = vld [vmem:[%s5788_s25 + $0xe6c] ss:$16 sps:$4 sm:$0xff]   ;;  %v5646_v22 = vld [vmem:[%s5788_s25 + $0xca8] ss:$16 sps:$4 sm:$0xff]  }
 0x1b5   : > { %v5645_v14 = vld [vmem:[%s5788_s25 + $0xe8c] ss:$16 sps:$4 sm:$0xff]   ;;  %v5649_v27 = vld [vmem:[%s5788_s25 + $0xea8] ss:$16 sps:$4 sm:$0xff]  }
 0x1b6   : > { %3937 = vmatpush1.bf16.msra.mxu0 %v5562_v30  ;;  %v5648_v19 = vld [vmem:[%s5788_s25 + $0xcac] ss:$16 sps:$4 sm:$0xff]  }
 0x1b7   : > { %3978 = vmatpush1.bf16.msra.mxu1 %v5565_v31  ;;  %3938 = vmatprep.subr.bf16.mxu0 %v5570_v33  ;;  %v5651_v20 = vld [vmem:[%s5788_s25 + $0xeac] ss:$16 sps:$4 sm:$0xff]  }
 0x1b8   : > { %3979 = vmatprep.subr.bf16.mxu1 %v5573_v34  ;;  %v5654_v42 = vld [vmem:[%s5788_s25 + $0xccc] ss:$16 sps:$4 sm:$0xff]  }
 0x1b9   : > { %v5657_v4 = vld [vmem:[%s5788_s25 + $0xecc] ss:$16 sps:$4 sm:$0xff]  }
 0x1ba   : > { %3939 = vmatpush1.bf16.msra.mxu0 %v5568_v7 }
 0x1bb   : > { %3980 = vmatpush1.bf16.msra.mxu1 %v5571_v8  ;;  %3940 = vmatprep.subr.bf16.mxu0 %v5576_v35  ;;  %v5652_v8 = vld [vmem:[%s5788_s25 + $0xcc8] ss:$16 sps:$4 sm:$0xff]   ;;  %v290_v35 = vld [vmem:[#allocation2] sm:$0xff] }
 0x1bc   : > { %3981 = vmatprep.subr.bf16.mxu1 %v5579_v36 }
 0x1be   : > { %3941 = vmatpush1.bf16.msra.mxu0 %v5574_v43  ;;  %v291_v43 = vld [vmem:[#allocation2 + $0x8] sm:$0xff] }
 0x1bf   : > { %3982 = vmatpush1.bf16.msra.mxu1 %v5577_v37  ;;  %3942 = vmatprep.subr.bf16.mxu0 %v5582_v38 }
 0x1c0   : > { %3983 = vmatprep.subr.bf16.mxu1 %v5585_v44  ;;  %v5655_v44 = vld [vmem:[%s5788_s25 + $0xec8] ss:$16 sps:$4 sm:$0xff]  }
 0x1c2   : > { %3943 = vmatpush1.bf16.msra.mxu0 %v5580_v45 }
 0x1c3   : > { %3984 = vmatpush1.bf16.msra.mxu1 %v5583_v46  ;;  %3944 = vmatprep.subr.bf16.mxu0 %v5588_v47  ;;  %v5660_v47 = vld [vmem:[%s5788_s25 + $0xcec] ss:$16 sps:$4 sm:$0xff]  }
 0x1c4   : > { %3985 = vmatprep.subr.bf16.mxu1 %v5591_v49  ;;  %v5663_v49 = vld [vmem:[%s5788_s25 + $0xeec] ss:$16 sps:$4 sm:$0xff]  }
 0x1c6   : > { %3945 = vmatpush1.bf16.msra.mxu0 %v5586_v50 }
 0x1c7   : > { %3986 = vmatpush1.bf16.msra.mxu1 %v5589_v51  ;;  %3946 = vmatprep.subr.bf16.mxu0 %v5594_v53  ;;  %v5658_v53 = vld [vmem:[%s5788_s25 + $0xce8] ss:$16 sps:$4 sm:$0xff]  }
 0x1c8   : > { %3987 = vmatprep.subr.bf16.mxu1 %v5597_v54  ;;  %v5661_v54 = vld [vmem:[%s5788_s25 + $0xee8] ss:$16 sps:$4 sm:$0xff]  }
 0x1ca   : > { %3947 = vmatpush1.bf16.msra.mxu0 %v5592_v55  ;;  %v5666_v55 = vld [vmem:[%s5788_s25 + $0xd0c] ss:$16 sps:$4 sm:$0xff]  }
 0x1cb   : > { %3988 = vmatpush1.bf16.msra.mxu1 %v5595_v56  ;;  %3948 = vmatprep.subr.bf16.mxu0 %v5600_v57  ;;  %v5669_v56 = vld [vmem:[%s5788_s25 + $0xf0c] ss:$16 sps:$4 sm:$0xff]   ;;  %v5664_v57 = vld [vmem:[%s5788_s25 + $0xd08] ss:$16 sps:$4 sm:$0xff]  }
 0x1cc   : > { %3989 = vmatprep.subr.bf16.mxu1 %v5603_v58  ;;  %v5667_v58 = vld [vmem:[%s5788_s25 + $0xf08] ss:$16 sps:$4 sm:$0xff]  }
 0x1ce   : > { %3949 = vmatpush1.bf16.msra.mxu0 %v5598_v61  ;;  %v5672_v61 = vld [vmem:[%s5788_s25 + $0xd2c] ss:$16 sps:$4 sm:$0xff]  }
 0x1cf   : > { %3990 = vmatpush1.bf16.msra.mxu1 %v5601_v62  ;;  %3950 = vmatprep.subr.bf16.mxu0 %v5606_v17  ;;  %v5675_v62 = vld [vmem:[%s5788_s25 + $0xf2c] ss:$16 sps:$4 sm:$0xff]   ;;  %v5670_v17 = vld [vmem:[%s5788_s25 + $0xd28] ss:$16 sps:$4 sm:$0xff]  }
 0x1d0   : > { %3991 = vmatprep.subr.bf16.mxu1 %v5609_v18  ;;  %v5673_v18 = vld [vmem:[%s5788_s25 + $0xf28] ss:$16 sps:$4 sm:$0xff]  }
 0x1d2   : > { %3951 = vmatpush1.bf16.msra.mxu0 %v5604_v63  ;;  %v5678_v63 = vld [vmem:[%s5788_s25 + $0xd4c] ss:$16 sps:$4 sm:$0xff]  }
 0x1d3   : > { %3992 = vmatpush1.bf16.msra.mxu1 %v5607_v0  ;;  %3952 = vmatprep.subr.bf16.mxu0 %v5612_v41  ;;  %v5681_v0 = vld [vmem:[%s5788_s25 + $0xf4c] ss:$16 sps:$4 sm:$0xff]   ;;  %v5676_v41 = vld [vmem:[%s5788_s25 + $0xd48] ss:$16 sps:$4 sm:$0xff]  }
 0x1d4   : > { %3993 = vmatprep.subr.bf16.mxu1 %v5615_v25  ;;  %v5679_v25 = vld [vmem:[%s5788_s25 + $0xf48] ss:$16 sps:$4 sm:$0xff]  }
 0x1d6   : > { %3953 = vmatpush1.bf16.msra.mxu0 %v5610_v26  ;;  %v5684_v26 = vld [vmem:[%s5788_s25 + $0xd6c] ss:$16 sps:$4 sm:$0xff]  }
 0x1d7   : > { %3994 = vmatpush1.bf16.msra.mxu1 %v5613_v1  ;;  %4004 = vmatprep.subr.bf16.mxu0 %v5618_v2  ;;  %v5687_v1 = vld [vmem:[%s5788_s25 + $0xf6c] ss:$16 sps:$4 sm:$0xff]   ;;  %v5682_v2 = vld [vmem:[%s5788_s25 + $0xd68] ss:$16 sps:$4 sm:$0xff]  }
 0x1d8   : > { %4045 = vmatprep.subr.bf16.mxu1 %v5621_v3  ;;  %v5685_v3 = vld [vmem:[%s5788_s25 + $0xf68] ss:$16 sps:$4 sm:$0xff]  }
 0x1d9   : > { %3955 = vmatmul.mubr.bf16.vlgmr.msra.gmra.mrb[24].mxu0 %v6045_v39  ;;  %v5628_v39 = vld [vmem:[%s5788_s25 + $0xc48] ss:$16 sps:$4 sm:$0xff]  }
 0x1da   : > { %3996 = vmatmul.mubr.bf16.vlgmr.msra.gmra.mrb[24].mxu1 %v6049_v40  ;;  %4005 = vmatpush1.bf16.msra.mxu0 %v5616_v29  ;;  %v5631_v40 = vld [vmem:[%s5788_s25 + $0xe48] ss:$16 sps:$4 sm:$0xff]   ;;  %v5690_v29 = vld [vmem:[%s5788_s25 + $0xd8c] ss:$16 sps:$4 sm:$0xff]  }
 0x1db   : > { %4046 = vmatpush1.bf16.msra.mxu1 %v5619_v32  ;;  %4006 = vmatprep.subr.bf16.mxu0 %v5624_v5  ;;  %v5693_v32 = vld [vmem:[%s5788_s25 + $0xf8c] ss:$16 sps:$4 sm:$0xff]   ;;  %v5688_v5 = vld [vmem:[%s5788_s25 + $0xd88] ss:$16 sps:$4 sm:$0xff]  }
 0x1dc   : > { %4047 = vmatprep.subr.bf16.mxu1 %v5627_v6  ;;  %4036 = vmatprep.mubr.bf16.mxu0 %v6061_v23  ;;  %v5637_v23 = vld [vmem:[%s5788_s25 + $0xe68] ss:$16 sps:$4 sm:$0xff]  }
 0x1dd   : > { %4077 = vmatprep.mubr.bf16.mxu1 %v6065_v24  ;;  %v5642_v24 = vld [vmem:[%s5788_s25 + $0xc8c] ss:$16 sps:$4 sm:$0xff]   ;;  %v5691_v6 = vld [vmem:[%s5788_s25 + $0xf88] ss:$16 sps:$4 sm:$0xff]  }
 0x1de   : > { %4007 = vmatpush1.bf16.msra.mxu0 %v5622_v48  ;;  %v5696_v48 = vld [vmem:[%s5788_s25 + $0xdac] ss:$16 sps:$4 sm:$0xff]  }
 0x1df   : > { %4048 = vmatpush1.bf16.msra.mxu1 %v5625_v9  ;;  %4008 = vmatprep.subr.bf16.mxu0 %v5630_v52  ;;  %v5699_v9 = vld [vmem:[%s5788_s25 + $0xfac] ss:$16 sps:$4 sm:$0xff]   ;;  %v5694_v52 = vld [vmem:[%s5788_s25 + $0xda8] ss:$16 sps:$4 sm:$0xff]  }
 0x1e0   : > { %4049 = vmatprep.subr.bf16.mxu1 %v5633_v10  ;;  %v5697_v10 = vld [vmem:[%s5788_s25 + $0xfa8] ss:$16 sps:$4 sm:$0xff]  }
 0x1e2   : > { %4009 = vmatpush1.bf16.msra.mxu0 %v5628_v39  ;;  %v5702_v39 = vld [vmem:[%s5788_s25 + $0xdcc] ss:$16 sps:$4 sm:$0xff]  }
 0x1e3   : > { %4050 = vmatpush1.bf16.msra.mxu1 %v5631_v40  ;;  %4010 = vmatprep.subr.bf16.mxu0 %v5636_v11  ;;  %v5705_v40 = vld [vmem:[%s5788_s25 + $0xfcc] ss:$16 sps:$4 sm:$0xff]   ;;  %v5700_v11 = vld [vmem:[%s5788_s25 + $0xdc8] ss:$16 sps:$4 sm:$0xff]  }
 0x1e4   : > { %4051 = vmatprep.subr.bf16.mxu1 %v5639_v12  ;;  %v5703_v12 = vld [vmem:[%s5788_s25 + $0xfc8] ss:$16 sps:$4 sm:$0xff]  }
 0x1e6   : > { %4011 = vmatpush1.bf16.msra.mxu0 %v5634_v13  ;;  %v5708_v13 = vld [vmem:[%s5788_s25 + $0xdec] ss:$16 sps:$4 sm:$0xff]  }
 0x1e7   : > { %4052 = vmatpush1.bf16.msra.mxu1 %v5637_v23  ;;  %4012 = vmatprep.subr.bf16.mxu0 %v5642_v24  ;;  %v5711_v23 = vld [vmem:[%s5788_s25 + $0xfec] ss:$16 sps:$4 sm:$0xff]   ;;  %v5706_v24 = vld [vmem:[%s5788_s25 + $0xde8] ss:$16 sps:$4 sm:$0xff]  }
 0x1e8   : > { %4053 = vmatprep.subr.bf16.mxu1 %v5645_v14  ;;  %v5709_v14 = vld [vmem:[%s5788_s25 + $0xfe8] ss:$16 sps:$4 sm:$0xff]  }
 0x1ea   : > { %4013 = vmatpush1.bf16.msra.mxu0 %v5640_v15 }
 0x1eb   : > { %4054 = vmatpush1.bf16.msra.mxu1 %v5643_v16  ;;  %4014 = vmatprep.subr.bf16.mxu0 %v5648_v19 }
 0x1ec   : > { %4055 = vmatprep.subr.bf16.mxu1 %v5651_v20  ;;  %v3710_v30 = vpop.f32.mrb[12].mxu0 }
 0x1ed   : > { %v3751_v31 = vpop.f32.mrb[12].mxu1  ;;  %v3711_v33 = vadd.f32 %v3710_v30, %v6317_v21  ;;  %v3712_v34 = vpop.f32.mrb[13].mxu0 }
 0x1ee   : > { %v3753_v7 = vpop.f32.mrb[13].mxu1  ;;  %v3713_v36 = vadd.f32 %v3712_v34, %v6321_v28  ;;  %v3714_v37 = vpop.f32.mrb[14].mxu0  ;;  %4015 = vmatpush1.bf16.msra.mxu0 %v5646_v22 }
 0x1ef   : > { %v3755_v38 = vpop.f32.mrb[14].mxu1  ;;  %4056 = vmatpush1.bf16.msra.mxu1 %v5649_v27  ;;  %v3752_v45 = vadd.f32 %v3751_v31, %v3711_v33  ;;  %v3715_v46 = vpop.f32.mrb[15].mxu0  ;;  %4016 = vmatprep.subr.bf16.mxu0 %v5654_v42 }
 0x1f0   : > { %v3756_v21 = vpop.f32.mrb[15].mxu1  ;;  %4057 = vmatprep.subr.bf16.mxu1 %v5657_v4  ;;  %v3754_v50 = vadd.f32 %v3753_v7, %v3713_v36 }
 0x1f1   : > { %v4086_v28 = vadd.f32 %v3752_v45, %v290_v35 }
 0x1f2   : > { %v4087_v51 = vadd.f32 %v3754_v50, %v291_v43  ;;  %4017 = vmatpush1.bf16.msra.mxu0 %v5652_v8 }
 0x1f3   : > { %4058 = vmatpush1.bf16.msra.mxu1 %v5655_v44  ;;  %4090 = vst [vmem:[#allocation2] sm:$0xff] %v4086_v28  ;;  %4018 = vmatprep.subr.bf16.mxu0 %v5660_v47 }
 0x1f4   : > { %4059 = vmatprep.subr.bf16.mxu1 %v5663_v49  ;;  %4091 = vst [vmem:[#allocation2 + $0x8] sm:$0xff] %v4087_v51 }
 0x1f6   : > { %4019 = vmatpush1.bf16.msra.mxu0 %v5658_v53 }
 0x1f7   : > { %4060 = vmatpush1.bf16.msra.mxu1 %v5661_v54  ;;  %4020 = vmatprep.subr.bf16.mxu0 %v5666_v55 }
 0x1f8   : > { %4061 = vmatprep.subr.bf16.mxu1 %v5669_v56 }
 0x1fa   : > { %4021 = vmatpush1.bf16.msra.mxu0 %v5664_v57 }
 0x1fb   : > { %4062 = vmatpush1.bf16.msra.mxu1 %v5667_v58  ;;  %4022 = vmatprep.subr.bf16.mxu0 %v5672_v61 }
 0x1fc   : > { %4063 = vmatprep.subr.bf16.mxu1 %v5675_v62 }
 0x1fe   : > { %4023 = vmatpush1.bf16.msra.mxu0 %v5670_v17 }
 0x1ff   : > { %4064 = vmatpush1.bf16.msra.mxu1 %v5673_v18  ;;  %4024 = vmatprep.subr.bf16.mxu0 %v5678_v63  ;;  %v292_v18 = vld [vmem:[#allocation2 + $0x10] sm:$0xff] }
 0x200   : > { %4065 = vmatprep.subr.bf16.mxu1 %v5681_v0 }
 0x202   : > { %4025 = vmatpush1.bf16.msra.mxu0 %v5676_v41 }
 0x203   : > { %4066 = vmatpush1.bf16.msra.mxu1 %v5679_v25  ;;  %4026 = vmatprep.subr.bf16.mxu0 %v5684_v26  ;;  %v293_v26 = vld [vmem:[#allocation2 + $0x18] sm:$0xff] }
 0x204   : > { %4067 = vmatprep.subr.bf16.mxu1 %v5687_v1 }
 0x206   : > { %4027 = vmatpush1.bf16.msra.mxu0 %v5682_v2 }
 0x207   : > { %4068 = vmatpush1.bf16.msra.mxu1 %v5685_v3  ;;  %4028 = vmatprep.subr.bf16.mxu0 %v5690_v29 }
 0x208   : > { %4069 = vmatprep.subr.bf16.mxu1 %v5693_v32 }
 0x20a   : > { %4029 = vmatpush1.bf16.msra.mxu0 %v5688_v5  ;;  %v6430_v5 = vld [vmem:[#allocation2] sm:$0xff] (!%p4890_p7) }
 0x20b   : > { %4070 = vmatpush1.bf16.msra.mxu1 %v5691_v6  ;;  %4030 = vmatprep.subr.bf16.mxu0 %v5696_v48  ;;  %v6432_v6 = vld [vmem:[#allocation2 + $0x8] sm:$0xff] (!%p4890_p7) }
 0x20c   : > { %4071 = vmatprep.subr.bf16.mxu1 %v5699_v9  ;;  %v4168_v9 = vlaneseq (!%p4890_p7) }
 0x20e   : > { %4031 = vmatpush1.bf16.msra.mxu0 %v5694_v52 }
 0x20f   : > { %4072 = vmatpush1.bf16.msra.mxu1 %v5697_v10  ;;  %4032 = vmatprep.subr.bf16.mxu0 %v5702_v39  ;;  %v4102_v10 = vrot.slane (!%p4890_p7), %v6430_v5, 4  ;;  %v4108_v39 = vrot.slane (!%p4890_p7), %v6432_v6, 4 }
 0x210   : > { %4073 = vmatprep.subr.bf16.mxu1 %v5705_v40 }
 0x212   : > { %4033 = vmatpush1.bf16.msra.mxu0 %v5700_v11  ;;  %v4126_v11 = vmul.f32 (!%p4890_p7), %v6430_v5, %v6430_v5 }
 0x213   : > { %4074 = vmatpush1.bf16.msra.mxu1 %v5703_v12  ;;  %4034 = vmatprep.subr.bf16.mxu0 %v5708_v13  ;;  %v4127_v13 = vmul.f32 (!%p4890_p7), %v6432_v6, %v6432_v6 }
 0x214   : > { %4075 = vmatprep.subr.bf16.mxu1 %v5711_v23 }
 0x216   : > { %4035 = vmatpush1.bf16.msra.mxu0 %v5706_v24 }
 0x217   : > { %4076 = vmatpush1.bf16.msra.mxu1 %v5709_v14  ;;  %v4103_v14 = vadd.f32 (!%p4890_p7), %v4102_v10, %v6430_v5 }
 0x219   : > { %4037 = vmatmul.mubr.bf16.vlgmr.msra.gmra.mrb[28].mxu0 %v6133_v59 }
 0x21a   : > { %4078 = vmatmul.mubr.bf16.vlgmr.msra.gmra.mrb[28].mxu1 %v6137_v60 }
 0x22c   : > { %v3792_v15 = vpop.f32.mrb[16].mxu0 }
 0x22d   : > { %v3833_v16 = vpop.f32.mrb[16].mxu1  ;;  %v3794_v20 = vpop.f32.mrb[17].mxu0 }
 0x22e   : > { %v3834_v19 = vadd.f32 %v3833_v16, %v3792_v15  ;;  %v3835_v22 = vpop.f32.mrb[17].mxu1  ;;  %v3796_v42 = vpop.f32.mrb[18].mxu0  ;;  %v4109_v15 = vadd.f32 (!%p4890_p7), %v4108_v39, %v6432_v6 }
 0x22f   : > { %v3836_v27 = vadd.f32 %v3835_v22, %v3794_v20  ;;  %v3837_v4 = vpop.f32.mrb[18].mxu1  ;;  %v3797_v30 = vpop.f32.mrb[19].mxu0  ;;  %v4136_v22 = vrot.slane (!%p4890_p7), %v4127_v13, 4 }
 0x230   : > { %v3838_v31 = vpop.f32.mrb[19].mxu1  ;;  %v4104_v4 = vrot.slane (!%p4890_p7), %v4103_v14, 2  ;;  %v4110_v30 = vrot.slane (!%p4890_p7), %v4109_v15, 2 }
 0x26c   : > { %v3874_v33 = vpop.f32.mrb[20].mxu0 }
 0x26d   : > { %v3915_v34 = vpop.f32.mrb[20].mxu1  ;;  %v3875_v7 = vadd.f32 %v3874_v33, %v3834_v19  ;;  %v3876_v8 = vpop.f32.mrb[21].mxu0  ;;  %v4130_v19 = vrot.slane (!%p4890_p7), %v4126_v11, 4 }
 0x26e   : > { %v3917_v35 = vpop.f32.mrb[21].mxu1  ;;  %v3877_v36 = vadd.f32 %v3876_v8, %v3836_v27  ;;  %v3878_v43 = vpop.f32.mrb[22].mxu0 }
 0x26f   : > { %v3919_v59 = vpop.f32.mrb[22].mxu1  ;;  %v3916_v37 = vadd.f32 %v3915_v34, %v3875_v7  ;;  %v3879_v60 = vpop.f32.mrb[23].mxu0  ;;  %v4131_v33 = vadd.f32 (!%p4890_p7), %v4130_v19, %v4126_v11  ;;  %v4137_v7 = vadd.f32 (!%p4890_p7), %v4136_v22, %v4127_v13  ;;  %v4111_v43 = vadd.f32 (!%p4890_p7), %v4110_v30, %v4109_v15 }
 0x270   : > { %v3920_v38 = vpop.f32.mrb[23].mxu1  ;;  %v3918_v44 = vadd.f32 %v3917_v35, %v3877_v36  ;;  %v4105_v36 = vadd.f32 (!%p4890_p7), %v4104_v4, %v4103_v14 }
 0x271   : > { %v4138_v38 = vrot.slane (!%p4890_p7), %v4137_v7, 2 }
 0x2ac   : > { %v3956_v45 = vpop.f32.mrb[24].mxu0 }
 0x2ad   : > { %v3997_v46 = vpop.f32.mrb[24].mxu1  ;;  %v3957_v21 = vadd.f32 %v3956_v45, %v3916_v37  ;;  %v3958_v47 = vpop.f32.mrb[25].mxu0  ;;  %v4132_v37 = vrot.slane (!%p4890_p7), %v4131_v33, 2 }
 0x2ae   : > { %v3999_v49 = vpop.f32.mrb[25].mxu1  ;;  %v3959_v50 = vadd.f32 %v3958_v47, %v3918_v44  ;;  %v3960_v28 = vpop.f32.mrb[26].mxu0 }
 0x2af   : > { %v4001_v51 = vpop.f32.mrb[26].mxu1  ;;  %v3998_v53 = vadd.f32 %v3997_v46, %v3957_v21  ;;  %v3961_v54 = vpop.f32.mrb[27].mxu0  ;;  %v4106_v46 = vrot.slane (!%p4890_p7), %v4105_v36, 1  ;;  %v4112_v21 = vrot.slane (!%p4890_p7), %v4111_v43, 1  ;;  %v4139_v28 = vadd.f32 (!%p4890_p7), %v4138_v38, %v4137_v7 }
 0x2b0   : > { %v4002_v55 = vpop.f32.mrb[27].mxu1  ;;  %v4000_v56 = vadd.f32 %v3999_v49, %v3959_v50  ;;  %v4133_v49 = vadd.f32 (!%p4890_p7), %v4132_v37, %v4131_v33 }
 0x2b1   : > { %v4107_v54 = vadd.f32 (!%p4890_p7), %v4106_v46, %v4105_v36  ;;  %v4113_v55 = vadd.f32 (!%p4890_p7), %v4112_v21, %v4111_v43 }
 0x2ec   : > { %v4038_v57 = vpop.f32.mrb[28].mxu0 }
 0x2ed   : > { %v4079_v58 = vpop.f32.mrb[28].mxu1  ;;  %v4039_v61 = vadd.f32 %v4038_v57, %v3998_v53  ;;  %v4040_v62 = vpop.f32.mrb[29].mxu0  ;;  %v4134_v57 = vrot.slane (!%p4890_p7), %v4133_v49, 1 }
 0x2ee   : > { %v4081_v17 = vpop.f32.mrb[29].mxu1  ;;  %v4041_v63 = vadd.f32 %v4040_v62, %v4000_v56  ;;  %v4042_v0 = vpop.f32.mrb[30].mxu0  ;;  %4097 = sbr.rel (%p4890_p7) target bundleno = 786 (0x312), region = 36 }
 0x2ef   : > { %v4083_v41 = vpop.f32.mrb[30].mxu1  ;;  %v4080_v25 = vadd.f32 %v4079_v58, %v4039_v61  ;;  %v4043_v1 = vpop.f32.mrb[31].mxu0  ;;  %v4140_v61 = vrot.slane (!%p4890_p7), %v4139_v28, 1 }
 0x2f0   : > { %v4084_v2 = vpop.f32.mrb[31].mxu1  ;;  %v4082_v3 = vadd.f32 %v4081_v17, %v4041_v63  ;;  %v5737_v63 = vmov (!%p4890_p7), 1983009808   ;;  %v4169_v41 = vshrl.u32 (!%p4890_p7), %v4168_v9, 7 }
 0x2f1   : > { %v4088_v29 = vadd.f32 %v4080_v25, %v292_v18  ;;  %v4135_v18 = vadd.f32 (!%p4890_p7), %v4134_v57, %v4133_v49  ;;  %v4166_v0 = vunpack.c.l.s4 (!%p4890_p7), %v5737_v63  ;;  %v4900_v25 = vpack.c.bf16 (!%p4890_p7), %v6432_v6, %v6430_v5 }
 0x2f2   : > { %v4089_v32 = vadd.f32 %v4082_v3, %v293_v26  ;;  %v4141_v26 = vadd.f32 (!%p4890_p7), %v4140_v61, %v4139_v28 }
 0x2f3   : > { %4092 = vst [vmem:[#allocation2 + $0x10] sm:$0xff] %v4088_v29  ;;  %v4155_v29 = vsel (!%p4890_p7), %vm4154_vm0, %v4107_v54, %v4135_v18  ;;  %4198 = vst [vmem:[%s6482_s2] sm:$0xff] (!%p4890_p7), %v4900_v25 }
 0x2f4   : > { %4093 = vst [vmem:[#allocation2 + $0x18] sm:$0xff] %v4089_v32  ;;  %v4167_v32 = vunpack.c.0.s8 (!%p4890_p7), %v4166_v0  ;;  %v4156_v10 = vsel (!%p4890_p7), %vm4154_vm0, %v4113_v55, %v4141_v26 }
 0x2f5   : > { %v4163_v5 = vcombine.low %v4155_v29, %v4156_v10 }
 0x2fa   : > { %v6434_v48 = vld [vmem:[#allocation2 + $0x10] sm:$0xff] }
 0x2fb   : > { %v6436_v52 = vld [vmem:[#allocation2 + $0x18] sm:$0xff]  ;;  %v4114_v40 = vrot.slane %v6434_v48, 4  ;;  %v4128_v23 = vmul.f32 %v6434_v48, %v6434_v48 }
 0x2fc   : > { %v4120_v12 = vrot.slane %v6436_v52, 4  ;;  %v4129_v24 = vmul.f32 %v6436_v52, %v6436_v52  ;;  %v4901_v3 = vpack.c.bf16 %v6436_v52, %v6434_v48 }
 0x2fd   : > { %v4115_v16 = vadd.f32 %v4114_v40, %v6434_v48  ;;  %v4142_v27 = vrot.slane %v4128_v23, 4  ;;  %v4170_v48 = vsub.s32 %v4167_v32, %v4169_v41 }
 0x2fe   : > { %v4121_v20 = vadd.f32 %v4120_v12, %v6436_v52  ;;  %v4148_v42 = vrot.slane %v4129_v24, 4  ;;  %4199 = vst [vmem:[%s6482_s2 + $0x8] sm:$0xff] %v4901_v3 }
 0x2ff   : > { %v4116_v31 = vrot.slane %v4115_v16, 2  ;;  %v4143_v8 = vadd.f32 %v4142_v27, %v4128_v23  ;;  %v4171_v52 = vrot.slane %v4163_v5, %v4170_v48 }
 0x300   : > { %v4122_v34 = vrot.slane %v4121_v20, 2  ;;  %v4149_v35 = vadd.f32 %v4148_v42, %v4129_v24 }
 0x301   : > { %v4117_v59 = vadd.f32 %v4116_v31, %v4115_v16  ;;  %v4144_v44 = vrot.slane %v4143_v8, 2 }
 0x302   : > { %v4123_v60 = vadd.f32 %v4122_v34, %v4121_v20  ;;  %v4150_v45 = vrot.slane %v4149_v35, 2 }
 0x303   : > { %v4118_v47 = vrot.slane %v4117_v59, 1  ;;  %v4145_v51 = vadd.f32 %v4144_v44, %v4143_v8 }
 0x304   : > { %v4124_v50 = vrot.slane %v4123_v60, 1  ;;  %v4151_v53 = vadd.f32 %v4150_v45, %v4149_v35 }
 0x305   : > { %v4119_v56 = vadd.f32 %v4118_v47, %v4117_v59  ;;  %v4146_v62 = vrot.slane %v4145_v51, 1 }
 0x306   : > { %v4125_v58 = vadd.f32 %v4124_v50, %v4123_v60  ;;  %v4152_v17 = vrot.slane %v4151_v53, 1 }
 0x307   : > { %v4147_v1 = vadd.f32 %v4146_v62, %v4145_v51 }
 0x308   : > { %v4153_v2 = vadd.f32 %v4152_v17, %v4151_v53 }
 0x309   : > { %v4157_v9 = vsel %vm4154_vm0, %v4119_v56, %v4147_v1 }
 0x30a   : > { %v4158_v39 = vsel %vm4154_vm0, %v4125_v58, %v4153_v2 }
 0x30b   : > { %v4164_v6 = vcombine.low %v4157_v9, %v4158_v39 }
 0x30d   : > { %v4178_v40 = vrot.slane %v4164_v6, %v4170_v48 }
 0x30f   : > { %v4179_v11 = vcombine.low %v4171_v52, %v4178_v40 }
 0x311   : > { %4181 = vst [vmem:[%s6483_s3] sm:$0xff] %v4179_v11 }
 0x312 PF: > { %s14_s14 = sadd.s32 1, %s5734_s14   ;;  %s6484_s12 = smov %s5730_s13 }
 0x313   : > { %p11_p8 = scmp.ge.s32.totalorder %s14_s14, 4   ;;  %s6485_s13 = smov %s6487_s15 }
 0x315   :  { %13 = sbr.rel (!%p11_p8) target bundleno = 2 (0x2), region = 81 }

</bundles_post_ra>
